<compile_context>
chip_gen: v5e
topology: v5e:2x2
jax: 0.10.0
libtpu: 0.0.40
codegen_flags: <defaults>
</compile_context>

<pallas_src>
import functools

import jax
import jax.numpy as jnp
from jax.experimental import pallas as pl
from jax.experimental.pallas import tpu as pltpu

N_KP = 8            # number of keypoints / ring-graph nodes
IN_CH = 6           # [x, y, dist_next, angle_next, dist_prev, angle_prev]
HID1 = 512
HID2 = 256
OUT_CH = 2
IMG_W, IMG_H = 640, 480
TB_DEFAULT = 128    # graphs per grid step -> matmul M = 8*TB = 1024 rows


# ----------------------------------------------------------------------------
# Pallas kernel: GraphGCN forward for TB graphs at once (node-major layout).
# ----------------------------------------------------------------------------
def _ring_nbr_sum(h):
    """h: [N, TB, C] node-major. Sum of the two ring neighbours of each node."""
    nxt = jnp.concatenate([h[1:], h[:1]], axis=0)     # node (i+1) % N
    prv = jnp.concatenate([h[-1:], h[:-1]], axis=0)   # node (i-1) % N
    return nxt + prv


def _graph_gcn_kernel(x_ref,
                      w1_ref, b1_ref,          # fused SAGE1  [2*IN_CH, HID1] f32, [1, HID1] f32
                      w2_ref, b2_ref,          # GCN2 (1/3 folded)  [HID1, HID1] bf16, [1, HID1] f32
                      w3l_ref, w3r_ref, b3_ref,  # SAGE3 split (0.5 folded into W_l), bf16 / f32 bias
                      w4_ref, b4_ref,          # GCN4 (1/3 folded)  [HID2, HID2] bf16, [1, HID2] f32
                      wfct_ref, bfc_ref,       # FC  [OUT_CH, HID2] bf16, [OUT_CH, 1] f32
                      out_ref,                 # [OUT_CH, N*TB] f32 (lane-dense slab)
                      *, agg_dtype):
    f32, bf16 = jnp.float32, jnp.bfloat16
    n, tb, _ = x_ref.shape
    m = n * tb

    # Input is the pre-fused SAGE1 operand [0.5*(prev+next) | x] (12 channels).
    x = x_ref[...]                                                      # [N, TB, 12] f32

    # ---- SAGEConv(6 -> 512): single fused matmul over [W1_l; W1_r], in f32 --
    # (K=12 is <1% of MXU FLOPs; f32 keeps full precision on raw pixel coords.)
    h = jnp.dot(x.reshape(m, 2 * IN_CH), w1_ref[...],
                preferred_element_type=f32) + b1_ref[...]
    h = jnp.maximum(h, 0.0)                                             # [M, 512] f32
    # dropout(p=0.5) is identity in eval / inference mode.

    # ---- GCNConv(512 -> 512): D^-1/2 (A+I) D^-1/2 h == (h + prev + next)/3;
    #      the 1/3 is folded into W2 at init, so only the shifted adds remain.
    hh = h.astype(agg_dtype).reshape(n, tb, HID1)
    gin = (hh + _ring_nbr_sum(hh)).reshape(m, HID1)
    h = jnp.dot(gin.astype(bf16), w2_ref[...],
                preferred_element_type=f32) + b2_ref[...]
    h = jnp.maximum(h, 0.0)                                             # [M, 512] f32

    # ---- SAGEConv(512 -> 256): two accumulating dots (no [M, 1024] concat);
    #      the 0.5 neighbour-mean is folded into W3_l at init.
    hh = h.astype(agg_dtype).reshape(n, tb, HID1)
    nbr = _ring_nbr_sum(hh).reshape(m, HID1)
    h = (jnp.dot(nbr.astype(bf16), w3l_ref[...], preferred_element_type=f32)
         + jnp.dot(hh.reshape(m, HID1).astype(bf16), w3r_ref[...],
                   preferred_element_type=f32)
         + b3_ref[...])
    h = jnp.maximum(h, 0.0)                                             # [M, 256] f32

    # ---- GCNConv(256 -> 256), 1/3 folded into W4 ----------------------------
    hh = h.astype(agg_dtype).reshape(n, tb, HID2)
    gin = (hh + _ring_nbr_sum(hh)).reshape(m, HID2)
    h = jnp.dot(gin.astype(bf16), w4_ref[...],
                preferred_element_type=f32) + b4_ref[...]
    h = jnp.maximum(h, 0.0)                                             # [M, 256] f32

    # ---- Linear(256 -> 2), emitted lane-dense as [2, M] ----------------------
    y_t = jax.lax.dot_general(wfct_ref[...], h.astype(bf16),
                              dimension_numbers=(((1,), (1,)), ((), ())),
                              preferred_element_type=f32)               # [2, M]
    out_ref[...] = y_t + bfc_ref[...]


# ----------------------------------------------------------------------------
# Glue (plain JAX): graph feature construction, params, wrapper.
# ----------------------------------------------------------------------------
def keypoints_to_node_features(kp_norm):
    """denormalize_keypoints + keypoints_to_graph node features for one image.

    kp_norm: [N, 2] normalized keypoints in [-1, 1].
    Returns [N, 6] = [x, y, dist_next, angle_next, dist_prev, angle_prev] (pixels).
    prev/next deltas are (neighbour - current), matching
    calculate_distance_angle([x, y], neighbour) in the original module.
    """
    x = kp_norm[:, 0] * (IMG_W / 2.0) + IMG_W / 2.0
    y = kp_norm[:, 1] * (IMG_H / 2.0) + IMG_H / 2.0
    xy = jnp.stack([x, y], axis=1)
    nxt = jnp.roll(xy, -1, axis=0)                    # keypoints[(i+1) % N]
    prv = jnp.roll(xy, 1, axis=0)                     # keypoints[i-1]
    dxn, dyn = nxt[:, 0] - x, nxt[:, 1] - y
    dxp, dyp = prv[:, 0] - x, prv[:, 1] - y
    dist_next = jnp.sqrt(dxn ** 2 + dyn ** 2)
    ang_next = jnp.arctan2(dyn, dxn)
    dist_prev = jnp.sqrt(dxp ** 2 + dyp ** 2)
    ang_prev = jnp.arctan2(dyp, dxp)
    return jnp.stack([x, y, dist_next, ang_next, dist_prev, ang_prev], axis=1)


def init_params(key):
    """Deterministic GraphGCN(6, 512, 256, 2) params, PyTorch-Linear-style init.

    Constant graph scales are folded into the weights: GCN 1/3 into W2/W4 and
    the SAGE 0.5 neighbour-mean into W3_l. SAGE1 stays fused ([W_l; W_r], bias
    from lin_l, PyG default) and in f32; SAGE3 is split for the two-dot kernel.
    fc weight is stored transposed ([out, in]) for the lane-dense output matmul.
    """
    ks = jax.random.split(key, 12)
    bf16 = jnp.bfloat16

    def w(k, fan_in, fan_out):
        bound = 1.0 / jnp.sqrt(jnp.float32(fan_in))
        return jax.random.uniform(k, (fan_in, fan_out), jnp.float32, -bound, bound)

    def b(k, fan_in, shape):
        bound = 1.0 / jnp.sqrt(jnp.float32(fan_in))
        return jax.random.uniform(k, shape, jnp.float32, -bound, bound)

    w1 = jnp.concatenate([w(ks[0], IN_CH, HID1), w(ks[1], IN_CH, HID1)], axis=0)  # f32
    b1 = b(ks[2], IN_CH, (1, HID1))
    w2 = (w(ks[3], HID1, HID1) * (1.0 / 3.0)).astype(bf16)
    b2 = b(ks[4], HID1, (1, HID1))
    w3l = (w(ks[5], HID1, HID2) * 0.5).astype(bf16)
    w3r = w(ks[6], HID1, HID2).astype(bf16)
    b3 = b(ks[7], HID1, (1, HID2))
    w4 = (w(ks[8], HID2, HID2) * (1.0 / 3.0)).astype(bf16)
    b4 = b(ks[9], HID2, (1, HID2))
    wfct = jnp.transpose(w(ks[10], HID2, OUT_CH)).astype(bf16)           # [2, 256]
    bfc = b(ks[11], HID2, (OUT_CH, 1))
    return (w1, b1, w2, b2, w3l, w3r, b3, w4, b4, wfct, bfc)


def _round_up(v, m):
    return (v + m - 1) // m * m


def _choose_tiling(batch, tb_max):
    """Pick (tb, num_tiles). tb multiple of 8; multiple of 16 whenever tiled so
    the [2, N*tb] output block is a multiple of 128 lanes."""
    b8 = _round_up(batch, 8)
    if b8 <= tb_max:
        # Single tile covers the batch (block extent == full array dim, so no
        # 128-multiple constraint). If it splits evenly, use 2 tiles so the
        # "parallel" grid axis can shard across v7x's 2 TensorCores.
        if b8 >= 32 and b8 % 32 == 0:
            return b8 // 2, 2
        return b8, 1
    num_tiles = -(-b8 // tb_max)
    tb = _round_up(-(-b8 // num_tiles), 16)
    num_tiles = -(-b8 // tb)
    return tb, num_tiles


def _agg_dtype():
    """bf16 aggregation only where the VPU has a bf16 path (v6e / v7x)."""
    try:
        kind = jax.devices()[0].device_kind.lower()
    except Exception:
        return jnp.float32
    return jnp.bfloat16 if any(t in kind for t in ("v6", "v7", "7x")) else jnp.float32


def graph_gcn_forward(node_feats, params, tb=TB_DEFAULT):
    """Runs the batched Pallas GraphGCN kernel. node_feats: [B, N, 6] -> [B, N, 2]."""
    B, N, C = node_feats.shape
    # Uniform-degree-3 GCN normalization and 2-neighbour SAGE mean assume the
    # bidirectional ring built in keypoints_to_graph with N >= 3 nodes.
    assert N >= 3 and C == IN_CH

    # SAGE layer-1 aggregation only depends on the input -> build the fused
    # 12-channel layer-1 operand [0.5*(prev+next) | x] as part of graph setup.
    nbr_mean = 0.5 * (jnp.roll(node_feats, 1, axis=1) + jnp.roll(node_feats, -1, axis=1))
    x = jnp.concatenate([nbr_mean, node_feats], axis=-1)                # [B, N, 12]
    x = jnp.transpose(x, (1, 0, 2)).astype(jnp.float32)                 # [N, B, 12] node-major

    tb, num_tiles = _choose_tiling(B, tb)
    b_pad = tb * num_tiles
    if b_pad != B:
        x = jnp.pad(x, ((0, 0), (0, b_pad - B), (0, 0)))
    m = N * tb

    in_specs = [pl.BlockSpec((N, tb, 2 * IN_CH), lambda i: (0, i, 0))]
    # Weights / biases are grid-invariant (constant index_map): fetched once,
    # ~1.2 MiB, negligible VMEM even double-buffered on v7x.
    in_specs += [pl.BlockSpec(p.shape, lambda i: (0, 0)) for p in params]
    out_specs = pl.BlockSpec((OUT_CH, m), lambda i: (0, i))             # lane-dense slab

    # Advisory cost so XLA schedules the feature-construction / output reshape
    # around the custom call instead of serializing with it.
    flops_per_row = 2 * (2 * IN_CH * HID1 + HID1 * HID1 + 2 * HID1 * HID2
                         + HID2 * HID2 + HID2 * OUT_CH)
    bytes_accessed = (int(x.size) * 4
                      + sum(int(p.size) * p.dtype.itemsize for p in params)
                      + OUT_CH * N * b_pad * 4)
    cost = pl.CostEstimate(flops=flops_per_row * N * b_pad,
                           transcendentals=0,
                           bytes_accessed=int(bytes_accessed))

    kernel = functools.partial(_graph_gcn_kernel, agg_dtype=_agg_dtype())

    out = pl.pallas_call(
        kernel,
        out_shape=jax.ShapeDtypeStruct((OUT_CH, num_tiles * m), jnp.float32),
        grid=(num_tiles,),
        in_specs=in_specs,
        out_specs=out_specs,
        compiler_params=pltpu.CompilerParams(
            dimension_semantics=("parallel",),
            vmem_limit_bytes=48 * 1024 * 1024),
        cost_estimate=cost,
    )(x, *params)

    # [2, num_tiles * N * TB] -> [B, N, 2]
    y = out.reshape(OUT_CH, num_tiles, N, tb).transpose(1, 3, 2, 0)
    return y.reshape(b_pad, N, OUT_CH)[:B]


def keypoint_v2_pipeline(imgs, pred_kp_norm, params):
    """Forward pass (no-gt branch): detector output -> denormalize -> ring graph -> GraphGCN."""
    del imgs  # TODO(synk): Keypoint R-CNN backbone not translated; see header comment.
    node_feats = jax.vmap(keypoints_to_node_features)(pred_kp_norm)     # [B, N, 6]
    return graph_gcn_forward(node_feats, params)                        # [B, N, 2]


if __name__ == "__main__":
    key = jax.random.PRNGKey(0)
    k_img, k_kp, k_par = jax.random.split(key, 3)
    B = 2
    # NCHW images (only consumed by the untranslated detector) and its stand-in output.
    imgs = jax.random.uniform(k_img, (B, 3, 16, 16), jnp.float32)
    pred_kp_norm = jax.random.uniform(k_kp, (B, N_KP, 2), jnp.float32, minval=-1.0, maxval=1.0)
    params = init_params(k_par)

    out = jax.jit(keypoint_v2_pipeline)(imgs, pred_kp_norm, params)
    out = jax.block_until_ready(out)
    assert out.shape == (B, N_KP, OUT_CH) and out.dtype == jnp.float32
    assert bool(jnp.all(jnp.isfinite(out)))
    print("KERNEL_OK")
</pallas_src>

<mosaic_0001>
module attributes {stable_mosaic.version = 11 : i64} {
  func.func @_graph_gcn_kernel(%arg0: i32, %arg1: memref<8x8x12xf32, #tpu.memory_space<vmem>>, %arg2: memref<12x512xf32, #tpu.memory_space<vmem>>, %arg3: memref<1x512xf32, #tpu.memory_space<vmem>>, %arg4: memref<512x512xbf16, #tpu.memory_space<vmem>>, %arg5: memref<1x512xf32, #tpu.memory_space<vmem>>, %arg6: memref<512x256xbf16, #tpu.memory_space<vmem>>, %arg7: memref<512x256xbf16, #tpu.memory_space<vmem>>, %arg8: memref<1x256xf32, #tpu.memory_space<vmem>>, %arg9: memref<256x256xbf16, #tpu.memory_space<vmem>>, %arg10: memref<1x256xf32, #tpu.memory_space<vmem>>, %arg11: memref<2x256xbf16, #tpu.memory_space<vmem>>, %arg12: memref<2x1xf32, #tpu.memory_space<vmem>>, %arg13: memref<2x64xf32, #tpu.memory_space<vmem>>) attributes {dimension_semantics = [#tpu.dimension_semantics<parallel>], iteration_bounds = array<i64: 1>, scalar_prefetch = 0 : i64, scratch_operands = 0 : i64, tpu.core_type = #tpu.core_type<tc>, window_params = [{transform_indices = @transform_0, window_bounds = array<i64: 8, 8, 12>}, {pipeline_mode = #tpu.pipeline_mode<synchronous>, transform_indices = @transform_1, window_bounds = array<i64: 12, 512>}, {pipeline_mode = #tpu.pipeline_mode<synchronous>, transform_indices = @transform_2, window_bounds = array<i64: 1, 512>}, {pipeline_mode = #tpu.pipeline_mode<synchronous>, transform_indices = @transform_3, window_bounds = array<i64: 512, 512>}, {pipeline_mode = #tpu.pipeline_mode<synchronous>, transform_indices = @transform_4, window_bounds = array<i64: 1, 512>}, {pipeline_mode = #tpu.pipeline_mode<synchronous>, transform_indices = @transform_5, window_bounds = array<i64: 512, 256>}, {pipeline_mode = #tpu.pipeline_mode<synchronous>, transform_indices = @transform_6, window_bounds = array<i64: 512, 256>}, {pipeline_mode = #tpu.pipeline_mode<synchronous>, transform_indices = @transform_7, window_bounds = array<i64: 1, 256>}, {pipeline_mode = #tpu.pipeline_mode<synchronous>, transform_indices = @transform_8, window_bounds = array<i64: 256, 256>}, {pipeline_mode = #tpu.pipeline_mode<synchronous>, transform_indices = @transform_9, window_bounds = array<i64: 1, 256>}, {pipeline_mode = #tpu.pipeline_mode<synchronous>, transform_indices = @transform_10, window_bounds = array<i64: 2, 256>}, {pipeline_mode = #tpu.pipeline_mode<synchronous>, transform_indices = @transform_11, window_bounds = array<i64: 2, 1>}, {transform_indices = @transform_12, window_bounds = array<i64: 2, 64>}]} {
    %c0 = arith.constant 0 : index
    %c0_0 = arith.constant 0 : index
    %c0_1 = arith.constant 0 : index
    %0 = vector.load %arg1[%c0, %c0_0, %c0_1] : memref<8x8x12xf32, #tpu.memory_space<vmem>>, vector<8x8x12xf32>
    %1 = vector.shape_cast %0 : vector<8x8x12xf32> to vector<64x12xf32>
    %c0_2 = arith.constant 0 : index
    %c0_3 = arith.constant 0 : index
    %2 = vector.load %arg2[%c0_2, %c0_3] : memref<12x512xf32, #tpu.memory_space<vmem>>, vector<12x512xf32>
    %cst = arith.constant dense<0.000000e+00> : vector<64x512xf32>
    %3 = tpu.matmul %1, %2, %cst {dimension_numbers = #tpu.dot_dimension_numbers<[1], [0], [0], [1], [0, 0, 1, 1], [], []>} : vector<64x12xf32>, vector<12x512xf32>, vector<64x512xf32> -> vector<64x512xf32>
    %c0_4 = arith.constant 0 : index
    %c0_5 = arith.constant 0 : index
    %4 = vector.load %arg3[%c0_4, %c0_5] : memref<1x512xf32, #tpu.memory_space<vmem>>, vector<1x512xf32>
    %5 = vector.broadcast %4 : vector<1x512xf32> to vector<64x512xf32>
    %6 = arith.addf %3, %5 : vector<64x512xf32>
    %cst_6 = arith.constant 0.000000e+00 : f32
    %7 = vector.broadcast %cst_6 : f32 to vector<64x512xf32>
    %8 = arith.maximumf %6, %7 : vector<64x512xf32>
    %9 = vector.shape_cast %8 : vector<64x512xf32> to vector<8x8x512xf32>
    %10 = vector.extract_strided_slice %9 {offsets = [1, 0, 0], sizes = [7, 8, 512], strides = [1, 1, 1]} : vector<8x8x512xf32> to vector<7x8x512xf32>
    %11 = vector.extract_strided_slice %9 {offsets = [0, 0, 0], sizes = [1, 8, 512], strides = [1, 1, 1]} : vector<8x8x512xf32> to vector<1x8x512xf32>
    %12 = tpu.concatenate %10, %11 in 0 : vector<7x8x512xf32>, vector<1x8x512xf32> -> vector<8x8x512xf32>
    %13 = vector.extract_strided_slice %9 {offsets = [7, 0, 0], sizes = [1, 8, 512], strides = [1, 1, 1]} : vector<8x8x512xf32> to vector<1x8x512xf32>
    %14 = vector.extract_strided_slice %9 {offsets = [0, 0, 0], sizes = [7, 8, 512], strides = [1, 1, 1]} : vector<8x8x512xf32> to vector<7x8x512xf32>
    %15 = tpu.concatenate %13, %14 in 0 : vector<1x8x512xf32>, vector<7x8x512xf32> -> vector<8x8x512xf32>
    %16 = arith.addf %12, %15 : vector<8x8x512xf32>
    %17 = arith.addf %9, %16 : vector<8x8x512xf32>
    %18 = vector.shape_cast %17 : vector<8x8x512xf32> to vector<64x512xf32>
    %19 = arith.truncf %18 : vector<64x512xf32> to vector<64x512xbf16>
    %c0_7 = arith.constant 0 : index
    %c0_8 = arith.constant 0 : index
    %20 = vector.load %arg4[%c0_7, %c0_8] : memref<512x512xbf16, #tpu.memory_space<vmem>>, vector<512x512xbf16>
    %cst_9 = arith.constant dense<0.000000e+00> : vector<64x512xf32>
    %21 = tpu.matmul %19, %20, %cst_9 {dimension_numbers = #tpu.dot_dimension_numbers<[1], [0], [0], [1], [0, 0, 1, 1], [], []>} : vector<64x512xbf16>, vector<512x512xbf16>, vector<64x512xf32> -> vector<64x512xf32>
    %c0_10 = arith.constant 0 : index
    %c0_11 = arith.constant 0 : index
    %22 = vector.load %arg5[%c0_10, %c0_11] : memref<1x512xf32, #tpu.memory_space<vmem>>, vector<1x512xf32>
    %23 = vector.broadcast %22 : vector<1x512xf32> to vector<64x512xf32>
    %24 = arith.addf %21, %23 : vector<64x512xf32>
    %cst_12 = arith.constant 0.000000e+00 : f32
    %25 = vector.broadcast %cst_12 : f32 to vector<64x512xf32>
    %26 = arith.maximumf %24, %25 : vector<64x512xf32>
    %27 = vector.shape_cast %26 : vector<64x512xf32> to vector<8x8x512xf32>
    %28 = vector.extract_strided_slice %27 {offsets = [1, 0, 0], sizes = [7, 8, 512], strides = [1, 1, 1]} : vector<8x8x512xf32> to vector<7x8x512xf32>
    %29 = vector.extract_strided_slice %27 {offsets = [0, 0, 0], sizes = [1, 8, 512], strides = [1, 1, 1]} : vector<8x8x512xf32> to vector<1x8x512xf32>
    %30 = tpu.concatenate %28, %29 in 0 : vector<7x8x512xf32>, vector<1x8x512xf32> -> vector<8x8x512xf32>
    %31 = vector.extract_strided_slice %27 {offsets = [7, 0, 0], sizes = [1, 8, 512], strides = [1, 1, 1]} : vector<8x8x512xf32> to vector<1x8x512xf32>
    %32 = vector.extract_strided_slice %27 {offsets = [0, 0, 0], sizes = [7, 8, 512], strides = [1, 1, 1]} : vector<8x8x512xf32> to vector<7x8x512xf32>
    %33 = tpu.concatenate %31, %32 in 0 : vector<1x8x512xf32>, vector<7x8x512xf32> -> vector<8x8x512xf32>
    %34 = arith.addf %30, %33 : vector<8x8x512xf32>
    %35 = vector.shape_cast %34 : vector<8x8x512xf32> to vector<64x512xf32>
    %36 = arith.truncf %35 : vector<64x512xf32> to vector<64x512xbf16>
    %c0_13 = arith.constant 0 : index
    %c0_14 = arith.constant 0 : index
    %37 = vector.load %arg6[%c0_13, %c0_14] : memref<512x256xbf16, #tpu.memory_space<vmem>>, vector<512x256xbf16>
    %cst_15 = arith.constant dense<0.000000e+00> : vector<64x256xf32>
    %38 = tpu.matmul %36, %37, %cst_15 {dimension_numbers = #tpu.dot_dimension_numbers<[1], [0], [0], [1], [0, 0, 1, 1], [], []>} : vector<64x512xbf16>, vector<512x256xbf16>, vector<64x256xf32> -> vector<64x256xf32>
    %39 = vector.shape_cast %27 : vector<8x8x512xf32> to vector<64x512xf32>
    %40 = arith.truncf %39 : vector<64x512xf32> to vector<64x512xbf16>
    %c0_16 = arith.constant 0 : index
    %c0_17 = arith.constant 0 : index
    %41 = vector.load %arg7[%c0_16, %c0_17] : memref<512x256xbf16, #tpu.memory_space<vmem>>, vector<512x256xbf16>
    %cst_18 = arith.constant dense<0.000000e+00> : vector<64x256xf32>
    %42 = tpu.matmul %40, %41, %cst_18 {dimension_numbers = #tpu.dot_dimension_numbers<[1], [0], [0], [1], [0, 0, 1, 1], [], []>} : vector<64x512xbf16>, vector<512x256xbf16>, vector<64x256xf32> -> vector<64x256xf32>
    %43 = arith.addf %38, %42 : vector<64x256xf32>
    %c0_19 = arith.constant 0 : index
    %c0_20 = arith.constant 0 : index
    %44 = vector.load %arg8[%c0_19, %c0_20] : memref<1x256xf32, #tpu.memory_space<vmem>>, vector<1x256xf32>
    %45 = vector.broadcast %44 : vector<1x256xf32> to vector<64x256xf32>
    %46 = arith.addf %43, %45 : vector<64x256xf32>
    %cst_21 = arith.constant 0.000000e+00 : f32
    %47 = vector.broadcast %cst_21 : f32 to vector<64x256xf32>
    %48 = arith.maximumf %46, %47 : vector<64x256xf32>
    %49 = vector.shape_cast %48 : vector<64x256xf32> to vector<8x8x256xf32>
    %50 = vector.extract_strided_slice %49 {offsets = [1, 0, 0], sizes = [7, 8, 256], strides = [1, 1, 1]} : vector<8x8x256xf32> to vector<7x8x256xf32>
    %51 = vector.extract_strided_slice %49 {offsets = [0, 0, 0], sizes = [1, 8, 256], strides = [1, 1, 1]} : vector<8x8x256xf32> to vector<1x8x256xf32>
    %52 = tpu.concatenate %50, %51 in 0 : vector<7x8x256xf32>, vector<1x8x256xf32> -> vector<8x8x256xf32>
    %53 = vector.extract_strided_slice %49 {offsets = [7, 0, 0], sizes = [1, 8, 256], strides = [1, 1, 1]} : vector<8x8x256xf32> to vector<1x8x256xf32>
    %54 = vector.extract_strided_slice %49 {offsets = [0, 0, 0], sizes = [7, 8, 256], strides = [1, 1, 1]} : vector<8x8x256xf32> to vector<7x8x256xf32>
    %55 = tpu.concatenate %53, %54 in 0 : vector<1x8x256xf32>, vector<7x8x256xf32> -> vector<8x8x256xf32>
    %56 = arith.addf %52, %55 : vector<8x8x256xf32>
    %57 = arith.addf %49, %56 : vector<8x8x256xf32>
    %58 = vector.shape_cast %57 : vector<8x8x256xf32> to vector<64x256xf32>
    %59 = arith.truncf %58 : vector<64x256xf32> to vector<64x256xbf16>
    %c0_22 = arith.constant 0 : index
    %c0_23 = arith.constant 0 : index
    %60 = vector.load %arg9[%c0_22, %c0_23] : memref<256x256xbf16, #tpu.memory_space<vmem>>, vector<256x256xbf16>
    %cst_24 = arith.constant dense<0.000000e+00> : vector<64x256xf32>
    %61 = tpu.matmul %59, %60, %cst_24 {dimension_numbers = #tpu.dot_dimension_numbers<[1], [0], [0], [1], [0, 0, 1, 1], [], []>} : vector<64x256xbf16>, vector<256x256xbf16>, vector<64x256xf32> -> vector<64x256xf32>
    %c0_25 = arith.constant 0 : index
    %c0_26 = arith.constant 0 : index
    %62 = vector.load %arg10[%c0_25, %c0_26] : memref<1x256xf32, #tpu.memory_space<vmem>>, vector<1x256xf32>
    %63 = vector.broadcast %62 : vector<1x256xf32> to vector<64x256xf32>
    %64 = arith.addf %61, %63 : vector<64x256xf32>
    %cst_27 = arith.constant 0.000000e+00 : f32
    %65 = vector.broadcast %cst_27 : f32 to vector<64x256xf32>
    %66 = arith.maximumf %64, %65 : vector<64x256xf32>
    %c0_28 = arith.constant 0 : index
    %c0_29 = arith.constant 0 : index
    %67 = vector.load %arg11[%c0_28, %c0_29] : memref<2x256xbf16, #tpu.memory_space<vmem>>, vector<2x256xbf16>
    %68 = arith.truncf %66 : vector<64x256xf32> to vector<64x256xbf16>
    %cst_30 = arith.constant dense<0.000000e+00> : vector<2x64xf32>
    %69 = tpu.matmul %67, %68, %cst_30 {dimension_numbers = #tpu.dot_dimension_numbers<[1], [1], [0], [0], [0, 0, 1, 0], [], []>} : vector<2x256xbf16>, vector<64x256xbf16>, vector<2x64xf32> -> vector<2x64xf32>
    %c0_31 = arith.constant 0 : index
    %c0_32 = arith.constant 0 : index
    %70 = vector.load %arg12[%c0_31, %c0_32] : memref<2x1xf32, #tpu.memory_space<vmem>>, vector<2x1xf32>
    %71 = vector.broadcast %70 : vector<2x1xf32> to vector<2x64xf32>
    %72 = arith.addf %69, %71 : vector<2x64xf32>
    %c0_33 = arith.constant 0 : index
    %c0_34 = arith.constant 0 : index
    %73 = vector.load %arg13[%c0_33, %c0_34] : memref<2x64xf32, #tpu.memory_space<vmem>>, vector<2x64xf32>
    tpu.vector_store %arg13[%c0_33, %c0_34], %72 {strides = array<i32>} : memref<2x64xf32, #tpu.memory_space<vmem>>, vector<2x64xf32>,
    return
  }
  func.func @transform_0(%arg0: i32) -> (i32, i32, i32) {
    %c0_i32 = arith.constant 0 : i32
    %c0_i32_0 = arith.constant 0 : i32
    %c0_i32_1 = arith.constant 0 : i32
    return %c0_i32, %arg0, %c0_i32_0 : i32, i32, i32
  }
  func.func @transform_1(%arg0: i32) -> (i32, i32) {
    %c0_i32 = arith.constant 0 : i32
    %c0_i32_0 = arith.constant 0 : i32
    %c0_i32_1 = arith.constant 0 : i32
    return %c0_i32, %c0_i32_0 : i32, i32
  }
  func.func @transform_2(%arg0: i32) -> (i32, i32) {
    %c0_i32 = arith.constant 0 : i32
    %c0_i32_0 = arith.constant 0 : i32
    %c0_i32_1 = arith.constant 0 : i32
    return %c0_i32, %c0_i32_0 : i32, i32
  }
  func.func @transform_3(%arg0: i32) -> (i32, i32) {
    %c0_i32 = arith.constant 0 : i32
    %c0_i32_0 = arith.constant 0 : i32
    %c0_i32_1 = arith.constant 0 : i32
    return %c0_i32, %c0_i32_0 : i32, i32
  }
  func.func @transform_4(%arg0: i32) -> (i32, i32) {
    %c0_i32 = arith.constant 0 : i32
    %c0_i32_0 = arith.constant 0 : i32
    %c0_i32_1 = arith.constant 0 : i32
    return %c0_i32, %c0_i32_0 : i32, i32
  }
  func.func @transform_5(%arg0: i32) -> (i32, i32) {
    %c0_i32 = arith.constant 0 : i32
    %c0_i32_0 = arith.constant 0 : i32
    %c0_i32_1 = arith.constant 0 : i32
    return %c0_i32, %c0_i32_0 : i32, i32
  }
  func.func @transform_6(%arg0: i32) -> (i32, i32) {
    %c0_i32 = arith.constant 0 : i32
    %c0_i32_0 = arith.constant 0 : i32
    %c0_i32_1 = arith.constant 0 : i32
    return %c0_i32, %c0_i32_0 : i32, i32
  }
  func.func @transform_7(%arg0: i32) -> (i32, i32) {
    %c0_i32 = arith.constant 0 : i32
    %c0_i32_0 = arith.constant 0 : i32
    %c0_i32_1 = arith.constant 0 : i32
    return %c0_i32, %c0_i32_0 : i32, i32
  }
  func.func @transform_8(%arg0: i32) -> (i32, i32) {
    %c0_i32 = arith.constant 0 : i32
    %c0_i32_0 = arith.constant 0 : i32
    %c0_i32_1 = arith.constant 0 : i32
    return %c0_i32, %c0_i32_0 : i32, i32
  }
  func.func @transform_9(%arg0: i32) -> (i32, i32) {
    %c0_i32 = arith.constant 0 : i32
    %c0_i32_0 = arith.constant 0 : i32
    %c0_i32_1 = arith.constant 0 : i32
    return %c0_i32, %c0_i32_0 : i32, i32
  }
  func.func @transform_10(%arg0: i32) -> (i32, i32) {
    %c0_i32 = arith.constant 0 : i32
    %c0_i32_0 = arith.constant 0 : i32
    %c0_i32_1 = arith.constant 0 : i32
    return %c0_i32, %c0_i32_0 : i32, i32
  }
  func.func @transform_11(%arg0: i32) -> (i32, i32) {
    %c0_i32 = arith.constant 0 : i32
    %c0_i32_0 = arith.constant 0 : i32
    %c0_i32_1 = arith.constant 0 : i32
    return %c0_i32, %c0_i32_0 : i32, i32
  }
  func.func @transform_12(%arg0: i32) -> (i32, i32) {
    %c0_i32 = arith.constant 0 : i32
    %c0_i32_0 = arith.constant 0 : i32
    return %c0_i32, %arg0 : i32, i32
  }
}

</mosaic_0001>

<bundles_post_ra>
// kernel: keypoint_v2_pipeline.1
= control target key start
LH: loop header
LB: loop body
LE: loop exit
PB: predicated region body
PF: predicated region fallthrough
CT: control target
= control target key end

     0   :  { %17 = vsyncpa [#allocation3], 0  ;;  %s6865_s0 = inlined_call_operand.vmem [shape: f32[8,8,12], index: 0, kind: input, shape index: {}]   ;;  %s6866_s1 = inlined_call_operand.vmem [shape: f32[12,512], index: 1, kind: input, shape index: {}]   ;;  %s6867_s2 = inlined_call_operand.vmem [shape: f32[1,512], index: 2, kind: input, shape index: {}]   ;;  %s6868_s3 = inlined_call_operand.hbm [shape: bf16[512,512], index: 3, kind: input, shape index: {}]   ;;  %s6869_s4 = inlined_call_operand.vmem [shape: f32[1,512], index: 4, kind: input, shape index: {}]   ;;  %s6870_s5 = inlined_call_operand.vmem [shape: bf16[512,256], index: 5, kind: input, shape index: {}]   ;;  %s6871_s6 = inlined_call_operand.hbm [shape: bf16[512,256], index: 6, kind: input, shape index: {}]   ;;  %s6872_s7 = inlined_call_operand.vmem [shape: f32[1,256], index: 7, kind: input, shape index: {}]   ;;  %s6873_s8 = inlined_call_operand.vmem [shape: bf16[256,256], index: 8, kind: input, shape index: {}]   ;;  %s6874_s9 = inlined_call_operand.vmem [shape: f32[1,256], index: 9, kind: input, shape index: {}]   ;;  %s6875_s10 = inlined_call_operand.hbm [shape: bf16[2,256], index: 10, kind: input, shape index: {}]   ;;  %s6876_s11 = inlined_call_operand.vmem [shape: f32[2,1], index: 11, kind: input, shape index: {}]   ;;  %s6877_s12 = inlined_call_operand.vmem [shape: f32[2,64], index: 12, kind: output, shape index: {}]  }
   0x1   :  { %18 = vsyncpa [#allocation5], 0  ;;  %s46_s23 = sshll.u32 %s6871_s6, 4  ;;  %s5026_s24 = smov [#allocation4]   ;;  %s47_s23 = int_to_ptr.hbm [resolvable:$true] %s46_s23 }
   0x2   :  { %s48_s25 = sshll.u32 %s5026_s24, 4  ;;  %s29_s28 = sshll.u32 %s6868_s3, 4  ;;  %s49_s25 = int_to_ptr.vmem [resolvable:$true] %s48_s25  ;;  %s30_s28 = int_to_ptr.hbm [resolvable:$true] %s29_s28 }
   0x3   :  { %s5027_s29 = smov 128   ;;  %s5028_s30 = smov 8  }
   0x4   :  { %54 = dma.hbm_to_vmem [thread:$0]  %s47_s23, 8192, %s49_s25, [#allocation5], %s5027_s29, %s5027_s29, %s5028_s30  }
   0x5   :  { %s5029_s13 = smov [#allocation2]   ;;  %s5030_s15 = smov 256  }
   0x6   :  { %s31_s14 = sshll.u32 %s5029_s13, 4  ;;  %s5031_s16 = smov 16   ;;  %s32_s14 = int_to_ptr.vmem [resolvable:$true] %s31_s14 }
   0x7   :  { %37 = dma.hbm_to_vmem [thread:$0]  %s30_s28, 16384, %s32_s14, [#allocation3], %s5030_s15, %s5030_s15, %s5031_s16  }
   0x8   :  { %s66_s18 = sshll.u32 %s6875_s10, 4  ;;  %s5032_s19 = smov [#allocation6]   ;;  %s67_s18 = int_to_ptr.hbm [resolvable:$true] %s66_s18 }
   0x9   :  { %s68_s20 = sshll.u32 %s5032_s19, 4  ;;  %s69_s20 = int_to_ptr.vmem [resolvable:$true] %s68_s20 }
   0xa   :  { %71 = dma.hbm_to_vmem [thread:$0]  %s67_s18, 32, %s69_s20, [#allocation5]  }
   0xb   :  { %5022 = dma.done.wait [#allocation3], 16384  }
   0xc   :  { %5023 = vsyncadd [#allocation3], 4294950912 }
   0xd   :  { %5024 = dma.done.wait [#allocation5], 8224  }
   0xe   :  { %5025 = vsyncadd [#allocation5], 4294959072  ;;  %vm138_vm0 = vcmask 1043456   ;;  %v99_v0 = vld [vmem:[%s6866_s1 + $0x20] sm:$0xf]  ;;  %v96_v3 = vld [vmem:[%s6866_s1 + $0x8] sm:$0xff] }
   0xf   :  { %v100_v1 = vld [vmem:[%s6866_s1 + $0x28] sm:$0xf]  ;;  %v95_v2 = vld [vmem:[%s6866_s1] sm:$0xff]  ;;  %3460 = vmatpush.msk.msra.mxu0 %vm138_vm0, %v99_v0  ;;  %4936 = vmatpush.msk.msra.mxu2 %vm138_vm0, %v99_v0  ;;  %vm113_vm1 = vcmask 97280   ;;  %v94_v5 = vld [vmem:[%s6865_s0 + $0x38] sm:$0xff]  ;;  %vm3452_vm2 = vcmask 517120  }
  0x10   :  { %3469 = vmatpush.msk.msra.mxu1 %vm138_vm0, %v100_v1  ;;  %4938 = vmatpush.msk.msra.mxu3 %vm138_vm0, %v100_v1  ;;  %v87_v4 = vld [vmem:[%s6865_s0] sm:$0xff]  ;;  %v101_v6 = vld [vmem:[%s6866_s1 + $0x30] sm:$0xf]  ;;  %v102_v7 = vld [vmem:[%s6866_s1 + $0x38] sm:$0xf] }
  0x11   :  { %166 = vmatpush.msra.mxu0 %v95_v2  ;;  %4937 = vmatpush.msra.mxu2 %v95_v2  ;;  %v97_v8 = vld [vmem:[%s6866_s1 + $0x10] sm:$0xff]  ;;  %v98_v9 = vld [vmem:[%s6866_s1 + $0x18] sm:$0xff]  ;;  %v88_v10 = vld [vmem:[%s6865_s0 + $0x8] sm:$0xff] }
  0x12   :  { %207 = vmatpush.msra.mxu1 %v96_v3  ;;  %4939 = vmatpush.msra.mxu3 %v96_v3  ;;  %v89_v11 = vld [vmem:[%s6865_s0 + $0x10] sm:$0xff]  ;;  %v90_v12 = vld [vmem:[%s6865_s0 + $0x18] sm:$0xff]  ;;  %v91_v13 = vld [vmem:[%s6865_s0 + $0x20] sm:$0xff] }
  0x13   :  { %3461 = vmatmul.msk.f32.vlgmr.msra.gmra.mxu0 %vm113_vm1, %v87_v4  ;;  %3468 = vmatmul.msk.f32.vlgmr.msra.gmra.mxu2 %vm113_vm1, %v94_v5  ;;  %v3610_v14 = vld [vmem:[#allocation2 + $0xe0] sm:$0xf]  ;;  %v4678_v15 = vld [vmem:[#allocation2 + $0xec] sm:$0xf0]  ;;  %v93_v21 = vld [vmem:[%s6865_s0 + $0x30] sm:$0xff] }
  0x14   :  { %3470 = vmatmul.msk.f32.vlgmr.msra.gmra.mxu1 %vm113_vm1, %v87_v4  ;;  %3477 = vmatmul.msk.f32.vlgmr.msra.gmra.mxu3 %vm113_vm1, %v94_v5  ;;  %v3738_v16 = vld [vmem:[#allocation2 + $0x1e0] sm:$0xf]  ;;  %v3611_v17 = vor.u32 %v4678_v15, %v3610_v14  ;;  %v4710_v18 = vld [vmem:[#allocation2 + $0x1ec] sm:$0xf0]  ;;  %v5197_v2 = vld [vmem:[%s6867_s2] sm:$0xf] }
  0x15   :  { %3478 = vmatpush.msk.msrb.mxu2 %vm138_vm0, %v101_v6  ;;  %3487 = vmatpush.msk.msrb.mxu3 %vm138_vm0, %v102_v7  ;;  %v3739_v19 = vor.u32 %v4710_v18, %v3738_v16  ;;  %v92_v20 = vld [vmem:[%s6865_s0 + $0x28] sm:$0xff]  ;;  %v4674_v23 = vld [vmem:[#allocation2 + $0xcc] sm:$0xf0]  ;;  %v5203_v7 = vperm.slane %v5197_v2, 0 }
  0x16   :  { %1205 = vmatpush.bf16.msrb.mxu0 %v3611_v17  ;;  %v3594_v22 = vld [vmem:[#allocation2 + $0xc0] sm:$0xf]  ;;  %v4706_v26 = vld [vmem:[#allocation2 + $0x1cc] sm:$0xf0] }
  0x17   :  { %248 = vmatpush.msrb.mxu2 %v97_v8  ;;  %289 = vmatpush.msrb.mxu3 %v98_v9  ;;  %v3722_v24 = vld [vmem:[#allocation2 + $0x1c0] sm:$0xf]  ;;  %v3595_v25 = vor.u32 %v4674_v23, %v3594_v22  ;;  %v4670_v29 = vld [vmem:[#allocation2 + $0xac] sm:$0xf0] }
  0x18   :  { %1234 = vmatpush.bf16.msrb.mxu1 %v3739_v19  ;;  %v3723_v27 = vor.u32 %v4706_v26, %v3722_v24  ;;  %v3578_v28 = vld [vmem:[#allocation2 + $0xa0] sm:$0xf]  ;;  %v4702_v32 = vld [vmem:[#allocation2 + $0x1ac] sm:$0xf0] }
  0x19   :  { %v3706_v30 = vld [vmem:[#allocation2 + $0x1a0] sm:$0xf]  ;;  %v3579_v31 = vor.u32 %v4670_v29, %v3578_v28  ;;  %v4666_v35 = vld [vmem:[#allocation2 + $0x8c] sm:$0xf0] }
  0x1a   :  { %1206 = vmatpush.bf16.msrb.mxu0 %v3595_v25  ;;  %v3707_v33 = vor.u32 %v4702_v32, %v3706_v30  ;;  %v3562_v34 = vld [vmem:[#allocation2 + $0x80] sm:$0xf]  ;;  %v4698_v38 = vld [vmem:[#allocation2 + $0x18c] sm:$0xf0] }
  0x1b   :  { %3462 = vmatmul.msk.f32.gmra.mxu0 %vm113_vm1, %v88_v10  ;;  %3479 = vmatmul.msk.f32.vlgmr.msrb.gmra.mxu2 %vm113_vm1, %v87_v4  ;;  %v3690_v36 = vld [vmem:[#allocation2 + $0x180] sm:$0xf]  ;;  %v3563_v37 = vor.u32 %v4666_v35, %v3562_v34  ;;  %v4662_v41 = vld [vmem:[#allocation2 + $0x6c] sm:$0xf0] }
  0x1c   :  { %3471 = vmatmul.msk.f32.gmra.mxu1 %vm113_vm1, %v88_v10  ;;  %3488 = vmatmul.msk.f32.vlgmr.msrb.gmra.mxu3 %vm113_vm1, %v87_v4  ;;  %v3691_v39 = vor.u32 %v4698_v38, %v3690_v36  ;;  %v3546_v40 = vld [vmem:[#allocation2 + $0x60] sm:$0xf]  ;;  %v4694_v44 = vld [vmem:[#allocation2 + $0x16c] sm:$0xf0]  ;;  %v5200_v4 = vperm.slane %v5197_v2, 1 }
  0x1d   :  { %1235 = vmatpush.bf16.msrb.mxu1 %v3723_v27  ;;  %v3674_v42 = vld [vmem:[#allocation2 + $0x160] sm:$0xf]  ;;  %v3547_v43 = vor.u32 %v4662_v41, %v3546_v40  ;;  %v4658_v47 = vld [vmem:[#allocation2 + $0x4c] sm:$0xf0] }
  0x1e   :  { %1207 = vmatpush.bf16.msrb.mxu0 %v3579_v31  ;;  %v3675_v45 = vor.u32 %v4694_v44, %v3674_v42  ;;  %v3530_v46 = vld [vmem:[#allocation2 + $0x40] sm:$0xf]  ;;  %v4690_v50 = vld [vmem:[#allocation2 + $0x14c] sm:$0xf0] }
  0x1f   :  { %v3531_v48 = vor.u32 %v4658_v47, %v3530_v46  ;;  %v3658_v49 = vld [vmem:[#allocation2 + $0x140] sm:$0xf]  ;;  %v4654_v53 = vld [vmem:[#allocation2 + $0x2c] sm:$0xf0] }
  0x20   :  { %v3659_v51 = vor.u32 %v4690_v50, %v3658_v49  ;;  %v3514_v52 = vld [vmem:[#allocation2 + $0x20] sm:$0xf]  ;;  %v4686_v56 = vld [vmem:[#allocation2 + $0x12c] sm:$0xf0] }
  0x21   :  { %1236 = vmatpush.bf16.msrb.mxu1 %v3707_v33  ;;  %v3642_v54 = vld [vmem:[#allocation2 + $0x120] sm:$0xf]  ;;  %v3515_v55 = vor.u32 %v4654_v53, %v3514_v52  ;;  %v4650_v59 = vld [vmem:[#allocation2 + $0xc] sm:$0xf0] }
  0x22   :  { %1208 = vmatpush.bf16.msrb.mxu0 %v3563_v37  ;;  %v3643_v57 = vor.u32 %v4686_v56, %v3642_v54  ;;  %v3498_v58 = vld [vmem:[#allocation2] sm:$0xf]  ;;  %v4682_v62 = vld [vmem:[#allocation2 + $0x10c] sm:$0xf0] }
  0x23   :  { %3463 = vmatmul.msk.f32.gmra.mxu0 %vm113_vm1, %v89_v11  ;;  %3480 = vmatmul.msk.f32.gmra.mxu2 %vm113_vm1, %v88_v10  ;;  %v3626_v60 = vld [vmem:[#allocation2 + $0x100] sm:$0xf]  ;;  %v3499_v61 = vor.u32 %v4650_v59, %v3498_v58  ;;  %v4742_v22 = vld [vmem:[#allocation2 + $0x2ec] sm:$0xf0] }
  0x24   :  { %3472 = vmatmul.msk.f32.gmra.mxu1 %vm113_vm1, %v89_v11  ;;  %3489 = vmatmul.msk.f32.gmra.mxu3 %vm113_vm1, %v88_v10  ;;  %v3627_v63 = vor.u32 %v4682_v62, %v3626_v60  ;;  %v3994_v23 = vld [vmem:[#allocation2 + $0x3e0] sm:$0xf]  ;;  %v4774_v28 = vld [vmem:[#allocation2 + $0x3ec] sm:$0xf0] }
  0x25   :  { %1237 = vmatpush.bf16.msrb.mxu1 %v3691_v39  ;;  %v3995_v30 = vor.u32 %v4774_v28, %v3994_v23  ;;  %v3850_v37 = vld [vmem:[#allocation2 + $0x2c0] sm:$0xf]  ;;  %v4738_v38 = vld [vmem:[#allocation2 + $0x2cc] sm:$0xf0]  ;;  %v3596_v23 = vld [vmem:[#allocation2 + $0xd0] sm:$0xf0] }
  0x26   :  { %1209 = vmatpush.bf16.msrb.mxu0 %v3547_v43  ;;  %v3851_v40 = vor.u32 %v4738_v38, %v3850_v37  ;;  %v3978_v41 = vld [vmem:[#allocation2 + $0x3c0] sm:$0xf]  ;;  %v4770_v42 = vld [vmem:[#allocation2 + $0x3cc] sm:$0xf0]  ;;  %v3724_v28 = vld [vmem:[#allocation2 + $0x1d0] sm:$0xf0] }
  0x27   :  { %1292 = vmatpush.bf16.msra.mxu3 %v3995_v30  ;;  %v3834_v52 = vld [vmem:[#allocation2 + $0x2a0] sm:$0xf]  ;;  %v4734_v53 = vld [vmem:[#allocation2 + $0x2ac] sm:$0xf0] }
  0x28   :  { %v3962_v54 = vld [vmem:[#allocation2 + $0x3a0] sm:$0xf]  ;;  %v3835_v58 = vor.u32 %v4734_v53, %v3834_v52  ;;  %v4766_v59 = vld [vmem:[#allocation2 + $0x3ac] sm:$0xf0]  ;;  %v3708_v52 = vld [vmem:[#allocation2 + $0x1b0] sm:$0xf0] }
  0x29   :  { %1238 = vmatpush.bf16.msrb.mxu1 %v3675_v45  ;;  %v3979_v45 = vor.u32 %v4770_v42, %v3978_v41  ;;  %v3963_v62 = vor.u32 %v4766_v59, %v3962_v54  ;;  %v3930_v37 = vld [vmem:[#allocation2 + $0x360] sm:$0xf]  ;;  %v4758_v42 = vld [vmem:[#allocation2 + $0x36c] sm:$0xf0] }
  0x2a   :  { %1210 = vmatpush.bf16.msrb.mxu0 %v3531_v48 }
  0x2b   :  { %3464 = vmatmul.msk.f32.gmra.mxu0 %vm113_vm1, %v90_v12  ;;  %3481 = vmatmul.msk.f32.gmra.mxu2 %vm113_vm1, %v89_v11 }
  0x2c   :  { %3473 = vmatmul.msk.f32.gmra.mxu1 %vm113_vm1, %v90_v12  ;;  %3490 = vmatmul.msk.f32.gmra.mxu3 %vm113_vm1, %v89_v11 }
  0x2d   :  { %1239 = vmatpush.bf16.msrb.mxu1 %v3659_v51  ;;  %1293 = vmatpush.bf16.msra.mxu3 %v3979_v45 }
  0x2e   :  { %1211 = vmatpush.bf16.msrb.mxu0 %v3515_v55 }
  0x31   :  { %1240 = vmatpush.bf16.msrb.mxu1 %v3643_v57  ;;  %1294 = vmatpush.bf16.msra.mxu3 %v3963_v62  ;;  %v4754_v62 = vld [vmem:[#allocation2 + $0x34c] sm:$0xf0] }
  0x32   :  { %1212 = vmatpush.bf16.msrb.mxu0 %v3499_v61 }
  0x33   :  { %3465 = vmatmul.msk.f32.gmra.mxu0 %vm113_vm1, %v91_v13  ;;  %3482 = vmatmul.msk.f32.gmra.mxu2 %vm113_vm1, %v90_v12 }
  0x34   :  { %3474 = vmatmul.msk.f32.gmra.mxu1 %vm113_vm1, %v91_v13  ;;  %3491 = vmatmul.msk.f32.gmra.mxu3 %vm113_vm1, %v90_v12 }
  0x35   :  { %1241 = vmatpush.bf16.msrb.mxu1 %v3627_v63  ;;  %v4676_v63 = vld [vmem:[#allocation2 + $0xe4] sm:$0xf] }
  0x3b   :  { %3466 = vmatmul.msk.f32.gmra.mxu0 %vm113_vm1, %v92_v20  ;;  %3483 = vmatmul.msk.f32.gmra.mxu2 %vm113_vm1, %v91_v13 }
  0x3c   :  { %3475 = vmatmul.msk.f32.gmra.mxu1 %vm113_vm1, %v92_v20  ;;  %3492 = vmatmul.msk.f32.gmra.mxu3 %vm113_vm1, %v91_v13 }
  0x43   :  { %3467 = vmatmul.msk.f32.gmra.mxu0 %vm113_vm1, %v93_v21  ;;  %3484 = vmatmul.msk.f32.gmra.mxu2 %vm113_vm1, %v92_v20 }
  0x44   :  { %3476 = vmatmul.msk.f32.gmra.mxu1 %vm113_vm1, %v93_v21  ;;  %3493 = vmatmul.msk.f32.gmra.mxu3 %vm113_vm1, %v92_v20 }
  0x4b   :  { %3485 = vmatmul.msk.f32.gmra.mxu2 %vm113_vm1, %v93_v21 }
  0x4c   :  { %3494 = vmatmul.msk.f32.gmra.mxu3 %vm113_vm1, %v93_v21  ;;  %v3866_v21 = vld [vmem:[#allocation2 + $0x2e0] sm:$0xf] }
  0x4d   :  { %v3867_v27 = vor.u32 %v4742_v22, %v3866_v21  ;;  %v4672_v22 = vld [vmem:[#allocation2 + $0xc4] sm:$0xf] }
  0x4f   :  { %1263 = vmatpush.bf16.msra.mxu2 %v3867_v27  ;;  %v3599_v27 = vor.u32 %v4672_v22, %v3596_v23  ;;  %v4718_v23 = vld [vmem:[#allocation2 + $0x22c] sm:$0xf0] }
  0x53   :  { %3486 = vmatmul.msk.f32.gmra.mxu2 %vm113_vm1, %v94_v5 }
  0x54   :  { %3495 = vmatmul.msk.f32.gmra.mxu3 %vm113_vm1, %v94_v5  ;;  %1264 = vmatpush.bf16.msra.mxu2 %v3851_v40 }
  0x58   :  { %1265 = vmatpush.bf16.msra.mxu2 %v3835_v58 }
  0x90   :  { %v168_v0 = vpop.f32.mrf.mxu0 }
  0x91   :  { %v209_v1 = vpop.f32.mrf.mxu1  ;;  %v169_v14 = vadd.f32 %v168_v0, %v5203_v7  ;;  %v3612_v0 = vld [vmem:[#allocation2 + $0xf0] sm:$0xf0] }
  0x92   :  { %v210_v19 = vadd.f32 %v209_v1, %v5200_v4  ;;  %v3615_v1 = vor.u32 %v4676_v63, %v3612_v0 }
  0x93   :  { %v5225_v31 = vmax.f32 %v169_v14, 0.0  ;;  %v3946_v14 = vld [vmem:[#allocation2 + $0x380] sm:$0xf] }
  0x94   :  { %v5231_v34 = vmax.f32 %v210_v19, 0.0  ;;  %1321 = vmatpush.bf16.msra.mxu0 %v3615_v1  ;;  %v4762_v19 = vld [vmem:[#allocation2 + $0x38c] sm:$0xf0] }
  0x95   :  { %v3947_v21 = vor.u32 %v4762_v19, %v3946_v14  ;;  %v3692_v14 = vld [vmem:[#allocation2 + $0x190] sm:$0xf0] }
  0x96   :  { %v189_v3 = vpop.f32.mrf.mxu2 }
  0x97   :  { %v230_v5 = vpop.f32.mrf.mxu3  ;;  %v190_v12 = vadd.f32 %v189_v3, %v5203_v7  ;;  %v4708_v3 = vld [vmem:[#allocation2 + $0x1e4] sm:$0xf]  ;;  %1295 = vmatpush.bf16.msra.mxu3 %v3947_v21 }
  0x98   :  { %v171_v6 = vpop.f32.mrf.mxu0  ;;  %v231_v9 = vadd.f32 %v230_v5, %v5200_v4  ;;  %v3740_v5 = vld [vmem:[#allocation2 + $0x1f0] sm:$0xf0]  ;;  %1322 = vmatpush.bf16.msra.mxu0 %v3599_v27 }
  0x99   :  { %v212_v8 = vpop.f32.mrf.mxu1  ;;  %v172_v10 = vadd.f32 %v171_v6, %v5203_v7  ;;  %v5221_v24 = vmax.f32 %v190_v12, 0.0  ;;  %v3743_v6 = vor.u32 %v4708_v3, %v3740_v5  ;;  %v4664_v5 = vld [vmem:[#allocation2 + $0x84] sm:$0xf] }
  0x9a   :  { %v213_v11 = vadd.f32 %v212_v8, %v5200_v4  ;;  %v5212_v15 = vmax.f32 %v231_v9, 0.0  ;;  %v3818_v8 = vld [vmem:[#allocation2 + $0x280] sm:$0xf]  ;;  %v4730_v9 = vld [vmem:[#allocation2 + $0x28c] sm:$0xf0] }
  0x9b   :  { %v5214_v16 = vmax.f32 %v172_v10, 0.0  ;;  %v3819_v12 = vor.u32 %v4730_v9, %v3818_v8  ;;  %1350 = vmatpush.bf16.msra.mxu1 %v3743_v6  ;;  %v3564_v6 = vld [vmem:[#allocation2 + $0x90] sm:$0xf0]  ;;  %v4696_v8 = vld [vmem:[#allocation2 + $0x184] sm:$0xf] }
  0x9c   :  { %v5216_v17 = vmax.f32 %v213_v11, 0.0  ;;  %v3695_v22 = vor.u32 %v4696_v8, %v3692_v14  ;;  %v4652_v14 = vld [vmem:[#allocation2 + $0x24] sm:$0xf] }
  0x9d   :  { %v347_v32 = vadd.f32 %v5221_v24, %v5214_v16  ;;  %1266 = vmatpush.bf16.msra.mxu2 %v3819_v12 }
  0x9e   :  { %v5209_v13 = vpop.f32.mrf.mxu2  ;;  %v348_v35 = vadd.f32 %v5212_v15, %v5216_v17 }
  0x9f   :  { %v5218_v18 = vpop.f32.mrf.mxu3  ;;  %v379_v46 = vadd.f32 %v347_v32, %v5225_v31  ;;  %v3802_v32 = vld [vmem:[#allocation2 + $0x260] sm:$0xf] }
  0xa0   :  { %v174_v20 = vpop.f32.mrf.mxu0  ;;  %v380_v49 = vadd.f32 %v348_v35, %v5231_v34  ;;  %v4726_v35 = vld [vmem:[#allocation2 + $0x26c] sm:$0xf0] }
  0xa1   :  { %v175_v25 = vadd.f32 %v174_v20, %v5203_v7  ;;  %v215_v26 = vpop.f32.mrf.mxu1  ;;  %v3803_v41 = vor.u32 %v4726_v35, %v3802_v32 }
  0xa2   :  { %v216_v29 = vadd.f32 %v215_v26, %v5200_v4 }
  0xa3   :  { %v5229_v33 = vmax.f32 %v175_v25, 0.0  ;;  %v4704_v25 = vld [vmem:[#allocation2 + $0x1c4] sm:$0xf]  ;;  %1267 = vmatpush.bf16.msra.mxu2 %v3803_v41 }
  0xa4   :  { %v5235_v36 = vmax.f32 %v216_v29, 0.0  ;;  %v3727_v30 = vor.u32 %v4704_v25, %v3724_v28  ;;  %v3898_v25 = vld [vmem:[#allocation2 + $0x320] sm:$0xf]  ;;  %v4692_v41 = vld [vmem:[#allocation2 + $0x164] sm:$0xf] }
  0xa5   :  { %v351_v39 = vadd.f32 %v5229_v33, %v5225_v31 }
  0xa6   :  { %v352_v43 = vadd.f32 %v5235_v36, %v5231_v34  ;;  %v5241_v44 = vpop.f32.mrf.mxu2  ;;  %1351 = vmatpush.bf16.msra.mxu1 %v3727_v30  ;;  %v4750_v30 = vld [vmem:[#allocation2 + $0x32c] sm:$0xf0] }
  0xa7   :  { %v383_v47 = vadd.f32 %v351_v39, %v5214_v16  ;;  %v5245_v48 = vpop.f32.mrf.mxu3  ;;  %v3899_v35 = vor.u32 %v4750_v30, %v3898_v25  ;;  %v3500_v30 = vld [vmem:[#allocation2 + $0x10] sm:$0xf0] }
  0xa8   :  { %v384_v50 = vadd.f32 %v352_v43, %v5216_v17  ;;  %v177_v51 = vpop.f32.mrf.mxu0 }
  0xa9   :  { %v178_v55 = vadd.f32 %v177_v51, %v5203_v7  ;;  %v218_v56 = vpop.f32.mrf.mxu1  ;;  %v5250_v57 = vpack.c.bf16 %v383_v47, %v379_v46  ;;  %v3931_v46 = vor.u32 %v4758_v42, %v3930_v37  ;;  %v4668_v47 = vld [vmem:[#allocation2 + $0xa4] sm:$0xf]  ;;  %v3676_v42 = vld [vmem:[#allocation2 + $0x170] sm:$0xf0] }
  0xaa   :  { %v219_v60 = vadd.f32 %v218_v56, %v5200_v4  ;;  %v5253_v61 = vpack.c.bf16 %v384_v50, %v380_v49  ;;  %v3580_v49 = vld [vmem:[#allocation2 + $0xb0] sm:$0xf0]  ;;  %v4722_v56 = vld [vmem:[#allocation2 + $0x24c] sm:$0xf0]  ;;  %v4660_v37 = vld [vmem:[#allocation2 + $0x64] sm:$0xf] }
  0xab   :  { %1213 = vmatmul.bf16.vlgmr.msrb.gmra.mxu0 %v5250_v57  ;;  %v5257_v10 = vmax.f32 %v178_v55, 0.0  ;;  %v3583_v51 = vor.u32 %v4668_v47, %v3580_v49  ;;  %1296 = vmatpush.bf16.msra.mxu3 %v3931_v46  ;;  %v3786_v55 = vld [vmem:[#allocation2 + $0x240] sm:$0xf]  ;;  %v4714_v47 = vld [vmem:[#allocation2 + $0x20c] sm:$0xf0] }
  0xac   :  { %1242 = vmatmul.bf16.vlgmr.msrb.gmra.mxu1 %v5253_v61  ;;  %v5259_v11 = vmax.f32 %v219_v60, 0.0  ;;  %v3787_v59 = vor.u32 %v4722_v56, %v3786_v55  ;;  %v3914_v60 = vld [vmem:[#allocation2 + $0x340] sm:$0xf]  ;;  %v4656_v55 = vld [vmem:[#allocation2 + $0x44] sm:$0xf] }
  0xad   :  { %v355_v38 = vadd.f32 %v5257_v10, %v5214_v16  ;;  %v4700_v16 = vld [vmem:[#allocation2 + $0x1a4] sm:$0xf]  ;;  %1323 = vmatpush.bf16.msra.mxu0 %v3583_v51  ;;  %v3915_v3 = vor.u32 %v4754_v62, %v3914_v60  ;;  %v3754_v46 = vld [vmem:[#allocation2 + $0x200] sm:$0xf]  ;;  %v3532_v56 = vld [vmem:[#allocation2 + $0x50] sm:$0xf0] }
  0xae   :  { %v5261_v20 = vpop.f32.mrf.mxu2  ;;  %v356_v43 = vadd.f32 %v5259_v11, %v5216_v17  ;;  %v3711_v54 = vor.u32 %v4700_v16, %v3708_v52  ;;  %1268 = vmatpush.bf16.msra.mxu2 %v3787_v59  ;;  %v3755_v49 = vor.u32 %v4714_v47, %v3754_v46  ;;  %v3882_v51 = vld [vmem:[#allocation2 + $0x300] sm:$0xf]  ;;  %v4746_v16 = vld [vmem:[#allocation2 + $0x30c] sm:$0xf0]  ;;  %v3535_v60 = vor.u32 %v4656_v55, %v3532_v56  ;;  %v3660_v62 = vld [vmem:[#allocation2 + $0x150] sm:$0xf0] }
  0xaf   :  { %v5263_v26 = vpop.f32.mrf.mxu3  ;;  %v387_v17 = vadd.f32 %v355_v38, %v5229_v33  ;;  %1297 = vmatpush.bf16.msra.mxu3 %v3915_v3  ;;  %v3548_v38 = vld [vmem:[#allocation2 + $0x70] sm:$0xf0]  ;;  %v5320_v46 = vperm.slane %v5197_v2, 2 }
  0xb0   :  { %v180_v29 = vpop.f32.mrf.mxu0  ;;  %v388_v63 = vadd.f32 %v356_v43, %v5235_v36  ;;  %1352 = vmatpush.bf16.msra.mxu1 %v3711_v54  ;;  %v3883_v54 = vor.u32 %v4746_v16, %v3882_v51 }
  0xb1   :  { %v181_v39 = vadd.f32 %v180_v29, %v5203_v7  ;;  %v221_v40 = vpop.f32.mrf.mxu1  ;;  %v257_v51 = vadd.f32 %v5261_v20, %v5320_v46  ;;  %v251_v56 = vadd.f32 %v5209_v13, %v5320_v46 }
  0xb2   :  { %v222_v45 = vadd.f32 %v221_v40, %v5200_v4  ;;  %v3551_v40 = vor.u32 %v4660_v37, %v3548_v38 }
  0xb3   :  { %v5271_v50 = vmax.f32 %v181_v39, 0.0  ;;  %1298 = vmatpush.bf16.msra.mxu3 %v3899_v35  ;;  %v4680_v35 = vld [vmem:[#allocation2 + $0x104] sm:$0xf] }
  0xb4   :  { %v5273_v53 = vmax.f32 %v222_v45, 0.0  ;;  %1353 = vmatpush.bf16.msra.mxu1 %v3695_v22  ;;  %v3679_v45 = vor.u32 %v4692_v41, %v3676_v42 }
  0xb5   :  { %v359_v58 = vadd.f32 %v5271_v50, %v5229_v33  ;;  %v3567_v33 = vor.u32 %v4664_v5, %v3564_v6 }
  0xb6   :  { %v360_v0 = vadd.f32 %v5273_v53, %v5235_v36  ;;  %v5281_v1 = vpop.f32.mrf.mxu2  ;;  %v3770_v36 = vld [vmem:[#allocation2 + $0x220] sm:$0xf] }
  0xb7   :  { %v391_v9 = vadd.f32 %v359_v58, %v5257_v10  ;;  %v5284_v12 = vpop.f32.mrf.mxu3  ;;  %1324 = vmatpush.bf16.msra.mxu0 %v3567_v33  ;;  %v3771_v29 = vor.u32 %v4718_v23, %v3770_v36  ;;  %1299 = vmatpush.bf16.msra.mxu3 %v3883_v54  ;;  %v4684_v36 = vld [vmem:[#allocation2 + $0x124] sm:$0xf]  ;;  %v3644_v23 = vld [vmem:[#allocation2 + $0x130] sm:$0xf0] }
  0xb8   :  { %v392_v19 = vadd.f32 %v360_v0, %v5259_v11  ;;  %v183_v21 = vpop.f32.mrf.mxu0  ;;  %1354 = vmatpush.bf16.msra.mxu1 %v3679_v45 }
  0xb9   :  { %v224_v27 = vpop.f32.mrf.mxu1  ;;  %v5287_v28 = vpack.c.bf16 %v391_v9, %v387_v17  ;;  %v184_v39 = vadd.f32 %v183_v21, %v5203_v7  ;;  %1269 = vmatpush.bf16.msra.mxu2 %v3771_v29  ;;  %v4688_v17 = vld [vmem:[#allocation2 + $0x144] sm:$0xf] }
  0xba   :  { %v5289_v32 = vpack.c.bf16 %v392_v19, %v388_v63  ;;  %v225_v43 = vadd.f32 %v224_v27, %v5200_v4  ;;  %v3663_v3 = vor.u32 %v4688_v17, %v3660_v62  ;;  %v3516_v19 = vld [vmem:[#allocation2 + $0x30] sm:$0xf0]  ;;  %v3647_v27 = vor.u32 %v4684_v36, %v3644_v23  ;;  %v4648_v29 = vld [vmem:[#allocation2 + $0x4] sm:$0xf] }
  0xbb   :  { %1218 = vmatmul.bf16.gmra.mxu0 %v5287_v28  ;;  %v335_v58 = vmax.f32 %v184_v39, 0.0  ;;  %v3519_v22 = vor.u32 %v4652_v14, %v3516_v19  ;;  %v3503_v41 = vor.u32 %v4648_v29, %v3500_v30 }
  0xbc   :  { %1247 = vmatmul.bf16.gmra.mxu1 %v5289_v32  ;;  %1325 = vmatpush.bf16.msra.mxu0 %v3551_v40  ;;  %v336_v63 = vmax.f32 %v225_v43, 0.0 }
  0xbd   :  { %1270 = vmatpush.bf16.msra.mxu2 %v3755_v49  ;;  %v363_v5 = vadd.f32 %v335_v58, %v5257_v10  ;;  %1355 = vmatpush.bf16.msra.mxu1 %v3663_v3  ;;  %v5325_v49 = vperm.slane %v5197_v2, 3  ;;  %v254_v2 = vadd.f32 %v5241_v44, %v5320_v46  ;;  %v371_v20 = vadd.f32 %v5221_v24, %v335_v58 }
  0xbe   :  { %v5295_v52 = vpop.f32.mrf.mxu2  ;;  %v364_v9 = vadd.f32 %v336_v63, %v5259_v11  ;;  %v3628_v11 = vld [vmem:[#allocation2 + $0x110] sm:$0xf0] }
  0xbf   :  { %v5297_v59 = vpop.f32.mrf.mxu3  ;;  %v395_v10 = vadd.f32 %v363_v5, %v5271_v50  ;;  %v3631_v43 = vor.u32 %v4680_v35, %v3628_v11  ;;  %v298_v54 = vadd.f32 %v5263_v26, %v5325_v49  ;;  %v292_v17 = vadd.f32 %v5218_v18, %v5325_v49 }
  0xc0   :  { %v186_v0 = vpop.f32.mrf.mxu0  ;;  %1326 = vmatpush.bf16.msra.mxu0 %v3535_v60  ;;  %v5339_v60 = vmax.f32 %v257_v51, 0.0  ;;  %v295_v26 = vadd.f32 %v5245_v48, %v5325_v49  ;;  %v5349_v18 = vmax.f32 %v251_v56, 0.0  ;;  %v263_v23 = vadd.f32 %v5295_v52, %v5320_v46 }
  0xc1   :  { %v187_v6 = vadd.f32 %v186_v0, %v5203_v7  ;;  %v227_v8 = vpop.f32.mrf.mxu1  ;;  %1356 = vmatpush.bf16.msra.mxu1 %v3647_v27  ;;  %v5345_v62 = vmax.f32 %v298_v54, 0.0  ;;  %v301_v52 = vadd.f32 %v5284_v12, %v5325_v49  ;;  %v4768_v54 = vld [vmem:[#allocation2 + $0x3c4] sm:$0xf] }
  0xc2   :  { %v228_v33 = vadd.f32 %v227_v8, %v5200_v4  ;;  %v396_v4 = vadd.f32 %v364_v9, %v5273_v53  ;;  %v321_v8 = vmax.f32 %v254_v2, 0.0  ;;  %v353_v48 = vadd.f32 %v5339_v60, %v5349_v18  ;;  %v4732_v2 = vld [vmem:[#allocation2 + $0x2a4] sm:$0xf] }
  0xc3   :  { %v339_v21 = vmax.f32 %v187_v6, 0.0  ;;  %v5352_v6 = vmax.f32 %v292_v17, 0.0  ;;  %v5383_v11 = vmax.f32 %v263_v23, 0.0  ;;  %v5393_v17 = vmax.f32 %v301_v52, 0.0  ;;  %v4760_v52 = vld [vmem:[#allocation2 + $0x384] sm:$0xf] }
  0xc4   :  { %v340_v25 = vmax.f32 %v228_v33, 0.0  ;;  %1327 = vmatpush.bf16.msra.mxu0 %v3519_v22  ;;  %v385_v36 = vadd.f32 %v353_v48, %v321_v8 }
  0xc5   :  { %v367_v7 = vadd.f32 %v339_v21, %v5271_v50  ;;  %1357 = vmatpush.bf16.msra.mxu1 %v3631_v43  ;;  %v375_v16 = vadd.f32 %v339_v21, %v5225_v31  ;;  %v403_v3 = vadd.f32 %v371_v20, %v339_v21  ;;  %v354_v33 = vadd.f32 %v5345_v62, %v5352_v6  ;;  %v3852_v43 = vld [vmem:[#allocation2 + $0x2d0] sm:$0xf0] }
  0xc6   :  { %v368_v37 = vadd.f32 %v340_v25, %v5273_v53  ;;  %v5307_v38 = vpop.f32.mrf.mxu2  ;;  %v376_v55 = vadd.f32 %v340_v25, %v5231_v34  ;;  %v372_v34 = vadd.f32 %v5212_v15, %v336_v63  ;;  %v3836_v20 = vld [vmem:[#allocation2 + $0x2b0] sm:$0xf0] }
  0xc7   :  { %v399_v39 = vadd.f32 %v367_v7, %v335_v58  ;;  %v5309_v40 = vpop.f32.mrf.mxu3  ;;  %v407_v31 = vadd.f32 %v375_v16, %v5221_v24  ;;  %v304_v7 = vadd.f32 %v5297_v59, %v5325_v49 }
  0xc8   :  { %v400_v42 = vadd.f32 %v368_v37, %v336_v63  ;;  %1328 = vmatpush.bf16.msra.mxu0 %v3503_v41  ;;  %v408_v13 = vadd.f32 %v376_v55, %v5212_v15  ;;  %v404_v58 = vadd.f32 %v372_v34, %v340_v25  ;;  %v322_v15 = vmax.f32 %v295_v26, 0.0  ;;  %v3868_v37 = vld [vmem:[#allocation2 + $0x2f0] sm:$0xf0]  ;;  %v4764_v26 = vld [vmem:[#allocation2 + $0x3a4] sm:$0xf] }
  0xc9   :  { %v5311_v45 = vpack.c.bf16 %v399_v39, %v395_v10  ;;  %v5359_v63 = vpack.c.bf16 %v407_v31, %v403_v3  ;;  %v260_v10 = vadd.f32 %v5281_v1, %v5320_v46  ;;  %v4772_v39 = vld [vmem:[#allocation2 + $0x3e4] sm:$0xf]  ;;  %v5391_v59 = vmax.f32 %v304_v7, 0.0  ;;  %v3980_v55 = vld [vmem:[#allocation2 + $0x3d0] sm:$0xf0] }
  0xca   :  { %v5313_v50 = vpack.c.bf16 %v400_v42, %v396_v4  ;;  %v5365_v19 = vpack.c.bf16 %v408_v13, %v404_v58  ;;  %v386_v27 = vadd.f32 %v354_v33, %v322_v15  ;;  %v4740_v4 = vld [vmem:[#allocation2 + $0x2e4] sm:$0xf]  ;;  %v3996_v42 = vld [vmem:[#allocation2 + $0x3f0] sm:$0xf0]  ;;  %v3983_v12 = vor.u32 %v4768_v54, %v3980_v55  ;;  %v3618_v33 = vld [vmem:[#allocation2 + $0xe8] sm:$0xf] }
  0xcb   :  { %1223 = vmatmul.bf16.gmra.mxu0 %v5311_v45  ;;  %v3871_v41 = vor.u32 %v4740_v4, %v3868_v37  ;;  %v4736_v1 = vld [vmem:[#allocation2 + $0x2c4] sm:$0xf]  ;;  %v5389_v51 = vmax.f32 %v260_v10, 0.0  ;;  %v3999_v16 = vor.u32 %v4772_v39, %v3996_v42  ;;  %v361_v31 = vadd.f32 %v5383_v11, %v5339_v60  ;;  %v3964_v34 = vld [vmem:[#allocation2 + $0x3b0] sm:$0xf0] }
  0xcc   :  { %1252 = vmatmul.bf16.gmra.mxu1 %v5313_v50  ;;  %v3855_v56 = vor.u32 %v4736_v1, %v3852_v43  ;;  %v3839_v3 = vor.u32 %v4732_v2, %v3836_v20  ;;  %v3948_v4 = vld [vmem:[#allocation2 + $0x390] sm:$0xf0]  ;;  %v3602_v37 = vld [vmem:[#allocation2 + $0xc8] sm:$0xf]  ;;  %v4724_v54 = vld [vmem:[#allocation2 + $0x264] sm:$0xf] }
  0xcd   :  { %1379 = vmatpush.bf16.msrb.mxu2 %v3871_v41  ;;  %1408 = vmatpush.bf16.msrb.mxu3 %v3999_v16  ;;  %v357_v13 = vadd.f32 %v5389_v51, %v321_v8  ;;  %v393_v58 = vadd.f32 %v361_v31, %v5389_v51  ;;  %v3730_v39 = vld [vmem:[#allocation2 + $0x1c8] sm:$0xf]  ;;  %v3804_v55 = vld [vmem:[#allocation2 + $0x270] sm:$0xf0]  ;;  %v4671_v31 = vld [vmem:[#allocation2 + $0xb4] sm:$0xf0] }
  0xce   :  { %v5317_v53 = vpop.f32.mrf.mxu2  ;;  %v3932_v2 = vld [vmem:[#allocation2 + $0x370] sm:$0xf0]  ;;  %v3586_v20 = vld [vmem:[#allocation2 + $0xa8] sm:$0xf] }
  0xcf   :  { %v5322_v47 = vpop.f32.mrf.mxu3 }
  0xd0   :  { %v310_v23 = vadd.f32 %v5322_v47, %v5325_v49  ;;  %v4707_v47 = vld [vmem:[#allocation2 + $0x1d4] sm:$0xf0] }
  0xd1   :  { %1380 = vmatpush.bf16.msrb.mxu2 %v3855_v56  ;;  %1409 = vmatpush.bf16.msrb.mxu3 %v3983_v12  ;;  %v3731_v42 = vor.u32 %v4707_v47, %v3730_v39  ;;  %v4756_v56 = vld [vmem:[#allocation2 + $0x364] sm:$0xf]  ;;  %v3807_v12 = vor.u32 %v4724_v54, %v3804_v55  ;;  %v3554_v39 = vld [vmem:[#allocation2 + $0x68] sm:$0xf]  ;;  %v4663_v47 = vld [vmem:[#allocation2 + $0x74] sm:$0xf0] }
  0xd2   :  { %v5425_v16 = vmax.f32 %v310_v23, 0.0  ;;  %v4716_v23 = vld [vmem:[#allocation2 + $0x224] sm:$0xf]  ;;  %v3756_v55 = vld [vmem:[#allocation2 + $0x210] sm:$0xf0] }
  0xd3   :  { %v4712_v54 = vld [vmem:[#allocation2 + $0x204] sm:$0xf] }
  0xd5   :  { %1381 = vmatpush.bf16.msrb.mxu2 %v3839_v3  ;;  %v4720_v3 = vld [vmem:[#allocation2 + $0x244] sm:$0xf] }
  0xd6   :  { %v271_v0 = vpop.f32.mrf.mxu2 }
  0xd7   :  { %v272_v44 = vadd.f32 %v271_v0, %v5320_v46  ;;  %v312_v5 = vpop.f32.mrf.mxu3  ;;  %v362_v0 = vadd.f32 %v5391_v59, %v5345_v62 }
  0xd8   :  { %v313_v24 = vadd.f32 %v312_v5, %v5325_v49  ;;  %v3967_v5 = vor.u32 %v4764_v26, %v3964_v34  ;;  %v3935_v26 = vor.u32 %v4756_v56, %v3932_v2  ;;  %v3587_v34 = vor.u32 %v4671_v31, %v3586_v20  ;;  %v4744_v20 = vld [vmem:[#allocation2 + $0x304] sm:$0xf]  ;;  %v3884_v31 = vld [vmem:[#allocation2 + $0x310] sm:$0xf0] }
  0xd9   :  { %v5357_v9 = vmax.f32 %v272_v44, 0.0  ;;  %v358_v44 = vadd.f32 %v5393_v17, %v322_v15  ;;  %v394_v48 = vadd.f32 %v362_v0, %v5393_v17  ;;  %v4703_v0 = vld [vmem:[#allocation2 + $0x1b4] sm:$0xf0]  ;;  %v3759_v2 = vor.u32 %v4712_v54, %v3756_v55  ;;  %v3842_v54 = vld [vmem:[#allocation2 + $0x2a8] sm:$0xf] }
  0xda   :  { %v5363_v14 = vmax.f32 %v313_v24, 0.0  ;;  %v389_v24 = vadd.f32 %v357_v13, %v5339_v60  ;;  %1410 = vmatpush.bf16.msrb.mxu3 %v3967_v5  ;;  %v3714_v13 = vld [vmem:[#allocation2 + $0x1a8] sm:$0xf]  ;;  %v3788_v5 = vld [vmem:[#allocation2 + $0x250] sm:$0xf0] }
  0xdb   :  { %v349_v21 = vadd.f32 %v5357_v9, %v321_v8  ;;  %1228 = vmatmul.bf16.gmra.mxu0 %v5359_v63  ;;  %v266_v8 = vadd.f32 %v5307_v38, %v5320_v46  ;;  %v390_v38 = vadd.f32 %v358_v44, %v5345_v62  ;;  %v3715_v44 = vor.u32 %v4703_v0, %v3714_v13  ;;  %v4659_v0 = vld [vmem:[#allocation2 + $0x54] sm:$0xf0] }
  0xdc   :  { %v350_v22 = vadd.f32 %v5363_v14, %v322_v15  ;;  %1257 = vmatmul.bf16.gmra.mxu1 %v5365_v19  ;;  %v307_v15 = vadd.f32 %v5309_v40, %v5325_v49  ;;  %v5415_v40 = vpack.c.bf16 %v393_v58, %v389_v24  ;;  %v4752_v58 = vld [vmem:[#allocation2 + $0x344] sm:$0xf]  ;;  %v3916_v24 = vld [vmem:[#allocation2 + $0x350] sm:$0xf0]  ;;  %v3887_v13 = vor.u32 %v4744_v20, %v3884_v31  ;;  %v4735_v55 = vld [vmem:[#allocation2 + $0x2b4] sm:$0xf0] }
  0xdd   :  { %v381_v25 = vadd.f32 %v349_v21, %v5349_v18  ;;  %v4679_v21 = vld [vmem:[#allocation2 + $0xf4] sm:$0xf0]  ;;  %v5417_v49 = vpack.c.bf16 %v394_v48, %v390_v38  ;;  %v5419_v1 = vmax.f32 %v266_v8, 0.0  ;;  %v3791_v48 = vor.u32 %v4720_v3, %v3788_v5  ;;  %v3570_v8 = vld [vmem:[#allocation2 + $0x88] sm:$0xf] }
  0xde   :  { %v382_v29 = vadd.f32 %v350_v22, %v5352_v6  ;;  %v3746_v22 = vld [vmem:[#allocation2 + $0x1e8] sm:$0xf]  ;;  %v3619_v60 = vor.u32 %v4679_v21, %v3618_v33  ;;  %v5421_v62 = vmax.f32 %v307_v15, 0.0  ;;  %v4667_v33 = vld [vmem:[#allocation2 + $0x94] sm:$0xf0]  ;;  %v3919_v15 = vor.u32 %v4752_v58, %v3916_v24 }
  0xdf   :  { %v5375_v30 = vpack.c.bf16 %v385_v36, %v381_v25  ;;  %v269_v36 = vadd.f32 %v5317_v53, %v5320_v46  ;;  %v4711_v25 = vld [vmem:[#allocation2 + $0x1f4] sm:$0xf0]  ;;  %v3951_v53 = vor.u32 %v4760_v52, %v3948_v4  ;;  %v3698_v21 = vld [vmem:[#allocation2 + $0x188] sm:$0xf]  ;;  %v3900_v38 = vld [vmem:[#allocation2 + $0x330] sm:$0xf0] }
  0xe0   :  { %v5381_v35 = vpack.c.bf16 %v386_v27, %v382_v29  ;;  %v4728_v27 = vld [vmem:[#allocation2 + $0x284] sm:$0xf]  ;;  %v3820_v29 = vld [vmem:[#allocation2 + $0x290] sm:$0xf0]  ;;  %v3747_v10 = vor.u32 %v4711_v25, %v3746_v22  ;;  %1437 = vmatpush.bf16.msrb.mxu0 %v3619_v60  ;;  %v4675_v46 = vld [vmem:[#allocation2 + $0xd4] sm:$0xf0]  ;;  %v370_v25 = vadd.f32 %v5425_v16, %v5391_v59  ;;  %v366_v52 = vadd.f32 %v5421_v62, %v5393_v17 }
  0xe1   :  { %1271 = vmatmul.bf16.vlgmr.msra.gmra.mxu2 %v5375_v30  ;;  %v3823_v7 = vor.u32 %v4728_v27, %v3820_v29  ;;  %v3603_v41 = vor.u32 %v4675_v46, %v3602_v37  ;;  %v5423_v43 = vmax.f32 %v269_v36, 0.0  ;;  %1411 = vmatpush.bf16.msrb.mxu3 %v3951_v53  ;;  %v4699_v36 = vld [vmem:[#allocation2 + $0x194] sm:$0xf0]  ;;  %v3772_v60 = vld [vmem:[#allocation2 + $0x230] sm:$0xf0]  ;;  %v3571_v27 = vor.u32 %v4667_v33, %v3570_v8 }
  0xe2   :  { %1300 = vmatmul.bf16.vlgmr.msra.gmra.mxu3 %v5381_v35  ;;  %1466 = vmatpush.bf16.msrb.mxu1 %v3747_v10  ;;  %v4748_v29 = vld [vmem:[#allocation2 + $0x324] sm:$0xf]  ;;  %v365_v10 = vadd.f32 %v5419_v1, %v5389_v51  ;;  %v3775_v4 = vor.u32 %v4716_v23, %v3772_v60  ;;  %v402_v46 = vadd.f32 %v370_v25, %v5421_v62  ;;  %v3682_v51 = vld [vmem:[#allocation2 + $0x168] sm:$0xf]  ;;  %v4655_v24 = vld [vmem:[#allocation2 + $0x34] sm:$0xf0] }
  0xe3   :  { %1382 = vmatpush.bf16.msrb.mxu2 %v3823_v7  ;;  %v369_v22 = vadd.f32 %v5423_v43, %v5383_v11  ;;  %v3699_v7 = vor.u32 %v4699_v36, %v3698_v21  ;;  %v3903_v53 = vor.u32 %v4748_v29, %v3900_v38  ;;  %v3555_v17 = vor.u32 %v4663_v47, %v3554_v39  ;;  %v3666_v3 = vld [vmem:[#allocation2 + $0x148] sm:$0xf]  ;;  %v4687_v8 = vld [vmem:[#allocation2 + $0x134] sm:$0xf0]  ;;  %v4677_v31 = vld [vmem:[#allocation2 + $0xec] sm:$0xf] }
  0xe4   :  { %1438 = vmatpush.bf16.msrb.mxu0 %v3603_v41  ;;  %v397_v41 = vadd.f32 %v365_v10, %v5383_v11  ;;  %v398_v56 = vadd.f32 %v366_v52, %v5391_v59  ;;  %v4691_v11 = vld [vmem:[#allocation2 + $0x154] sm:$0xf0]  ;;  %v3522_v58 = vld [vmem:[#allocation2 + $0x28] sm:$0xf]  ;;  %v377_v38 = vadd.f32 %v5423_v43, %v5349_v18 }
  0xe5   :  { %1412 = vmatpush.bf16.msrb.mxu3 %v3935_v26  ;;  %v401_v37 = vadd.f32 %v369_v22, %v5419_v1  ;;  %v3538_v26 = vld [vmem:[#allocation2 + $0x48] sm:$0xf]  ;;  %v3667_v59 = vor.u32 %v4691_v11, %v3666_v3  ;;  %v3523_v33 = vor.u32 %v4655_v24, %v3522_v58  ;;  %v373_v22 = vadd.f32 %v5357_v9, %v5419_v1  ;;  %v4651_v23 = vld [vmem:[#allocation2 + $0x14] sm:$0xf0]  ;;  %v3748_v3 = vld [vmem:[#allocation2 + $0x1f8] sm:$0xf0] }
  0xe6   :  { %1467 = vmatpush.bf16.msrb.mxu1 %v3731_v42  ;;  %v4695_v42 = vld [vmem:[#allocation2 + $0x174] sm:$0xf0]  ;;  %v3539_v5 = vor.u32 %v4659_v0, %v3538_v26  ;;  %v3506_v36 = vld [vmem:[#allocation2 + $0x8] sm:$0xf]  ;;  %v378_v1 = vadd.f32 %v5425_v16, %v5352_v6  ;;  %v3620_v26 = vld [vmem:[#allocation2 + $0xf8] sm:$0xf0] }
  0xe7   :  { %1383 = vmatpush.bf16.msrb.mxu2 %v3807_v12  ;;  %v3683_v12 = vor.u32 %v4695_v42, %v3682_v51  ;;  %v3634_v60 = vld [vmem:[#allocation2 + $0x108] sm:$0xf]  ;;  %v3507_v25 = vor.u32 %v4651_v23, %v3506_v36  ;;  %v405_v10 = vadd.f32 %v373_v22, %v5423_v43  ;;  %v4771_v47 = vld [vmem:[#allocation2 + $0x3d4] sm:$0xf0]  ;;  %v3623_v0 = vor.u32 %v4677_v31, %v3620_v26  ;;  %v3604_v22 = vld [vmem:[#allocation2 + $0xd8] sm:$0xf0] }
  0xe8   :  { %1439 = vmatpush.bf16.msrb.mxu0 %v3587_v34  ;;  %v5443_v34 = vpack.c.bf16 %v401_v37, %v397_v41  ;;  %v410_v52 = vadd.f32 %v378_v1, %v5363_v14  ;;  %v3874_v6 = vld [vmem:[#allocation2 + $0x2e8] sm:$0xf]  ;;  %v4759_v1 = vld [vmem:[#allocation2 + $0x374] sm:$0xf0] }
  0xe9   :  { %1413 = vmatpush.bf16.msrb.mxu3 %v3919_v15  ;;  %v374_v15 = vadd.f32 %v5363_v14, %v5421_v62  ;;  %v4002_v43 = vld [vmem:[#allocation2 + $0x3e8] sm:$0xf]  ;;  %v4719_v26 = vld [vmem:[#allocation2 + $0x234] sm:$0xf0] }
  0xea   :  { %1468 = vmatpush.bf16.msrb.mxu1 %v3715_v44  ;;  %v5445_v44 = vpack.c.bf16 %v402_v46, %v398_v56  ;;  %v3858_v37 = vld [vmem:[#allocation2 + $0x2c8] sm:$0xf] }
  0xeb   :  { %1329 = vmatmul.bf16.vlgmr.msra.gmra.mxu0 %v5250_v57  ;;  %1384 = vmatpush.bf16.msrb.mxu2 %v3791_v48  ;;  %v3650_v48 = vld [vmem:[#allocation2 + $0x128] sm:$0xf]  ;;  %v406_v62 = vadd.f32 %v374_v15, %v5425_v16  ;;  %v4775_v16 = vld [vmem:[#allocation2 + $0x3f4] sm:$0xf0]  ;;  %v4705_v15 = vld [vmem:[#allocation2 + $0x1cc] sm:$0xf] }
  0xec   :  { %1358 = vmatmul.bf16.vlgmr.msra.gmra.mxu1 %v5253_v61  ;;  %1440 = vmatpush.bf16.msrb.mxu0 %v3571_v27  ;;  %v3651_v21 = vor.u32 %v4687_v8, %v3650_v48  ;;  %v4683_v27 = vld [vmem:[#allocation2 + $0x114] sm:$0xf0]  ;;  %v4003_v46 = vor.u32 %v4775_v16, %v4002_v43  ;;  %v3986_v39 = vld [vmem:[#allocation2 + $0x3c8] sm:$0xf]  ;;  %v3716_v43 = vld [vmem:[#allocation2 + $0x1b8] sm:$0xf0] }
  0xed   :  { %1414 = vmatpush.bf16.msrb.mxu3 %v3903_v53  ;;  %v3635_v29 = vor.u32 %v4683_v27, %v3634_v60  ;;  %v5465_v18 = vpack.c.bf16 %v410_v52, %v406_v62  ;;  %v4739_v53 = vld [vmem:[#allocation2 + $0x2d4] sm:$0xf0]  ;;  %v3987_v41 = vor.u32 %v4771_v47, %v3986_v39  ;;  %v3970_v56 = vld [vmem:[#allocation2 + $0x3a8] sm:$0xf]  ;;  %v3732_v60 = vld [vmem:[#allocation2 + $0x1d8] sm:$0xf0] }
  0xee   :  { %1469 = vmatpush.bf16.msrb.mxu1 %v3699_v7  ;;  %v409_v7 = vadd.f32 %v377_v38, %v5357_v9  ;;  %v4743_v9 = vld [vmem:[#allocation2 + $0x2f4] sm:$0xf0]  ;;  %v3859_v51 = vor.u32 %v4739_v53, %v3858_v37  ;;  %v3826_v11 = vld [vmem:[#allocation2 + $0x288] sm:$0xf]  ;;  %v4669_v62 = vld [vmem:[#allocation2 + $0xac] sm:$0xf] }
  0xef   :  { %1385 = vmatpush.bf16.msrb.mxu2 %v3775_v4  ;;  %v3875_v14 = vor.u32 %v4743_v9, %v3874_v6  ;;  %v3954_v24 = vld [vmem:[#allocation2 + $0x388] sm:$0xf]  ;;  %v4763_v48 = vld [vmem:[#allocation2 + $0x394] sm:$0xf0]  ;;  %v4701_v9 = vld [vmem:[#allocation2 + $0x1ac] sm:$0xf] }
  0xf0   :  { %1441 = vmatpush.bf16.msrb.mxu0 %v3555_v17  ;;  %v5463_v4 = vpack.c.bf16 %v409_v7, %v405_v10  ;;  %v3955_v8 = vor.u32 %v4763_v48, %v3954_v24  ;;  %v3810_v27 = vld [vmem:[#allocation2 + $0x268] sm:$0xf]  ;;  %v3588_v7 = vld [vmem:[#allocation2 + $0xb8] sm:$0xf0]  ;;  %v3719_v16 = vor.u32 %v4701_v9, %v3716_v43  ;;  %v4723_v37 = vld [vmem:[#allocation2 + $0x254] sm:$0xf0] }
  0xf1   :  { %1276 = vmatmul.bf16.gmra.mxu2 %v5415_v40  ;;  %1415 = vmatpush.bf16.msrb.mxu3 %v3887_v13  ;;  %v4709_v13 = vld [vmem:[#allocation2 + $0x1ec] sm:$0xf]  ;;  %v3938_v38 = vld [vmem:[#allocation2 + $0x368] sm:$0xf]  ;;  %v3591_v6 = vor.u32 %v4669_v62, %v3588_v7  ;;  %v3684_v48 = vld [vmem:[#allocation2 + $0x178] sm:$0xf0] }
  0xf2   :  { %1305 = vmatmul.bf16.gmra.mxu3 %v5417_v49  ;;  %1470 = vmatpush.bf16.msrb.mxu1 %v3683_v12  ;;  %v3843_v12 = vor.u32 %v4735_v55, %v3842_v54  ;;  %v3939_v52 = vor.u32 %v4759_v1, %v3938_v38  ;;  %v3922_v53 = vld [vmem:[#allocation2 + $0x348] sm:$0xf]  ;;  %v3572_v54 = vld [vmem:[#allocation2 + $0x98] sm:$0xf0]  ;;  %v4697_v55 = vld [vmem:[#allocation2 + $0x18c] sm:$0xf] }
  0xf3   :  { %1386 = vmatpush.bf16.msrb.mxu2 %v3759_v2  ;;  %v4767_v2 = vld [vmem:[#allocation2 + $0x3b4] sm:$0xf0]  ;;  %v3778_v31 = vld [vmem:[#allocation2 + $0x228] sm:$0xf]  ;;  %v3540_v38 = vld [vmem:[#allocation2 + $0x58] sm:$0xf0] }
  0xf4   :  { %1442 = vmatpush.bf16.msrb.mxu0 %v3539_v5  ;;  %v3971_v20 = vor.u32 %v4767_v2, %v3970_v56  ;;  %v4731_v5 = vld [vmem:[#allocation2 + $0x294] sm:$0xf0]  ;;  %v3700_v2 = vld [vmem:[#allocation2 + $0x198] sm:$0xf0]  ;;  %v4685_v43 = vld [vmem:[#allocation2 + $0x12c] sm:$0xf] }
  0xf5   :  { %1524 = vmatpush.bf16.msra.mxu3 %v4003_v46  ;;  %v3827_v58 = vor.u32 %v4731_v5, %v3826_v11  ;;  %v4755_v46 = vld [vmem:[#allocation2 + $0x354] sm:$0xf0]  ;;  %v4661_v5 = vld [vmem:[#allocation2 + $0x6c] sm:$0xf]  ;;  %v3668_v7 = vld [vmem:[#allocation2 + $0x158] sm:$0xf0] }
  0xf6   :  { %1471 = vmatpush.bf16.msrb.mxu1 %v3667_v59  ;;  %v3751_v59 = vor.u32 %v4709_v13, %v3748_v3  ;;  %v3923_v47 = vor.u32 %v4755_v46, %v3922_v53  ;;  %v3906_v13 = vld [vmem:[#allocation2 + $0x328] sm:$0xf]  ;;  %v4751_v3 = vld [vmem:[#allocation2 + $0x334] sm:$0xf0]  ;;  %v3524_v9 = vld [vmem:[#allocation2 + $0x38] sm:$0xf0] }
  0xf7   :  { %1495 = vmatpush.bf16.msra.mxu2 %v3875_v14  ;;  %v3794_v14 = vld [vmem:[#allocation2 + $0x248] sm:$0xf]  ;;  %v3907_v11 = vor.u32 %v4751_v3, %v3906_v13  ;;  %v4649_v46 = vld [vmem:[#allocation2 + $0xc] sm:$0xf] }
  0xf8   :  { %1443 = vmatpush.bf16.msrb.mxu0 %v3523_v33  ;;  %v3795_v39 = vor.u32 %v4723_v37, %v3794_v14  ;;  %v4741_v3 = vld [vmem:[#allocation2 + $0x2ec] sm:$0xf] }
  0xf9   :  { %1525 = vmatpush.bf16.msra.mxu3 %v3987_v41  ;;  %v4665_v41 = vld [vmem:[#allocation2 + $0x8c] sm:$0xf] }
  0xfa   :  { %1472 = vmatpush.bf16.msrb.mxu1 %v3651_v21  ;;  %v4673_v21 = vld [vmem:[#allocation2 + $0xcc] sm:$0xf] }
  0xfb   :  { %1334 = vmatmul.bf16.gmra.mxu0 %v5287_v28  ;;  %1496 = vmatpush.bf16.msra.mxu2 %v3859_v51  ;;  %v3607_v23 = vor.u32 %v4673_v21, %v3604_v22  ;;  %v4715_v21 = vld [vmem:[#allocation2 + $0x214] sm:$0xf0] }
  0xfc   :  { %1363 = vmatmul.bf16.gmra.mxu1 %v5289_v32  ;;  %1444 = vmatpush.bf16.msrb.mxu0 %v3507_v25  ;;  %v3735_v25 = vor.u32 %v4705_v15, %v3732_v60  ;;  %v4747_v60 = vld [vmem:[#allocation2 + $0x314] sm:$0xf0] }
  0xfd   :  { %1526 = vmatpush.bf16.msra.mxu3 %v3971_v20  ;;  %v3703_v20 = vor.u32 %v4697_v55, %v3700_v2  ;;  %v3636_v55 = vld [vmem:[#allocation2 + $0x118] sm:$0xf0] }
  0xfe   :  { %1473 = vmatpush.bf16.msrb.mxu1 %v3635_v29  ;;  %v4727_v29 = vld [vmem:[#allocation2 + $0x274] sm:$0xf0] }
  0xff   :  { %1497 = vmatpush.bf16.msra.mxu2 %v3843_v12  ;;  %v3811_v10 = vor.u32 %v4727_v29, %v3810_v27  ;;  %v3575_v12 = vor.u32 %v4665_v41, %v3572_v54  ;;  %v4657_v29 = vld [vmem:[#allocation2 + $0x4c] sm:$0xf] }
 0x100   :  { %1553 = vmatpush.bf16.msra.mxu0 %v3623_v0  ;;  %v3779_v0 = vor.u32 %v4719_v26, %v3778_v31  ;;  %v3543_v62 = vor.u32 %v4657_v29, %v3540_v38  ;;  %v3988_v29 = vld [vmem:[#allocation2 + $0x3d8] sm:$0xf0] }
 0x101   :  { %1281 = vmatmul.bf16.gmra.mxu2 %v5443_v34  ;;  %1527 = vmatpush.bf16.msra.mxu3 %v3955_v8  ;;  %v3762_v8 = vld [vmem:[#allocation2 + $0x208] sm:$0xf] }
 0x102   :  { %1310 = vmatmul.bf16.gmra.mxu3 %v5445_v44  ;;  %1582 = vmatpush.bf16.msra.mxu1 %v3751_v59  ;;  %v3556_v59 = vld [vmem:[#allocation2 + $0x78] sm:$0xf0]  ;;  %v3763_v15 = vor.u32 %v4715_v21, %v3762_v8 }
 0x103   :  { %1498 = vmatpush.bf16.msra.mxu2 %v3827_v58  ;;  %v4693_v58 = vld [vmem:[#allocation2 + $0x16c] sm:$0xf]  ;;  %v3559_v24 = vor.u32 %v4661_v5, %v3556_v59 }
 0x104   :  { %1554 = vmatpush.bf16.msra.mxu0 %v3607_v23  ;;  %v3687_v22 = vor.u32 %v4693_v58, %v3684_v48  ;;  %v3890_v23 = vld [vmem:[#allocation2 + $0x308] sm:$0xf]  ;;  %v4773_v5 = vld [vmem:[#allocation2 + $0x3ec] sm:$0xf]  ;;  %v4004_v58 = vld [vmem:[#allocation2 + $0x3f8] sm:$0xf0] }
 0x105   :  { %1528 = vmatpush.bf16.msra.mxu3 %v3939_v52  ;;  %v4007_v8 = vor.u32 %v4773_v5, %v4004_v58  ;;  %v4058_v58 = vld [vmem:[#allocation4 + $0x60] sm:$0xf] }
 0x106   :  { %1583 = vmatpush.bf16.msra.mxu1 %v3735_v25  ;;  %v3891_v25 = vor.u32 %v4747_v60, %v3890_v23  ;;  %v4769_v23 = vld [vmem:[#allocation2 + $0x3cc] sm:$0xf] }
 0x107   :  { %1499 = vmatpush.bf16.msra.mxu2 %v3811_v10  ;;  %v4689_v10 = vld [vmem:[#allocation2 + $0x14c] sm:$0xf] }
 0x108   :  { %1555 = vmatpush.bf16.msra.mxu0 %v3591_v6  ;;  %v3671_v52 = vor.u32 %v4689_v10, %v3668_v7  ;;  %v4653_v6 = vld [vmem:[#allocation2 + $0x2c] sm:$0xf]  ;;  %v3991_v10 = vor.u32 %v4769_v23, %v3988_v29 }
 0x109   :  { %1529 = vmatpush.bf16.msra.mxu3 %v3923_v47  ;;  %v3527_v14 = vor.u32 %v4653_v6, %v3524_v9  ;;  %v4681_v47 = vld [vmem:[#allocation2 + $0x10c] sm:$0xf] }
 0x10a   :  { %1584 = vmatpush.bf16.msra.mxu1 %v3719_v16  ;;  %v3652_v16 = vld [vmem:[#allocation2 + $0x138] sm:$0xf0]  ;;  %v4733_v7 = vld [vmem:[#allocation2 + $0x2ac] sm:$0xf] }
 0x10b   :  { %1339 = vmatmul.bf16.gmra.mxu0 %v5311_v45  ;;  %1500 = vmatpush.bf16.msra.mxu2 %v3795_v39  ;;  %v3655_v37 = vor.u32 %v4685_v43, %v3652_v16  ;;  %v3508_v39 = vld [vmem:[#allocation2 + $0x18] sm:$0xf0]  ;;  %v4765_v6 = vld [vmem:[#allocation2 + $0x3ac] sm:$0xf] }
 0x10c   :  { %1368 = vmatmul.bf16.gmra.mxu1 %v5313_v50  ;;  %1556 = vmatpush.bf16.msra.mxu0 %v3575_v12  ;;  %v3511_v54 = vor.u32 %v4649_v46, %v3508_v39  ;;  %v3639_v12 = vor.u32 %v4681_v47, %v3636_v55  ;;  %v4066_v46 = vld [vmem:[#allocation4 + $0x70] sm:$0xf]  ;;  %v4855_v39 = vld [vmem:[#allocation4 + $0x74] sm:$0xf0]  ;;  %v4729_v55 = vld [vmem:[#allocation2 + $0x28c] sm:$0xf] }
 0x10d   :  { %1530 = vmatpush.bf16.msra.mxu3 %v3907_v11  ;;  %v3876_v11 = vld [vmem:[#allocation2 + $0x2f8] sm:$0xf0] }
 0x10e   :  { %1585 = vmatpush.bf16.msra.mxu1 %v3703_v20  ;;  %v3879_v59 = vor.u32 %v4741_v3, %v3876_v11  ;;  %v4761_v3 = vld [vmem:[#allocation2 + $0x38c] sm:$0xf]  ;;  %v3956_v11 = vld [vmem:[#allocation2 + $0x398] sm:$0xf0] }
 0x10f   :  { %1501 = vmatpush.bf16.msra.mxu2 %v3779_v0 }
 0x110   :  { %1557 = vmatpush.bf16.msra.mxu0 %v3559_v24  ;;  %v5524_v24 = vld [vmem:[%s6869_s4] sm:$0xf] }
 0x111   :  { %1286 = vmatmul.bf16.gmra.mxu2 %v5463_v4  ;;  %1531 = vmatpush.bf16.msra.mxu3 %v3891_v25  ;;  %v5527_v60 = vperm.slane %v5524_v24, 0 }
 0x112   :  { %1315 = vmatmul.bf16.gmra.mxu3 %v5465_v18  ;;  %1586 = vmatpush.bf16.msra.mxu1 %v3687_v22  ;;  %v4737_v22 = vld [vmem:[#allocation2 + $0x2cc] sm:$0xf] }
 0x113   :  { %1502 = vmatpush.bf16.msra.mxu2 %v3763_v15  ;;  %v3860_v15 = vld [vmem:[#allocation2 + $0x2d8] sm:$0xf0] }
 0x114   :  { %1558 = vmatpush.bf16.msra.mxu0 %v3543_v62  ;;  %v3863_v25 = vor.u32 %v4737_v22, %v3860_v15 }
 0x116   :  { %1587 = vmatpush.bf16.msra.mxu1 %v3671_v52  ;;  %v3844_v52 = vld [vmem:[#allocation2 + $0x2b8] sm:$0xf0] }
 0x117   :  { %v3847_v43 = vor.u32 %v4733_v7, %v3844_v52  ;;  %v3940_v7 = vld [vmem:[#allocation2 + $0x378] sm:$0xf0] }
 0x118   :  { %1559 = vmatpush.bf16.msra.mxu0 %v3527_v14  ;;  %v3972_v14 = vld [vmem:[#allocation2 + $0x3b8] sm:$0xf0] }
 0x11a   :  { %1588 = vmatpush.bf16.msra.mxu1 %v3655_v37  ;;  %v3975_v37 = vor.u32 %v4765_v6, %v3972_v14 }
 0x11b   :  { %1344 = vmatmul.bf16.gmra.mxu0 %v5359_v63 }
 0x11c   :  { %1373 = vmatmul.bf16.gmra.mxu1 %v5365_v19  ;;  %1560 = vmatpush.bf16.msra.mxu0 %v3511_v54  ;;  %v4067_v54 = vor.u32 %v4855_v39, %v4066_v46 }
 0x11e   :  { %1589 = vmatpush.bf16.msra.mxu1 %v3639_v12  ;;  %v3828_v12 = vld [vmem:[#allocation2 + $0x298] sm:$0xf0] }
 0x121   :  { %1387 = vmatmul.bf16.vlgmr.msrb.gmra.mxu2 %v5375_v30 }
 0x122   :  { %1416 = vmatmul.bf16.vlgmr.msrb.gmra.mxu3 %v5381_v35  ;;  %1611 = vmatpush.bf16.msrb.mxu2 %v3879_v59  ;;  %v3959_v59 = vor.u32 %v4761_v3, %v3956_v11 }
 0x123   :  { %1640 = vmatpush.bf16.msrb.mxu3 %v4007_v8  ;;  %v4853_v8 = vld [vmem:[#allocation4 + $0x64] sm:$0xf0] }
 0x124   :  { %v4059_v23 = vor.u32 %v4853_v8, %v4058_v58  ;;  %v4042_v8 = vld [vmem:[#allocation4 + $0x40] sm:$0xf] }
 0x126   :  { %1612 = vmatpush.bf16.msrb.mxu2 %v3863_v25  ;;  %v3812_v25 = vld [vmem:[#allocation2 + $0x278] sm:$0xf0] }
 0x127   :  { %1641 = vmatpush.bf16.msrb.mxu3 %v3991_v10 }
 0x128   :  { %v5473_v17 = vpop.f32.mrf.mxu0 }
 0x129   :  { %v5475_v42 = vpop.f32.mrf.mxu1  ;;  %v1215_v9 = vadd.f32 %v5473_v17, %v5527_v60 }
 0x12a   :  { %1613 = vmatpush.bf16.msrb.mxu2 %v3847_v43  ;;  %v4851_v43 = vld [vmem:[#allocation4 + $0x54] sm:$0xf0] }
 0x12b   :  { %1445 = vmatmul.bf16.vlgmr.msrb.gmra.mxu0 %v5250_v57  ;;  %1642 = vmatpush.bf16.msrb.mxu3 %v3975_v37  ;;  %v1244_v17 = vadd.f32 %v5475_v42, %v1215_v9  ;;  %v4725_v42 = vld [vmem:[#allocation2 + $0x26c] sm:$0xf]  ;;  %v4050_v9 = vld [vmem:[#allocation4 + $0x50] sm:$0xf] }
 0x12c   :  { %1474 = vmatmul.bf16.vlgmr.msrb.gmra.mxu1 %v5253_v61  ;;  %2213 = vmatpush.bf16.msrb.mxu0 %v4067_v54  ;;  %v3815_v10 = vor.u32 %v4725_v42, %v3812_v25  ;;  %v4051_v39 = vor.u32 %v4851_v43, %v4050_v9  ;;  %v4721_v54 = vld [vmem:[#allocation2 + $0x24c] sm:$0xf]  ;;  %v4122_v9 = vld [vmem:[#allocation4 + $0xe0] sm:$0xf]  ;;  %v4869_v43 = vld [vmem:[#allocation4 + $0xe4] sm:$0xf0] }
 0x12f   :  { %1643 = vmatpush.bf16.msrb.mxu3 %v3959_v59 }
 0x130   :  { %v5479_v33 = vpop.f32.mrf.mxu0  ;;  %2214 = vmatpush.bf16.msrb.mxu0 %v4059_v23 }
 0x131   :  { %v5481_v36 = vpop.f32.mrf.mxu1  ;;  %1392 = vmatmul.bf16.gmra.mxu2 %v5415_v40 }
 0x132   :  { %1421 = vmatmul.bf16.gmra.mxu3 %v5417_v49 }
 0x134   :  { %2215 = vmatpush.bf16.msrb.mxu0 %v4051_v39  ;;  %v4847_v39 = vld [vmem:[#allocation4 + $0x34] sm:$0xf0] }
 0x138   :  { %v5485_v51 = vpop.f32.mrf.mxu0 }
 0x139   :  { %v5487_v56 = vpop.f32.mrf.mxu1 }
 0x13b   :  { %1450 = vmatmul.bf16.gmra.mxu0 %v5287_v28 }
 0x13c   :  { %1479 = vmatmul.bf16.gmra.mxu1 %v5289_v32 }
 0x140   :  { %v5491_v27 = vpop.f32.mrf.mxu0 }
 0x141   :  { %v5493_v1 = vpop.f32.mrf.mxu1  ;;  %1397 = vmatmul.bf16.gmra.mxu2 %v5443_v34 }
 0x142   :  { %1426 = vmatmul.bf16.gmra.mxu3 %v5445_v44 }
 0x148   :  { %v5497_v53 = vpop.f32.mrf.mxu0 }
 0x149   :  { %v5499_v41 = vpop.f32.mrf.mxu1 }
 0x14b   :  { %1455 = vmatmul.bf16.gmra.mxu0 %v5311_v45 }
 0x14c   :  { %1484 = vmatmul.bf16.gmra.mxu1 %v5313_v50 }
 0x150   :  { %v5503_v2 = vpop.f32.mrf.mxu0 }
 0x151   :  { %v5505_v20 = vpop.f32.mrf.mxu1  ;;  %1402 = vmatmul.bf16.gmra.mxu2 %v5463_v4 }
 0x152   :  { %1431 = vmatmul.bf16.gmra.mxu3 %v5465_v18 }
 0x158   :  { %v5509_v31 = vpop.f32.mrf.mxu0 }
 0x159   :  { %v5511_v26 = vpop.f32.mrf.mxu1 }
 0x15b   :  { %1460 = vmatmul.bf16.gmra.mxu0 %v5359_v63 }
 0x15c   :  { %1489 = vmatmul.bf16.gmra.mxu1 %v5365_v19 }
 0x160   :  { %v5515_v13 = vpop.f32.mrf.mxu0 }
 0x161   :  { %v5517_v0 = vpop.f32.mrf.mxu1  ;;  %1503 = vmatmul.bf16.vlgmr.msra.gmra.mxu2 %v5375_v30 }
 0x162   :  { %1532 = vmatmul.bf16.vlgmr.msra.gmra.mxu3 %v5381_v35 }
 0x164   :  { %v1272_v48 = vpop.f32.mrf.mxu2 }
 0x165   :  { %v1301_v21 = vpop.f32.mrf.mxu3  ;;  %v1273_v22 = vadd.f32 %v1272_v48, %v1244_v17  ;;  %v1217_v48 = vadd.f32 %v5479_v33, %v5527_v60  ;;  %v3924_v33 = vld [vmem:[#allocation2 + $0x358] sm:$0xf0] }
 0x167   :  { %v1302_v14 = vadd.f32 %v1301_v21, %v1273_v22  ;;  %v1246_v11 = vadd.f32 %v5481_v36, %v1217_v48  ;;  %v4849_v22 = vld [vmem:[#allocation4 + $0x44] sm:$0xf0]  ;;  %v4749_v36 = vld [vmem:[#allocation2 + $0x32c] sm:$0xf] }
 0x168   :  { %v5529_v38 = vpop.f32.mrf.mxu0  ;;  %v4043_v25 = vor.u32 %v4849_v22, %v4042_v8  ;;  %v4845_v22 = vld [vmem:[#allocation4 + $0x24] sm:$0xf0] }
 0x169   :  { %v5531_v62 = vpop.f32.mrf.mxu1  ;;  %v5558_v23 = vmax.f32 %v1302_v14, 0.0 }
 0x16a   :  { %2216 = vmatpush.bf16.msrb.mxu0 %v4043_v25 }
 0x16b   :  { %1561 = vmatmul.bf16.vlgmr.msra.gmra.mxu0 %v5250_v57  ;;  %v1220_v57 = vadd.f32 %v5485_v51, %v5527_v60  ;;  %v4757_v51 = vld [vmem:[#allocation2 + $0x36c] sm:$0xf] }
 0x16c   :  { %1590 = vmatmul.bf16.vlgmr.msra.gmra.mxu1 %v5253_v61  ;;  %v5537_v16 = vpop.f32.mrf.mxu2  ;;  %v3831_v61 = vor.u32 %v4729_v55, %v3828_v12  ;;  %v3943_v6 = vor.u32 %v4757_v51, %v3940_v7  ;;  %v3796_v55 = vld [vmem:[#allocation2 + $0x258] sm:$0xf0]  ;;  %v4753_v12 = vld [vmem:[#allocation2 + $0x34c] sm:$0xf] }
 0x16d   :  { %v5539_v47 = vpop.f32.mrf.mxu3  ;;  %v1249_v29 = vadd.f32 %v5487_v56, %v1220_v57  ;;  %v1222_v56 = vadd.f32 %v5491_v27, %v5527_v60  ;;  %v3799_v17 = vor.u32 %v4721_v54, %v3796_v55  ;;  %v4130_v57 = vld [vmem:[#allocation4 + $0xf0] sm:$0xf]  ;;  %v3927_v59 = vor.u32 %v4753_v12, %v3924_v33 }
 0x16e   :  { %1614 = vmatpush.bf16.msrb.mxu2 %v3831_v61  ;;  %1644 = vmatpush.bf16.msrb.mxu3 %v3943_v6  ;;  %v4871_v61 = vld [vmem:[#allocation4 + $0xf4] sm:$0xf0]  ;;  %v1275_v51 = vadd.f32 %v5537_v16, %v1246_v11  ;;  %v3908_v6 = vld [vmem:[#allocation2 + $0x338] sm:$0xf0] }
 0x16f   :  { %v4131_v58 = vor.u32 %v4871_v61, %v4130_v57  ;;  %v1251_v7 = vadd.f32 %v5493_v1, %v1222_v56  ;;  %v3911_v14 = vor.u32 %v4749_v36, %v3908_v6  ;;  %v3764_v56 = vld [vmem:[#allocation2 + $0x218] sm:$0xf0]  ;;  %v4114_v61 = vld [vmem:[#allocation4 + $0xd0] sm:$0xf]  ;;  %v4867_v11 = vld [vmem:[#allocation4 + $0xd4] sm:$0xf0] }
 0x170   :  { %v5544_v5 = vpop.f32.mrf.mxu0  ;;  %v1304_v12 = vadd.f32 %v5539_v47, %v1275_v51  ;;  %v3892_v57 = vld [vmem:[#allocation2 + $0x318] sm:$0xf0]  ;;  %v4115_v8 = vor.u32 %v4867_v11, %v4114_v61  ;;  %v4026_v47 = vld [vmem:[#allocation4 + $0x20] sm:$0xf]  ;;  %v4865_v36 = vld [vmem:[#allocation4 + $0xc4] sm:$0xf0] }
 0x171   :  { %v5546_v15 = vpop.f32.mrf.mxu1  ;;  %1508 = vmatmul.bf16.gmra.mxu2 %v5415_v40  ;;  %2242 = vmatpush.bf16.msrb.mxu1 %v4131_v58 }
 0x172   :  { %1537 = vmatmul.bf16.gmra.mxu3 %v5417_v49  ;;  %1615 = vmatpush.bf16.msrb.mxu2 %v3815_v10  ;;  %v3780_v10 = vld [vmem:[#allocation2 + $0x238] sm:$0xf0] }
 0x173   :  { %1645 = vmatpush.bf16.msrb.mxu3 %v3927_v59 }
 0x174   :  { %v1277_v52 = vpop.f32.mrf.mxu2 }
 0x175   :  { %v1278_v37 = vadd.f32 %v1277_v52, %v1249_v29  ;;  %v1306_v46 = vpop.f32.mrf.mxu3  ;;  %v4717_v29 = vld [vmem:[#allocation2 + $0x22c] sm:$0xf] }
 0x176   :  { %1616 = vmatpush.bf16.msrb.mxu2 %v3799_v17  ;;  %v3783_v52 = vor.u32 %v4717_v29, %v3780_v10  ;;  %v1225_v17 = vadd.f32 %v5497_v53, %v5527_v60  ;;  %v4027_v53 = vor.u32 %v4845_v22, %v4026_v47  ;;  %v5582_v29 = vmax.f32 %v1304_v12, 0.0  ;;  %v4106_v10 = vld [vmem:[#allocation4 + $0xc0] sm:$0xf] }
 0x177   :  { %v1307_v3 = vadd.f32 %v1306_v46, %v1278_v37  ;;  %v4123_v37 = vor.u32 %v4869_v43, %v4122_v9  ;;  %v4034_v46 = vld [vmem:[#allocation4 + $0x30] sm:$0xf]  ;;  %1646 = vmatpush.bf16.msrb.mxu3 %v3911_v14  ;;  %v4843_v43 = vld [vmem:[#allocation4 + $0x14] sm:$0xf0] }
 0x178   :  { %v5556_v21 = vpop.f32.mrf.mxu0  ;;  %v4035_v55 = vor.u32 %v4847_v39, %v4034_v46  ;;  %v4018_v9 = vld [vmem:[#allocation4 + $0x10] sm:$0xf] }
 0x179   :  { %v5560_v42 = vmax.f32 %v1307_v3, 0.0  ;;  %v5562_v27 = vpop.f32.mrf.mxu1  ;;  %2243 = vmatpush.bf16.msrb.mxu1 %v4123_v37  ;;  %v4745_v3 = vld [vmem:[#allocation2 + $0x30c] sm:$0xf]  ;;  %v4019_v46 = vor.u32 %v4843_v43, %v4018_v9  ;;  %v4098_v39 = vld [vmem:[#allocation4 + $0xb0] sm:$0xf] }
 0x17a   :  { %1617 = vmatpush.bf16.msrb.mxu2 %v3783_v52  ;;  %2217 = vmatpush.bf16.msrb.mxu0 %v4035_v55  ;;  %v3895_v58 = vor.u32 %v4745_v3, %v3892_v57  ;;  %v4107_v52 = vor.u32 %v4865_v36, %v4106_v10  ;;  %v4861_v57 = vld [vmem:[#allocation4 + $0xa4] sm:$0xf0]  ;;  %v4859_v10 = vld [vmem:[#allocation4 + $0x94] sm:$0xf0] }
 0x17b   :  { %v5568_v48 = vadd.f32 %v5560_v42, %v5558_v23  ;;  %1566 = vmatmul.bf16.gmra.mxu0 %v5287_v28  ;;  %v4713_v28 = vld [vmem:[#allocation2 + $0x20c] sm:$0xf]  ;;  %v4857_v9 = vld [vmem:[#allocation4 + $0x84] sm:$0xf0] }
 0x17c   :  { %1595 = vmatmul.bf16.gmra.mxu1 %v5289_v32  ;;  %v1279_v16 = vpop.f32.mrf.mxu2  ;;  %v3767_v33 = vor.u32 %v4713_v28, %v3764_v56  ;;  %1647 = vmatpush.bf16.msrb.mxu3 %v3895_v58  ;;  %v4010_v28 = vld [vmem:[#allocation4] sm:$0xf]  ;;  %v4841_v56 = vld [vmem:[#allocation4 + $0x4] sm:$0xf0] }
 0x17d   :  { %v1280_v1 = vadd.f32 %v1279_v16, %v1251_v7  ;;  %v1308_v54 = vpop.f32.mrf.mxu3  ;;  %v1254_v7 = vadd.f32 %v5499_v41, %v1225_v17  ;;  %2244 = vmatpush.bf16.msrb.mxu1 %v4115_v8 }
 0x17e   :  { %1618 = vmatpush.bf16.msrb.mxu2 %v3767_v33  ;;  %2218 = vmatpush.bf16.msrb.mxu0 %v4027_v53  ;;  %v4090_v33 = vld [vmem:[#allocation4 + $0xa0] sm:$0xf]  ;;  %v4082_v53 = vld [vmem:[#allocation4 + $0x90] sm:$0xf] }
 0x17f   :  { %v1309_v32 = vadd.f32 %v1308_v54, %v1280_v1  ;;  %v4863_v1 = vld [vmem:[#allocation4 + $0xb4] sm:$0xf0]  ;;  %v1227_v54 = vadd.f32 %v5503_v2, %v5527_v60  ;;  %v4091_v11 = vor.u32 %v4861_v57, %v4090_v33  ;;  %v5634_v57 = vperm.slane %v5524_v24, 1 }
 0x180   :  { %v5575_v59 = vpop.f32.mrf.mxu0  ;;  %v4099_v41 = vor.u32 %v4863_v1, %v4098_v39  ;;  %v1232_v39 = vadd.f32 %v5515_v13, %v5527_v60 }
 0x181   :  { %v5577_v25 = vmax.f32 %v1309_v32, 0.0  ;;  %v5579_v51 = vpop.f32.mrf.mxu1  ;;  %1513 = vmatmul.bf16.gmra.mxu2 %v5443_v34  ;;  %2245 = vmatpush.bf16.msrb.mxu1 %v4107_v52  ;;  %v4011_v32 = vor.u32 %v4841_v56, %v4010_v28  ;;  %v1256_v61 = vadd.f32 %v5505_v20, %v1227_v54  ;;  %v1230_v20 = vadd.f32 %v5509_v31, %v5527_v60 }
 0x182   :  { %1542 = vmatmul.bf16.gmra.mxu3 %v5445_v44  ;;  %2219 = vmatpush.bf16.msrb.mxu0 %v4019_v46 }
 0x183   :  { %v1709_v16 = vadd.f32 %v5577_v25, %v5582_v29  ;;  %v1259_v43 = vadd.f32 %v5511_v26, %v1230_v20  ;;  %v1261_v26 = vadd.f32 %v5517_v0, %v1232_v39 }
 0x184   :  { %v1282_v6 = vpop.f32.mrf.mxu2 }
 0x185   :  { %v1283_v14 = vadd.f32 %v1282_v6, %v1254_v7  ;;  %v1311_v37 = vpop.f32.mrf.mxu3  ;;  %2246 = vmatpush.bf16.msrb.mxu1 %v4099_v41  ;;  %v4083_v7 = vor.u32 %v4859_v10, %v4082_v53 }
 0x186   :  { %2220 = vmatpush.bf16.msrb.mxu0 %v4011_v32 }
 0x187   :  { %v1312_v55 = vadd.f32 %v1311_v37, %v1283_v14 }
 0x188   :  { %v5590_v12 = vpop.f32.mrf.mxu0 }
 0x189   :  { %v5592_v3 = vmax.f32 %v1312_v55, 0.0  ;;  %v5594_v17 = vpop.f32.mrf.mxu1  ;;  %2247 = vmatpush.bf16.msrb.mxu1 %v4091_v11 }
 0x18b   :  { %v1713_v2 = vadd.f32 %v5592_v3, %v5560_v42  ;;  %1571 = vmatmul.bf16.gmra.mxu0 %v5311_v45 }
 0x18c   :  { %1600 = vmatmul.bf16.gmra.mxu1 %v5313_v50  ;;  %v1284_v58 = vpop.f32.mrf.mxu2  ;;  %v4074_v50 = vld [vmem:[#allocation4 + $0x80] sm:$0xf] }
 0x18d   :  { %v1285_v8 = vadd.f32 %v1284_v58, %v1256_v61  ;;  %v1313_v47 = vpop.f32.mrf.mxu3  ;;  %v5601_v22 = vpack.c.bf16 %v1713_v2, %v1709_v16  ;;  %2248 = vmatpush.bf16.msrb.mxu1 %v4083_v7  ;;  %v4075_v16 = vor.u32 %v4857_v9, %v4074_v50  ;;  %v4854_v9 = vld [vmem:[#allocation4 + $0x74] sm:$0xf] }
 0x18f   :  { %v1314_v36 = vadd.f32 %v1313_v47, %v1285_v8 }
 0x190   :  { %v5605_v52 = vpop.f32.mrf.mxu0 }
 0x191   :  { %v5607_v45 = vmax.f32 %v1314_v36, 0.0  ;;  %v5609_v6 = vpop.f32.mrf.mxu1  ;;  %1518 = vmatmul.bf16.gmra.mxu2 %v5463_v4  ;;  %2249 = vmatpush.bf16.msrb.mxu1 %v4075_v16 }
 0x192   :  { %1547 = vmatmul.bf16.gmra.mxu3 %v5465_v18 }
 0x193   :  { %v1717_v31 = vadd.f32 %v5607_v45, %v5577_v25 }
 0x194   :  { %v1287_v14 = vpop.f32.mrf.mxu2 }
 0x195   :  { %v1288_v37 = vadd.f32 %v1287_v14, %v1259_v43  ;;  %v1316_v46 = vpop.f32.mrf.mxu3  ;;  %v4068_v43 = vld [vmem:[#allocation4 + $0x78] sm:$0xf0]  ;;  %v1336_v14 = vadd.f32 %v5556_v21, %v5634_v57 }
 0x197   :  { %v1317_v1 = vadd.f32 %v1316_v46, %v1288_v37  ;;  %v4060_v46 = vld [vmem:[#allocation4 + $0x68] sm:$0xf0] }
 0x198   :  { %v5618_v54 = vpop.f32.mrf.mxu0 }
 0x199   :  { %v5620_v55 = vmax.f32 %v1317_v1, 0.0  ;;  %v5622_v41 = vpop.f32.mrf.mxu1 }
 0x19b   :  { %v1721_v28 = vadd.f32 %v5620_v55, %v5592_v3  ;;  %v1729_v56 = vadd.f32 %v5620_v55, %v5558_v23  ;;  %1576 = vmatmul.bf16.gmra.mxu0 %v5359_v63  ;;  %v1331_v63 = vadd.f32 %v5529_v38, %v5634_v57  ;;  %v5662_v38 = vpack.c.bf16 %v5582_v29, %v5558_v23 }
 0x19c   :  { %1605 = vmatmul.bf16.gmra.mxu1 %v5365_v19  ;;  %v1289_v13 = vpop.f32.mrf.mxu2 }
 0x19d   :  { %v1290_v60 = vadd.f32 %v1289_v13, %v1261_v26  ;;  %v1318_v32 = vpop.f32.mrf.mxu3  ;;  %v5631_v33 = vpack.c.bf16 %v1721_v28, %v1717_v31  ;;  %v1365_v28 = vadd.f32 %v5562_v27, %v1336_v14  ;;  %v4850_v13 = vld [vmem:[#allocation4 + $0x54] sm:$0xf] }
 0x19f   :  { %v1319_v61 = vadd.f32 %v1318_v32, %v1290_v60  ;;  %v4052_v60 = vld [vmem:[#allocation4 + $0x58] sm:$0xf0] }
 0x1a0   :  { %v5636_v0 = vpop.f32.mrf.mxu0 }
 0x1a1   :  { %v5638_v2 = vmax.f32 %v1319_v61, 0.0  ;;  %v5640_v11 = vpop.f32.mrf.mxu1  ;;  %1619 = vmatmul.bf16.vlgmr.msrb.gmra.mxu2 %v5375_v30  ;;  %v1360_v30 = vadd.f32 %v5531_v62, %v1331_v63  ;;  %v4055_v63 = vor.u32 %v4850_v13, %v4052_v60  ;;  %v4178_v60 = vld [vmem:[#allocation4 + $0x150] sm:$0xf] }
 0x1a2   :  { %1648 = vmatmul.bf16.vlgmr.msrb.gmra.mxu3 %v5381_v35  ;;  %v1333_v35 = vadd.f32 %v5544_v5, %v5634_v57  ;;  %v4071_v5 = vor.u32 %v4854_v9, %v4068_v43  ;;  %v5696_v43 = vpack.c.bf16 %v5577_v25, %v5560_v42  ;;  %v4846_v25 = vld [vmem:[#allocation4 + $0x34] sm:$0xf] }
 0x1a3   :  { %v1701_v19 = vadd.f32 %v5638_v2, %v5582_v29  ;;  %v1725_v58 = vadd.f32 %v5638_v2, %v5607_v45  ;;  %v4852_v29 = vld [vmem:[#allocation4 + $0x64] sm:$0xf] }
 0x1a4   :  { %v1388_v8 = vpop.f32.mrf.mxu2  ;;  %2329 = vmatpush.bf16.msra.mxu0 %v4071_v5  ;;  %v4063_v26 = vor.u32 %v4852_v29, %v4060_v46  ;;  %v4124_v29 = vld [vmem:[#allocation4 + $0xe8] sm:$0xf0] }
 0x1a5   :  { %v5651_v47 = vpack.c.bf16 %v5568_v48, %v1701_v19  ;;  %v1417_v53 = vpop.f32.mrf.mxu3  ;;  %v5653_v10 = vpack.c.bf16 %v1729_v56, %v1725_v58  ;;  %v1389_v36 = vadd.f32 %v1388_v8, %v1360_v30  ;;  %v1362_v48 = vadd.f32 %v5546_v15, %v1333_v35  ;;  %v4194_v19 = vld [vmem:[#allocation4 + $0x170] sm:$0xf]  ;;  %v4870_v58 = vld [vmem:[#allocation4 + $0xf4] sm:$0xf] }
 0x1a7   :  { %v1418_v62 = vadd.f32 %v1417_v53, %v1389_v36  ;;  %v4132_v53 = vld [vmem:[#allocation4 + $0xf8] sm:$0xf0]  ;;  %v4848_v36 = vld [vmem:[#allocation4 + $0x44] sm:$0xf] }
 0x1a8   :  { %v5658_v20 = vpop.f32.mrf.mxu0  ;;  %2330 = vmatpush.bf16.msra.mxu0 %v4063_v26  ;;  %v4135_v35 = vor.u32 %v4870_v58, %v4132_v53  ;;  %v4036_v26 = vld [vmem:[#allocation4 + $0x38] sm:$0xf0] }
 0x1a9   :  { %v5664_v7 = vpop.f32.mrf.mxu1  ;;  %v5672_v39 = vmax.f32 %v1418_v62, 0.0  ;;  %v4039_v13 = vor.u32 %v4846_v25, %v4036_v26  ;;  %v4162_v26 = vld [vmem:[#allocation4 + $0x130] sm:$0xf] }
 0x1aa   :  { %2358 = vmatpush.bf16.msra.mxu1 %v4135_v35 }
 0x1ab   :  { %2221 = vmatmul.bf16.vlgmr.msrb.gmra.mxu0 %v5662_v38 }
 0x1ac   :  { %v1390_v50 = vpop.f32.mrf.mxu2  ;;  %2331 = vmatpush.bf16.msra.mxu0 %v4055_v63 }
 0x1ad   :  { %v1391_v16 = vadd.f32 %v1390_v50, %v1362_v48  ;;  %v1419_v31 = vpop.f32.mrf.mxu3  ;;  %v4044_v48 = vld [vmem:[#allocation4 + $0x48] sm:$0xf0] }
 0x1ae   :  { %v4047_v62 = vor.u32 %v4848_v36, %v4044_v48  ;;  %v4881_v48 = vld [vmem:[#allocation4 + $0x144] sm:$0xf0] }
 0x1af   :  { %v1420_v37 = vadd.f32 %v1419_v31, %v1391_v16  ;;  %v4885_v16 = vld [vmem:[#allocation4 + $0x164] sm:$0xf0]  ;;  %v4868_v31 = vld [vmem:[#allocation4 + $0xe4] sm:$0xf] }
 0x1b0   :  { %v5670_v23 = vpop.f32.mrf.mxu0  ;;  %2332 = vmatpush.bf16.msra.mxu0 %v4047_v62  ;;  %v4127_v42 = vor.u32 %v4868_v31, %v4124_v29  ;;  %v4864_v62 = vld [vmem:[#allocation4 + $0xc4] sm:$0xf] }
 0x1b1   :  { %v5674_v15 = vmax.f32 %v1420_v37, 0.0  ;;  %v5676_v1 = vpop.f32.mrf.mxu1  ;;  %1624 = vmatmul.bf16.gmra.mxu2 %v5415_v40  ;;  %v4887_v40 = vld [vmem:[#allocation4 + $0x174] sm:$0xf0] }
 0x1b2   :  { %1653 = vmatmul.bf16.gmra.mxu3 %v5417_v49  ;;  %v1338_v49 = vadd.f32 %v5575_v59, %v5634_v57  ;;  %v4195_v8 = vor.u32 %v4887_v40, %v4194_v19  ;;  %v4186_v59 = vld [vmem:[#allocation4 + $0x160] sm:$0xf]  ;;  %2359 = vmatpush.bf16.msra.mxu1 %v4127_v42  ;;  %v4116_v40 = vld [vmem:[#allocation4 + $0xd8] sm:$0xf0] }
 0x1b3   :  { %v5683_v21 = vpack.c.bf16 %v5674_v15, %v5672_v39  ;;  %v4187_v37 = vor.u32 %v4885_v16, %v4186_v59 }
 0x1b4   :  { %v1393_v56 = vpop.f32.mrf.mxu2  ;;  %2271 = vmatpush.bf16.msra.mxu2 %v4195_v8  ;;  %v1367_v5 = vadd.f32 %v5579_v51, %v1338_v49  ;;  %v4883_v51 = vld [vmem:[#allocation4 + $0x154] sm:$0xf0]  ;;  %2333 = vmatpush.bf16.msra.mxu0 %v4039_v13  ;;  %v4028_v8 = vld [vmem:[#allocation4 + $0x28] sm:$0xf0]  ;;  %v1343_v13 = vadd.f32 %v5605_v52, %v5634_v57  ;;  %v4154_v52 = vld [vmem:[#allocation4 + $0x120] sm:$0xf] }
 0x1b5   :  { %v1394_v32 = vadd.f32 %v1393_v56, %v1365_v28  ;;  %v1422_v61 = vpop.f32.mrf.mxu3  ;;  %2250 = vmatmul.bf16.vlgmr.msrb.gmra.mxu1 %v5683_v21  ;;  %v4179_v19 = vor.u32 %v4883_v51, %v4178_v60 }
 0x1b7   :  { %v1423_v27 = vadd.f32 %v1422_v61, %v1394_v32  ;;  %v4866_v32 = vld [vmem:[#allocation4 + $0xd4] sm:$0xf]  ;;  %v1341_v61 = vadd.f32 %v5590_v12, %v5634_v57  ;;  %v4170_v12 = vld [vmem:[#allocation4 + $0x140] sm:$0xf] }
 0x1b8   :  { %v5688_v30 = vpop.f32.mrf.mxu0  ;;  %2272 = vmatpush.bf16.msra.mxu2 %v4187_v37  ;;  %v4119_v49 = vor.u32 %v4866_v32, %v4116_v40  ;;  %v4171_v31 = vor.u32 %v4881_v48, %v4170_v12  ;;  %v4100_v32 = vld [vmem:[#allocation4 + $0xb8] sm:$0xf0]  ;;  %v4012_v40 = vld [vmem:[#allocation4 + $0x8] sm:$0xf0]  ;;  %v4877_v12 = vld [vmem:[#allocation4 + $0x124] sm:$0xf0] }
 0x1b9   :  { %v5690_v50 = vmax.f32 %v1423_v27, 0.0  ;;  %v5692_v9 = vpop.f32.mrf.mxu1  ;;  %v4844_v27 = vld [vmem:[#allocation4 + $0x24] sm:$0xf]  ;;  %v1370_v59 = vadd.f32 %v5594_v17, %v1341_v61 }
 0x1ba   :  { %v4031_v36 = vor.u32 %v4844_v27, %v4028_v8  ;;  %2360 = vmatpush.bf16.msra.mxu1 %v4119_v49  ;;  %v5730_v8 = vpack.c.bf16 %v5607_v45, %v5592_v3  ;;  %v4860_v48 = vld [vmem:[#allocation4 + $0xa4] sm:$0xf] }
 0x1bb   :  { %v5701_v14 = vadd.f32 %v5690_v50, %v5672_v39  ;;  %2226 = vmatmul.bf16.gmra.mxu0 %v5696_v43 }
 0x1bc   :  { %v1395_v46 = vpop.f32.mrf.mxu2  ;;  %2273 = vmatpush.bf16.msra.mxu2 %v4179_v19  ;;  %2334 = vmatpush.bf16.msra.mxu0 %v4031_v36  ;;  %v4840_v19 = vld [vmem:[#allocation4 + $0x4] sm:$0xf] }
 0x1bd   :  { %v1396_v28 = vadd.f32 %v1395_v46, %v1367_v5  ;;  %v1424_v56 = vpop.f32.mrf.mxu3  ;;  %v4108_v5 = vld [vmem:[#allocation4 + $0xc8] sm:$0xf0]  ;;  %v4020_v46 = vld [vmem:[#allocation4 + $0x18] sm:$0xf0]  ;;  %v4015_v36 = vor.u32 %v4840_v19, %v4012_v40 }
 0x1be   :  { %v4111_v29 = vor.u32 %v4864_v62, %v4108_v5  ;;  %v1372_v62 = vadd.f32 %v5609_v6, %v1343_v13  ;;  %v4092_v5 = vld [vmem:[#allocation4 + $0xa8] sm:$0xf0]  ;;  %v1346_v6 = vadd.f32 %v5618_v54, %v5634_v57 }
 0x1bf   :  { %v1425_v63 = vadd.f32 %v1424_v56, %v1396_v28  ;;  %v4879_v28 = vld [vmem:[#allocation4 + $0x134] sm:$0xf0]  ;;  %v4862_v56 = vld [vmem:[#allocation4 + $0xb4] sm:$0xf]  ;;  %v4076_v40 = vld [vmem:[#allocation4 + $0x88] sm:$0xf0] }
 0x1c0   :  { %v5706_v58 = vpop.f32.mrf.mxu0  ;;  %2274 = vmatpush.bf16.msra.mxu2 %v4171_v31  ;;  %2361 = vmatpush.bf16.msra.mxu1 %v4111_v29  ;;  %v4163_v51 = vor.u32 %v4879_v28, %v4162_v26  ;;  %v4155_v31 = vor.u32 %v4877_v12, %v4154_v52  ;;  %v4095_v29 = vor.u32 %v4860_v48, %v4092_v5  ;;  %v4084_v26 = vld [vmem:[#allocation4 + $0x98] sm:$0xf0] }
 0x1c1   :  { %v5708_v53 = vmax.f32 %v1425_v63, 0.0  ;;  %v5710_v35 = vpop.f32.mrf.mxu1  ;;  %1629 = vmatmul.bf16.gmra.mxu2 %v5443_v34  ;;  %v4103_v63 = vor.u32 %v4862_v56, %v4100_v32  ;;  %v4856_v32 = vld [vmem:[#allocation4 + $0x84] sm:$0xf]  ;;  %v1375_v54 = vadd.f32 %v5622_v41, %v1346_v6 }
 0x1c2   :  { %1658 = vmatmul.bf16.gmra.mxu3 %v5445_v44  ;;  %v4842_v44 = vld [vmem:[#allocation4 + $0x14] sm:$0xf]  ;;  %v4079_v12 = vor.u32 %v4856_v32, %v4076_v40  ;;  %v4322_v32 = vld [vmem:[%s6870_s5 + $0x70] sm:$0xf] }
 0x1c3   :  { %v5717_v16 = vpack.c.bf16 %v5708_v53, %v5690_v50  ;;  %v1710_v37 = vadd.f32 %v5708_v53, %v5674_v15  ;;  %v4023_v17 = vor.u32 %v4842_v44, %v4020_v46  ;;  %v4146_v46 = vld [vmem:[#allocation4 + $0x110] sm:$0xf] }
 0x1c4   :  { %v1398_v34 = vpop.f32.mrf.mxu2  ;;  %2275 = vmatpush.bf16.msra.mxu2 %v4163_v51  ;;  %2362 = vmatpush.bf16.msra.mxu1 %v4103_v63  ;;  %v4873_v51 = vld [vmem:[#allocation4 + $0x104] sm:$0xf0] }
 0x1c5   :  { %v1399_v42 = vadd.f32 %v1398_v34, %v1370_v59  ;;  %v1427_v25 = vpop.f32.mrf.mxu3  ;;  %2255 = vmatmul.bf16.gmra.mxu1 %v5717_v16  ;;  %2335 = vmatpush.bf16.msra.mxu0 %v4023_v17 }
 0x1c7   :  { %v1428_v60 = vadd.f32 %v1427_v25, %v1399_v42  ;;  %v4875_v42 = vld [vmem:[#allocation4 + $0x114] sm:$0xf0]  ;;  %v4858_v25 = vld [vmem:[#allocation4 + $0x94] sm:$0xf] }
 0x1c8   :  { %v5724_v61 = vpop.f32.mrf.mxu0  ;;  %2276 = vmatpush.bf16.msra.mxu2 %v4155_v31  ;;  %2363 = vmatpush.bf16.msra.mxu1 %v4095_v29  ;;  %v4147_v17 = vor.u32 %v4875_v42, %v4146_v46  ;;  %v4087_v56 = vor.u32 %v4858_v25, %v4084_v26  ;;  %v5766_v46 = vperm.slane %v5524_v24, 2 }
 0x1c9   :  { %v1686_v49 = vmax.f32 %v1428_v60, 0.0  ;;  %v5726_v27 = vpop.f32.mrf.mxu1  ;;  %2336 = vmatpush.bf16.msra.mxu0 %v4015_v36 }
 0x1cb   :  { %v1714_v59 = vadd.f32 %v1686_v49, %v5690_v50  ;;  %2231 = vmatmul.bf16.gmra.mxu0 %v5730_v8 }
 0x1cc   :  { %v1400_v34 = vpop.f32.mrf.mxu2  ;;  %2277 = vmatpush.bf16.msra.mxu2 %v4147_v17  ;;  %2364 = vmatpush.bf16.msra.mxu1 %v4087_v56 }
 0x1cd   :  { %v1401_v44 = vadd.f32 %v1400_v34, %v1372_v62  ;;  %v1429_v3 = vpop.f32.mrf.mxu3  ;;  %v5735_v45 = vpack.c.bf16 %v1714_v59, %v1710_v37  ;;  %v4138_v37 = vld [vmem:[#allocation4 + $0x100] sm:$0xf] }
 0x1ce   :  { %v4139_v19 = vor.u32 %v4873_v51, %v4138_v37  ;;  %v1449_v37 = vadd.f32 %v5670_v23, %v5766_v46 }
 0x1cf   :  { %v1430_v50 = vadd.f32 %v1429_v3, %v1401_v44 }
 0x1d0   :  { %v5739_v28 = vpop.f32.mrf.mxu0  ;;  %2278 = vmatpush.bf16.msra.mxu2 %v4139_v19  ;;  %2365 = vmatpush.bf16.msra.mxu1 %v4079_v12  ;;  %v4789_v12 = vld [vmem:[%s6870_s5 + $0x64] sm:$0xf0] }
 0x1d1   :  { %v1690_v13 = vmax.f32 %v1430_v50, 0.0  ;;  %v5741_v60 = vpop.f32.mrf.mxu1  ;;  %1634 = vmatmul.bf16.gmra.mxu2 %v5463_v4  ;;  %v1348_v4 = vadd.f32 %v5636_v0, %v5634_v57 }
 0x1d2   :  { %1663 = vmatmul.bf16.gmra.mxu3 %v5465_v18 }
 0x1d3   :  { %v5746_v63 = vpack.c.bf16 %v1690_v13, %v1686_v49  ;;  %v1718_v36 = vadd.f32 %v1690_v13, %v5708_v53  ;;  %v5758_v53 = vpack.c.bf16 %v5638_v2, %v5620_v55  ;;  %v1377_v5 = vadd.f32 %v5640_v11, %v1348_v4 }
 0x1d4   :  { %v1403_v52 = vpop.f32.mrf.mxu2  ;;  %v1447_v11 = vadd.f32 %v5658_v20, %v5766_v46 }
 0x1d5   :  { %v1404_v48 = vadd.f32 %v1403_v52, %v1375_v54  ;;  %v1432_v62 = vpop.f32.mrf.mxu3  ;;  %2260 = vmatmul.bf16.gmra.mxu1 %v5746_v63 }
 0x1d6   :  { %v1476_v56 = vadd.f32 %v5664_v7, %v1447_v11  ;;  %v4791_v7 = vld [vmem:[%s6870_s5 + $0x74] sm:$0xf0]  ;;  %v1454_v11 = vadd.f32 %v5706_v58, %v5766_v46  ;;  %v4298_v58 = vld [vmem:[%s6870_s5 + $0x40] sm:$0xf] }
 0x1d7   :  { %v1433_v18 = vadd.f32 %v1432_v62, %v1404_v48  ;;  %v4323_v40 = vor.u32 %v4791_v7, %v4322_v32 }
 0x1d8   :  { %v5752_v41 = vpop.f32.mrf.mxu0 }
 0x1d9   :  { %v1694_v59 = vmax.f32 %v1433_v18, 0.0  ;;  %v5754_v31 = vpop.f32.mrf.mxu1  ;;  %2765 = vmatpush.bf16.msrb.mxu0 %v4323_v40  ;;  %v1483_v40 = vadd.f32 %v5710_v35, %v1454_v11 }
 0x1db   :  { %v1722_v34 = vadd.f32 %v1694_v59, %v1686_v49  ;;  %v1730_v29 = vadd.f32 %v1694_v59, %v5672_v39  ;;  %2236 = vmatmul.bf16.gmra.mxu0 %v5758_v53 }
 0x1dc   :  { %v1405_v44 = vpop.f32.mrf.mxu2 }
 0x1dd   :  { %v1406_v57 = vadd.f32 %v1405_v44, %v1377_v5  ;;  %v1434_v0 = vpop.f32.mrf.mxu3  ;;  %v5763_v3 = vpack.c.bf16 %v1722_v34, %v1718_v36  ;;  %v1452_v36 = vadd.f32 %v5688_v30, %v5766_v46  ;;  %v4306_v34 = vld [vmem:[%s6870_s5 + $0x50] sm:$0xf] }
 0x1df   :  { %v1435_v42 = vadd.f32 %v1434_v0, %v1406_v57  ;;  %v1481_v30 = vadd.f32 %v5692_v9, %v1452_v36  ;;  %v4258_v0 = vld [vmem:[#allocation4 + $0x1f0] sm:$0xf] }
 0x1e0   :  { %v5768_v25 = vpop.f32.mrf.mxu0 }
 0x1e1   :  { %v1698_v55 = vmax.f32 %v1435_v42, 0.0  ;;  %v5770_v2 = vpop.f32.mrf.mxu1  ;;  %v4903_v42 = vld [vmem:[#allocation4 + $0x1f4] sm:$0xf0] }
 0x1e3   :  { %v1702_v39 = vadd.f32 %v1698_v55, %v5674_v15  ;;  %v5775_v49 = vpack.c.bf16 %v1698_v55, %v1694_v59  ;;  %v1726_v6 = vadd.f32 %v1698_v55, %v1690_v13  ;;  %v1478_v13 = vadd.f32 %v5676_v1, %v1449_v37  ;;  %v4886_v55 = vld [vmem:[#allocation4 + $0x174] sm:$0xf] }
 0x1e4   :  { %v1504_v50 = vpop.f32.mrf.mxu2 }
 0x1e5   :  { %v5778_v17 = vpack.c.bf16 %v5701_v14, %v1702_v39  ;;  %v1533_v24 = vpop.f32.mrf.mxu3  ;;  %2265 = vmatmul.bf16.gmra.mxu1 %v5775_v49  ;;  %v5781_v26 = vpack.c.bf16 %v1730_v29, %v1726_v6  ;;  %v1505_v15 = vadd.f32 %v1504_v50, %v1476_v56  ;;  %v4787_v29 = vld [vmem:[%s6870_s5 + $0x54] sm:$0xf0]  ;;  %v4259_v6 = vor.u32 %v4903_v42, %v4258_v0  ;;  %v4196_v50 = vld [vmem:[#allocation4 + $0x178] sm:$0xf0]  ;;  %v4899_v0 = vld [vmem:[#allocation4 + $0x1d4] sm:$0xf0] }
 0x1e6   :  { %v4307_v9 = vor.u32 %v4787_v29, %v4306_v34  ;;  %v4807_v56 = vld [vmem:[%s6870_s5 + $0xf4] sm:$0xf0]  ;;  %v4199_v37 = vor.u32 %v4886_v55, %v4196_v50  ;;  %v4290_v34 = vld [vmem:[%s6870_s5 + $0x30] sm:$0xf]  ;;  %v4882_v42 = vld [vmem:[#allocation4 + $0x154] sm:$0xf]  ;;  %v1457_v55 = vadd.f32 %v5724_v61, %v5766_v46 }
 0x1e7   :  { %v1534_v54 = vadd.f32 %v1533_v24, %v1505_v15  ;;  %v4386_v24 = vld [vmem:[%s6870_s5 + $0xf0] sm:$0xf]  ;;  %2300 = vmatpush.bf16.msra.mxu3 %v4259_v6  ;;  %v4180_v6 = vld [vmem:[#allocation4 + $0x158] sm:$0xf0]  ;;  %v4282_v61 = vld [vmem:[%s6870_s5 + $0x20] sm:$0xf] }
 0x1e8   :  { %v5786_v20 = vpop.f32.mrf.mxu0  ;;  %v4387_v15 = vor.u32 %v4807_v56, %v4386_v24  ;;  %2387 = vmatpush.bf16.msrb.mxu2 %v4199_v37  ;;  %v4370_v50 = vld [vmem:[%s6870_s5 + $0xd0] sm:$0xf]  ;;  %v4803_v24 = vld [vmem:[%s6870_s5 + $0xd4] sm:$0xf0]  ;;  %v4183_v37 = vor.u32 %v4882_v42, %v4180_v6 }
 0x1e9   :  { %v5788_v51 = vpop.f32.mrf.mxu1  ;;  %v5808_v48 = vmax.f32 %v1534_v54, 0.0  ;;  %v4250_v54 = vld [vmem:[#allocation4 + $0x1e0] sm:$0xf]  ;;  %v4226_v42 = vld [vmem:[#allocation4 + $0x1b0] sm:$0xf] }
 0x1ea   :  { %2794 = vmatpush.bf16.msrb.mxu1 %v4387_v15  ;;  %v4371_v15 = vor.u32 %v4803_v24, %v4370_v50  ;;  %v4164_v24 = vld [vmem:[#allocation4 + $0x138] sm:$0xf0] }
 0x1eb   :  { %2337 = vmatmul.bf16.vlgmr.msra.gmra.mxu0 %v5662_v38  ;;  %v4314_v38 = vld [vmem:[%s6870_s5 + $0x60] sm:$0xf] }
 0x1ec   :  { %v1506_v14 = vpop.f32.mrf.mxu2  ;;  %v4315_v18 = vor.u32 %v4789_v12, %v4314_v38  ;;  %v4188_v38 = vld [vmem:[#allocation4 + $0x168] sm:$0xf0]  ;;  %v4378_v12 = vld [vmem:[%s6870_s5 + $0xe0] sm:$0xf] }
 0x1ed   :  { %v1507_v23 = vadd.f32 %v1506_v14, %v1478_v13  ;;  %v1535_v19 = vpop.f32.mrf.mxu3  ;;  %v4785_v13 = vld [vmem:[%s6870_s5 + $0x44] sm:$0xf0] }
 0x1ee   :  { %2766 = vmatpush.bf16.msrb.mxu0 %v4315_v18  ;;  %v4299_v7 = vor.u32 %v4785_v13, %v4298_v58  ;;  %v4805_v18 = vld [vmem:[%s6870_s5 + $0xe4] sm:$0xf0] }
 0x1ef   :  { %v1536_v52 = vadd.f32 %v1535_v19, %v1507_v23  ;;  %v4901_v23 = vld [vmem:[#allocation4 + $0x1e4] sm:$0xf0]  ;;  %v4884_v19 = vld [vmem:[#allocation4 + $0x164] sm:$0xf]  ;;  %v4379_v35 = vor.u32 %v4805_v18, %v4378_v12  ;;  %v4781_v58 = vld [vmem:[%s6870_s5 + $0x24] sm:$0xf0] }
 0x1f0   :  { %v5800_v1 = vpop.f32.mrf.mxu0  ;;  %v4172_v18 = vld [vmem:[#allocation4 + $0x148] sm:$0xf0] }
 0x1f1   :  { %v5810_v62 = vmax.f32 %v1536_v52, 0.0  ;;  %v5812_v4 = vpop.f32.mrf.mxu1  ;;  %v4251_v52 = vor.u32 %v4901_v23, %v4250_v54  ;;  %2795 = vmatpush.bf16.msrb.mxu1 %v4379_v35  ;;  %v4234_v23 = vld [vmem:[#allocation4 + $0x1c0] sm:$0xf] }
 0x1f2   :  { %2767 = vmatpush.bf16.msrb.mxu0 %v4307_v9  ;;  %v4242_v9 = vld [vmem:[#allocation4 + $0x1d0] sm:$0xf] }
 0x1f3   :  { %v5817_v59 = vpack.c.bf16 %v5810_v62, %v5808_v48  ;;  %2301 = vmatpush.bf16.msra.mxu3 %v4251_v52  ;;  %v1486_v52 = vadd.f32 %v5726_v27, %v1457_v55  ;;  %v4895_v55 = vld [vmem:[#allocation4 + $0x1b4] sm:$0xf0] }
 0x1f4   :  { %v1509_v5 = vpop.f32.mrf.mxu2  ;;  %v4227_v50 = vor.u32 %v4895_v55, %v4226_v42 }
 0x1f5   :  { %v1510_v44 = vadd.f32 %v1509_v5, %v1481_v30  ;;  %v1538_v57 = vpop.f32.mrf.mxu3  ;;  %2279 = vmatmul.bf16.vlgmr.msra.gmra.mxu2 %v5817_v59  ;;  %2366 = vmatmul.bf16.vlgmr.msra.gmra.mxu1 %v5683_v21  ;;  %v4191_v5 = vor.u32 %v4884_v19, %v4188_v38  ;;  %v4897_v19 = vld [vmem:[#allocation4 + $0x1c4] sm:$0xf0] }
 0x1f6   :  { %2768 = vmatpush.bf16.msrb.mxu0 %v4299_v7  ;;  %v4283_v7 = vor.u32 %v4781_v58, %v4282_v61  ;;  %2796 = vmatpush.bf16.msrb.mxu1 %v4371_v15  ;;  %v4235_v12 = vor.u32 %v4897_v19, %v4234_v23 }
 0x1f7   :  { %v1539_v39 = vadd.f32 %v1538_v57, %v1510_v44  ;;  %2388 = vmatpush.bf16.msrb.mxu2 %v4191_v5  ;;  %v4801_v5 = vld [vmem:[%s6870_s5 + $0xc4] sm:$0xf0] }
 0x1f8   :  { %v5835_v21 = vpop.f32.mrf.mxu0 }
 0x1f9   :  { %v5843_v14 = vmax.f32 %v1539_v39, 0.0  ;;  %v5845_v32 = vpop.f32.mrf.mxu1  ;;  %v4243_v39 = vor.u32 %v4899_v0, %v4242_v9 }
 0x1fb   :  { %v5850_v36 = vadd.f32 %v5843_v14, %v5808_v48  ;;  %2342 = vmatmul.bf16.gmra.mxu0 %v5696_v43  ;;  %v4783_v43 = vld [vmem:[%s6870_s5 + $0x34] sm:$0xf0]  ;;  %2302 = vmatpush.bf16.msra.mxu3 %v4243_v39  ;;  %v1459_v39 = vadd.f32 %v5739_v28, %v5766_v46  ;;  %v4266_v28 = vld [vmem:[%s6870_s5] sm:$0xf] }
 0x1fc   :  { %v1511_v30 = vpop.f32.mrf.mxu2  ;;  %v4291_v57 = vor.u32 %v4783_v43, %v4290_v34  ;;  %2389 = vmatpush.bf16.msrb.mxu2 %v4183_v37  ;;  %v4354_v37 = vld [vmem:[%s6870_s5 + $0xb0] sm:$0xf] }
 0x1fd   :  { %v1512_v29 = vadd.f32 %v1511_v30, %v1483_v40  ;;  %v1540_v44 = vpop.f32.mrf.mxu3  ;;  %v4880_v40 = vld [vmem:[#allocation4 + $0x144] sm:$0xf]  ;;  %v4362_v30 = vld [vmem:[%s6870_s5 + $0xc0] sm:$0xf] }
 0x1fe   :  { %2769 = vmatpush.bf16.msrb.mxu0 %v4291_v57  ;;  %v4175_v27 = vor.u32 %v4880_v40, %v4172_v18  ;;  %v4363_v43 = vor.u32 %v4801_v5, %v4362_v30  ;;  %v4218_v40 = vld [vmem:[#allocation4 + $0x1a0] sm:$0xf]  ;;  %v4876_v18 = vld [vmem:[#allocation4 + $0x124] sm:$0xf]  ;;  %v4156_v30 = vld [vmem:[#allocation4 + $0x128] sm:$0xf0] }
 0x1ff   :  { %v1541_v11 = vadd.f32 %v1540_v44, %v1512_v29  ;;  %v4274_v29 = vld [vmem:[%s6870_s5 + $0x10] sm:$0xf]  ;;  %v4779_v44 = vld [vmem:[%s6870_s5 + $0x14] sm:$0xf0]  ;;  %2303 = vmatpush.bf16.msra.mxu3 %v4235_v12  ;;  %v4346_v5 = vld [vmem:[%s6870_s5 + $0xa0] sm:$0xf] }
 0x200   :  { %v5873_v56 = vpop.f32.mrf.mxu0  ;;  %v4275_v0 = vor.u32 %v4779_v44, %v4274_v29  ;;  %2390 = vmatpush.bf16.msrb.mxu2 %v4175_v27  ;;  %2797 = vmatpush.bf16.msrb.mxu1 %v4363_v43  ;;  %v4159_v43 = vor.u32 %v4876_v18, %v4156_v30  ;;  %v4797_v29 = vld [vmem:[%s6870_s5 + $0xa4] sm:$0xf0]  ;;  %v4330_v18 = vld [vmem:[%s6870_s5 + $0x80] sm:$0xf] }
 0x201   :  { %v5881_v13 = vmax.f32 %v1541_v11, 0.0  ;;  %v5883_v54 = vpop.f32.mrf.mxu1  ;;  %v4878_v11 = vld [vmem:[#allocation4 + $0x134] sm:$0xf]  ;;  %v4793_v30 = vld [vmem:[%s6870_s5 + $0x84] sm:$0xf0] }
 0x202   :  { %2770 = vmatpush.bf16.msrb.mxu0 %v4283_v7  ;;  %v4167_v61 = vor.u32 %v4878_v11, %v4164_v24  ;;  %v4777_v7 = vld [vmem:[%s6870_s5 + $0x4] sm:$0xf0]  ;;  %v1462_v11 = vadd.f32 %v5752_v41, %v5766_v46  ;;  %v4338_v24 = vld [vmem:[%s6870_s5 + $0x90] sm:$0xf] }
 0x203   :  { %v5888_v38 = vpack.c.bf16 %v5881_v13, %v5843_v14  ;;  %v1711_v35 = vadd.f32 %v5881_v13, %v5810_v62  ;;  %v4267_v19 = vor.u32 %v4777_v7, %v4266_v28  ;;  %2304 = vmatpush.bf16.msra.mxu3 %v4227_v50  ;;  %v4148_v50 = vld [vmem:[#allocation4 + $0x118] sm:$0xf0]  ;;  %v4202_v41 = vld [vmem:[#allocation4 + $0x180] sm:$0xf]  ;;  %v4889_v28 = vld [vmem:[#allocation4 + $0x184] sm:$0xf0] }
 0x204   :  { %v1514_v34 = vpop.f32.mrf.mxu2  ;;  %2391 = vmatpush.bf16.msrb.mxu2 %v4167_v61  ;;  %v4872_v7 = vld [vmem:[#allocation4 + $0x104] sm:$0xf] }
 0x205   :  { %v1515_v57 = vadd.f32 %v1514_v34, %v1486_v52  ;;  %v1543_v9 = vpop.f32.mrf.mxu3  ;;  %2284 = vmatmul.bf16.gmra.mxu2 %v5888_v38  ;;  %2371 = vmatmul.bf16.gmra.mxu1 %v5717_v16  ;;  %v4799_v16 = vld [vmem:[%s6870_s5 + $0xb4] sm:$0xf0]  ;;  %v4893_v52 = vld [vmem:[#allocation4 + $0x1a4] sm:$0xf0]  ;;  %v1488_v34 = vadd.f32 %v5741_v60, %v1459_v39 }
 0x206   :  { %2771 = vmatpush.bf16.msrb.mxu0 %v4275_v0  ;;  %v4355_v58 = vor.u32 %v4799_v16, %v4354_v37  ;;  %v4219_v12 = vor.u32 %v4893_v52, %v4218_v40  ;;  %v4210_v60 = vld [vmem:[#allocation4 + $0x190] sm:$0xf]  ;;  %v4203_v52 = vor.u32 %v4889_v28, %v4202_v41 }
 0x207   :  { %v1544_v6 = vadd.f32 %v1543_v9, %v1515_v57  ;;  %v4347_v9 = vor.u32 %v4797_v29, %v4346_v5 }
 0x208   :  { %v5914_v15 = vpop.f32.mrf.mxu0  ;;  %2798 = vmatpush.bf16.msrb.mxu1 %v4355_v58  ;;  %2305 = vmatpush.bf16.msra.mxu3 %v4219_v12  ;;  %v4140_v12 = vld [vmem:[#allocation4 + $0x108] sm:$0xf0] }
 0x209   :  { %v5922_v23 = vmax.f32 %v1544_v6, 0.0  ;;  %v5934_v44 = vpop.f32.mrf.mxu1  ;;  %2392 = vmatpush.bf16.msrb.mxu2 %v4159_v43  ;;  %v4331_v43 = vor.u32 %v4793_v30, %v4330_v18 }
 0x20a   :  { %2772 = vmatpush.bf16.msrb.mxu0 %v4267_v19  ;;  %v1491_v19 = vadd.f32 %v5754_v31, %v1462_v11 }
 0x20b   :  { %v1715_v27 = vadd.f32 %v5922_v23, %v5843_v14  ;;  %2347 = vmatmul.bf16.gmra.mxu0 %v5730_v8  ;;  %v4891_v14 = vld [vmem:[#allocation4 + $0x194] sm:$0xf0]  ;;  %v4874_v8 = vld [vmem:[#allocation4 + $0x114] sm:$0xf] }
 0x20c   :  { %v1516_v57 = vpop.f32.mrf.mxu2  ;;  %2799 = vmatpush.bf16.msrb.mxu1 %v4347_v9  ;;  %v4211_v6 = vor.u32 %v4891_v14, %v4210_v60  ;;  %v4151_v16 = vor.u32 %v4874_v8, %v4148_v50  ;;  %v1464_v9 = vadd.f32 %v5768_v25, %v5766_v46  ;;  %v4949_v46 = vld [vmem:[%s6869_s4] sm:$0xf] }
 0x20d   :  { %v1517_v0 = vadd.f32 %v1516_v57, %v1488_v34  ;;  %v1545_v42 = vpop.f32.mrf.mxu3  ;;  %v5936_v55 = vpack.c.bf16 %v1715_v27, %v1711_v35  ;;  %v4795_v35 = vld [vmem:[%s6870_s5 + $0x94] sm:$0xf0]  ;;  %v4143_v27 = vor.u32 %v4872_v7, %v4140_v12  ;;  %v5976_v25 = vperm.slane %v4949_v46, 3 }
 0x20e   :  { %v4339_v61 = vor.u32 %v4795_v35, %v4338_v24  ;;  %2306 = vmatpush.bf16.msra.mxu3 %v4211_v6  ;;  %2393 = vmatpush.bf16.msrb.mxu2 %v4151_v16  ;;  %v1493_v60 = vadd.f32 %v5770_v2, %v1464_v9 }
 0x20f   :  { %v1546_v39 = vadd.f32 %v1545_v42, %v1517_v0 }
 0x210   :  { %v5946_v37 = vpop.f32.mrf.mxu0  ;;  %2800 = vmatpush.bf16.msrb.mxu1 %v4339_v61 }
 0x211   :  { %v1691_v58 = vmax.f32 %v1546_v39, 0.0  ;;  %v5961_v57 = vpop.f32.mrf.mxu1 }
 0x212   :  { %2307 = vmatpush.bf16.msra.mxu3 %v4203_v52  ;;  %2394 = vmatpush.bf16.msrb.mxu2 %v4143_v27 }
 0x213   :  { %v5950_v40 = vpack.c.bf16 %v1691_v58, %v5922_v23  ;;  %v1719_v5 = vadd.f32 %v1691_v58, %v5881_v13 }
 0x214   :  { %v1519_v34 = vpop.f32.mrf.mxu2  ;;  %2801 = vmatpush.bf16.msrb.mxu1 %v4331_v43  ;;  %v4788_v43 = vld [vmem:[%s6870_s5 + $0x64] sm:$0xf] }
 0x215   :  { %v1520_v31 = vadd.f32 %v1519_v34, %v1491_v19  ;;  %v1548_v29 = vpop.f32.mrf.mxu3  ;;  %2289 = vmatmul.bf16.gmra.mxu2 %v5950_v40  ;;  %2376 = vmatmul.bf16.gmra.mxu1 %v5746_v63  ;;  %v1568_v34 = vadd.f32 %v5835_v21, %v5976_v25 }
 0x217   :  { %v1549_v0 = vadd.f32 %v1548_v29, %v1520_v31  ;;  %v4316_v31 = vld [vmem:[%s6870_s5 + $0x68] sm:$0xf0] }
 0x218   :  { %v5965_v42 = vpop.f32.mrf.mxu0 }
 0x219   :  { %v1695_v13 = vmax.f32 %v1549_v0, 0.0  ;;  %v5978_v24 = vpop.f32.mrf.mxu1  ;;  %v4319_v0 = vor.u32 %v4788_v43, %v4316_v31  ;;  %v4821_v31 = vld [vmem:[%s6870_s5 + $0x164] sm:$0xf0] }
 0x21b   :  { %v1723_v14 = vadd.f32 %v1695_v13, %v5922_v23  ;;  %v1731_v8 = vadd.f32 %v1695_v13, %v5808_v48  ;;  %2352 = vmatmul.bf16.gmra.mxu0 %v5758_v53  ;;  %v1563_v53 = vadd.f32 %v5786_v20, %v5976_v25  ;;  %v1565_v20 = vadd.f32 %v5800_v1, %v5976_v25 }
 0x21c   :  { %v1521_v63 = vpop.f32.mrf.mxu2 }
 0x21d   :  { %v1522_v11 = vadd.f32 %v1521_v63, %v1493_v60  ;;  %v1550_v39 = vpop.f32.mrf.mxu3  ;;  %v5971_v6 = vpack.c.bf16 %v1723_v14, %v1719_v5  ;;  %v1592_v19 = vadd.f32 %v5788_v51, %v1563_v53  ;;  %v4324_v51 = vld [vmem:[%s6870_s5 + $0x78] sm:$0xf0]  ;;  %v1597_v60 = vadd.f32 %v5845_v32, %v1568_v34  ;;  %v4786_v63 = vld [vmem:[%s6870_s5 + $0x54] sm:$0xf]  ;;  %v4450_v53 = vld [vmem:[%s6870_s5 + $0x170] sm:$0xf] }
 0x21f   :  { %v1551_v50 = vadd.f32 %v1550_v39, %v1522_v11  ;;  %v4308_v11 = vld [vmem:[%s6870_s5 + $0x58] sm:$0xf0] }
 0x220   :  { %v5980_v2 = vpop.f32.mrf.mxu0  ;;  %v4311_v32 = vor.u32 %v4786_v63, %v4308_v11  ;;  %v4292_v63 = vld [vmem:[%s6870_s5 + $0x38] sm:$0xf0] }
 0x221   :  { %v1699_v23 = vmax.f32 %v1551_v50, 0.0  ;;  %v5997_v12 = vpop.f32.mrf.mxu1  ;;  %v4902_v50 = vld [vmem:[#allocation4 + $0x1f4] sm:$0xf] }
 0x223   :  { %v1703_v48 = vadd.f32 %v1699_v23, %v5810_v62  ;;  %v5985_v35 = vpack.c.bf16 %v1699_v23, %v1695_v13  ;;  %v1727_v16 = vadd.f32 %v1699_v23, %v1691_v58  ;;  %v1594_v58 = vadd.f32 %v5812_v4, %v1565_v20  ;;  %v4260_v23 = vld [vmem:[#allocation4 + $0x1f8] sm:$0xf0] }
 0x224   :  { %v1620_v61 = vpop.f32.mrf.mxu2 }
 0x225   :  { %v5988_v41 = vpack.c.bf16 %v5850_v36, %v1703_v48  ;;  %v1649_v28 = vpop.f32.mrf.mxu3  ;;  %2294 = vmatmul.bf16.gmra.mxu2 %v5985_v35  ;;  %2381 = vmatmul.bf16.gmra.mxu1 %v5775_v49  ;;  %v5992_v7 = vpack.c.bf16 %v1731_v8, %v1727_v16  ;;  %v1621_v52 = vadd.f32 %v1620_v61, %v1592_v19  ;;  %v4790_v49 = vld [vmem:[%s6870_s5 + $0x74] sm:$0xf]  ;;  %v4388_v19 = vld [vmem:[%s6870_s5 + $0xf8] sm:$0xf0] }
 0x226   :  { %v4327_v5 = vor.u32 %v4790_v49, %v4324_v51  ;;  %v1570_v48 = vadd.f32 %v5873_v56, %v5976_v25  ;;  %v4263_v61 = vor.u32 %v4902_v50, %v4260_v23  ;;  %v4784_v56 = vld [vmem:[%s6870_s5 + $0x44] sm:$0xf]  ;;  %v4898_v50 = vld [vmem:[#allocation4 + $0x1d4] sm:$0xf] }
 0x227   :  { %v1650_v18 = vadd.f32 %v1649_v28, %v1621_v52  ;;  %v4823_v28 = vld [vmem:[%s6870_s5 + $0x174] sm:$0xf0]  ;;  %v4244_v23 = vld [vmem:[#allocation4 + $0x1d8] sm:$0xf0] }
 0x228   :  { %v2222_v62 = vpop.f32.mrf.mxu0  ;;  %2881 = vmatpush.bf16.msra.mxu0 %v4327_v5  ;;  %2416 = vmatpush.bf16.msrb.mxu3 %v4263_v61  ;;  %v1599_v5 = vadd.f32 %v5883_v54, %v1570_v48  ;;  %v4380_v54 = vld [vmem:[%s6870_s5 + $0xe8] sm:$0xf0]  ;;  %v4819_v61 = vld [vmem:[%s6870_s5 + $0x154] sm:$0xf0] }
 0x229   :  { %v6015_v29 = vmax.f32 %v1650_v18, 0.0  ;;  %v4900_v18 = vld [vmem:[#allocation4 + $0x1e4] sm:$0xf] }
 0x22b   :  { %2773 = vmatmul.bf16.vlgmr.msrb.gmra.mxu0 %v5651_v47 }
 0x22c   :  { %v1622_v36 = vpop.f32.mrf.mxu2  ;;  %2882 = vmatpush.bf16.msra.mxu0 %v4319_v0  ;;  %v4804_v0 = vld [vmem:[%s6870_s5 + $0xe4] sm:$0xf] }
 0x22d   :  { %v1623_v30 = vadd.f32 %v1622_v36, %v1594_v58  ;;  %v1651_v1 = vpop.f32.mrf.mxu3  ;;  %v4300_v58 = vld [vmem:[%s6870_s5 + $0x48] sm:$0xf0] }
 0x22e   :  { %v4303_v49 = vor.u32 %v4784_v56, %v4300_v58  ;;  %v4284_v56 = vld [vmem:[%s6870_s5 + $0x28] sm:$0xf0] }
 0x22f   :  { %v1652_v27 = vadd.f32 %v1651_v1, %v1623_v30  ;;  %v4252_v30 = vld [vmem:[#allocation4 + $0x1e8] sm:$0xf0]  ;;  %v4442_v1 = vld [vmem:[%s6870_s5 + $0x160] sm:$0xf] }
 0x230   :  { %v2224_v4 = vpop.f32.mrf.mxu0  ;;  %2883 = vmatpush.bf16.msra.mxu0 %v4311_v32  ;;  %v4255_v43 = vor.u32 %v4900_v18, %v4252_v30  ;;  %v1573_v32 = vadd.f32 %v5914_v15, %v5976_v25  ;;  %v4372_v15 = vld [vmem:[%s6870_s5 + $0xd8] sm:$0xf0]  ;;  %v4896_v30 = vld [vmem:[#allocation4 + $0x1c4] sm:$0xf] }
 0x231   :  { %v6017_v9 = vmax.f32 %v1652_v27, 0.0 }
 0x232   :  { %v2251_v13 = vpop.f32.mrf.mxu1  ;;  %2417 = vmatpush.bf16.msrb.mxu3 %v4255_v43 }
 0x233   :  { %v6022_v21 = vpack.c.bf16 %v6017_v9, %v6015_v29  ;;  %v6024_v14 = vadd.f32 %v2251_v13, %v2222_v62  ;;  %v4451_v62 = vor.u32 %v4823_v28, %v4450_v53  ;;  %v4434_v53 = vld [vmem:[%s6870_s5 + $0x150] sm:$0xf]  ;;  %v4802_v28 = vld [vmem:[%s6870_s5 + $0xd4] sm:$0xf] }
 0x234   :  { %v1625_v8 = vpop.f32.mrf.mxu2  ;;  %2884 = vmatpush.bf16.msra.mxu0 %v4303_v49 }
 0x235   :  { %v1626_v39 = vadd.f32 %v1625_v8, %v1597_v60  ;;  %v1654_v46 = vpop.f32.mrf.mxu3  ;;  %2308 = vmatmul.bf16.vlgmr.msra.gmra.mxu3 %v6022_v21  ;;  %2395 = vmatmul.bf16.vlgmr.msrb.gmra.mxu2 %v5817_v59  ;;  %v4806_v59 = vld [vmem:[%s6870_s5 + $0xf4] sm:$0xf]  ;;  %v4443_v60 = vor.u32 %v4821_v31, %v4442_v1 }
 0x236   :  { %2802 = vmatmul.bf16.vlgmr.msrb.gmra.mxu1 %v5778_v17  ;;  %v4391_v52 = vor.u32 %v4806_v59, %v4388_v19  ;;  %2823 = vmatpush.bf16.msra.mxu2 %v4451_v62  ;;  %v4782_v8 = vld [vmem:[%s6870_s5 + $0x34] sm:$0xf]  ;;  %v4435_v19 = vor.u32 %v4819_v61, %v4434_v53  ;;  %v4375_v62 = vor.u32 %v4802_v28, %v4372_v15  ;;  %v4228_v53 = vld [vmem:[#allocation4 + $0x1b8] sm:$0xf0]  ;;  %v4356_v28 = vld [vmem:[%s6870_s5 + $0xb8] sm:$0xf0] }
 0x237   :  { %v1655_v16 = vadd.f32 %v1654_v46, %v1626_v39  ;;  %v4295_v46 = vor.u32 %v4782_v8, %v4292_v63  ;;  %v4236_v1 = vld [vmem:[#allocation4 + $0x1c8] sm:$0xf0] }
 0x238   :  { %v2227_v20 = vpop.f32.mrf.mxu0  ;;  %2910 = vmatpush.bf16.msra.mxu1 %v4391_v52  ;;  %v4780_v52 = vld [vmem:[%s6870_s5 + $0x24] sm:$0xf]  ;;  %v4778_v63 = vld [vmem:[%s6870_s5 + $0x14] sm:$0xf] }
 0x239   :  { %v6055_v36 = vmax.f32 %v1655_v16, 0.0  ;;  %v4247_v16 = vor.u32 %v4898_v50, %v4244_v23  ;;  %2885 = vmatpush.bf16.msra.mxu0 %v4295_v46  ;;  %v4287_v49 = vor.u32 %v4780_v52, %v4284_v56  ;;  %v1575_v50 = vadd.f32 %v5946_v37, %v5976_v25  ;;  %v4894_v23 = vld [vmem:[#allocation4 + $0x1b4] sm:$0xf]  ;;  %v4798_v37 = vld [vmem:[%s6870_s5 + $0xb4] sm:$0xf] }
 0x23a   :  { %v2253_v51 = vpop.f32.mrf.mxu1  ;;  %2824 = vmatpush.bf16.msra.mxu2 %v4443_v60  ;;  %v4231_v61 = vor.u32 %v4894_v23, %v4228_v53  ;;  %v4776_v52 = vld [vmem:[%s6870_s5 + $0x4] sm:$0xf]  ;;  %v4268_v56 = vld [vmem:[%s6870_s5 + $0x8] sm:$0xf0]  ;;  %v4794_v23 = vld [vmem:[%s6870_s5 + $0x94] sm:$0xf] }
 0x23b   :  { %v6063_v34 = vadd.f32 %v6055_v36, %v6015_v29  ;;  %v6065_v27 = vadd.f32 %v2253_v51, %v2224_v4  ;;  %2778 = vmatmul.bf16.gmra.mxu0 %v5601_v22  ;;  %v4383_v4 = vor.u32 %v4804_v0, %v4380_v54  ;;  %2418 = vmatpush.bf16.msrb.mxu3 %v4247_v16  ;;  %v4800_v54 = vld [vmem:[%s6870_s5 + $0xc4] sm:$0xf]  ;;  %v4340_v53 = vld [vmem:[%s6870_s5 + $0x98] sm:$0xf0] }
 0x23c   :  { %v1627_v13 = vpop.f32.mrf.mxu2  ;;  %v1602_v51 = vadd.f32 %v5934_v44, %v1573_v32  ;;  %v4239_v0 = vor.u32 %v4896_v30, %v4236_v1  ;;  %v4817_v44 = vld [vmem:[%s6870_s5 + $0x144] sm:$0xf0]  ;;  %v4892_v1 = vld [vmem:[#allocation4 + $0x1a4] sm:$0xf] }
 0x23d   :  { %v1628_v11 = vadd.f32 %v1627_v13, %v1599_v5  ;;  %v1656_v39 = vpop.f32.mrf.mxu3  ;;  %2911 = vmatpush.bf16.msra.mxu1 %v4383_v4  ;;  %v4426_v5 = vld [vmem:[%s6870_s5 + $0x140] sm:$0xf]  ;;  %v4364_v13 = vld [vmem:[%s6870_s5 + $0xc8] sm:$0xf0]  ;;  %2886 = vmatpush.bf16.msra.mxu0 %v4287_v49 }
 0x23e   :  { %2825 = vmatpush.bf16.msra.mxu2 %v4435_v19  ;;  %v4427_v4 = vor.u32 %v4817_v44, %v4426_v5  ;;  %v4367_v8 = vor.u32 %v4800_v54, %v4364_v13  ;;  %v4220_v5 = vld [vmem:[#allocation4 + $0x1a8] sm:$0xf0] }
 0x23f   :  { %v1657_v48 = vadd.f32 %v1656_v39, %v1628_v11  ;;  %v4276_v11 = vld [vmem:[%s6870_s5 + $0x18] sm:$0xf0]  ;;  %2419 = vmatpush.bf16.msrb.mxu3 %v4239_v0  ;;  %v4410_v0 = vld [vmem:[%s6870_s5 + $0x120] sm:$0xf]  ;;  %v4223_v13 = vor.u32 %v4892_v1, %v4220_v5  ;;  %v4809_v5 = vld [vmem:[%s6870_s5 + $0x104] sm:$0xf0] }
 0x240   :  { %v2229_v59 = vpop.f32.mrf.mxu0  ;;  %v4279_v32 = vor.u32 %v4778_v63, %v4276_v11  ;;  %v4890_v63 = vld [vmem:[#allocation4 + $0x194] sm:$0xf]  ;;  %v4212_v11 = vld [vmem:[#allocation4 + $0x198] sm:$0xf0] }
 0x241   :  { %v6103_v58 = vmax.f32 %v1657_v48, 0.0  ;;  %2912 = vmatpush.bf16.msra.mxu1 %v4375_v62  ;;  %v4418_v48 = vld [vmem:[%s6870_s5 + $0x130] sm:$0xf]  ;;  %v4359_v62 = vor.u32 %v4798_v37, %v4356_v28 }
 0x242   :  { %v2256_v18 = vpop.f32.mrf.mxu1  ;;  %2826 = vmatpush.bf16.msra.mxu2 %v4427_v4  ;;  %2887 = vmatpush.bf16.msra.mxu0 %v4279_v32  ;;  %v4348_v4 = vld [vmem:[%s6870_s5 + $0xa8] sm:$0xf0] }
 0x243   :  { %v6109_v43 = vadd.f32 %v2256_v18, %v2227_v20  ;;  %v6113_v31 = vpack.c.bf16 %v6103_v58, %v6055_v36  ;;  %v1712_v20 = vadd.f32 %v6103_v58, %v6017_v9  ;;  %v1604_v18 = vadd.f32 %v5961_v57, %v1575_v50  ;;  %2420 = vmatpush.bf16.msrb.mxu3 %v4231_v61  ;;  %v4813_v57 = vld [vmem:[%s6870_s5 + $0x124] sm:$0xf0]  ;;  %v4811_v50 = vld [vmem:[%s6870_s5 + $0x114] sm:$0xf0] }
 0x244   :  { %v1630_v60 = vpop.f32.mrf.mxu2  ;;  %v4215_v61 = vor.u32 %v4890_v63, %v4212_v11 }
 0x245   :  { %v1631_v39 = vadd.f32 %v1630_v60, %v1602_v51  ;;  %v1659_v46 = vpop.f32.mrf.mxu3  ;;  %2313 = vmatmul.bf16.gmra.mxu3 %v6113_v31  ;;  %2400 = vmatmul.bf16.gmra.mxu2 %v5888_v38  ;;  %v4815_v38 = vld [vmem:[%s6870_s5 + $0x134] sm:$0xf0]  ;;  %v4271_v51 = vor.u32 %v4776_v52, %v4268_v56  ;;  %v4796_v60 = vld [vmem:[%s6870_s5 + $0xa4] sm:$0xf] }
 0x246   :  { %2807 = vmatmul.bf16.gmra.mxu1 %v5735_v45  ;;  %v4419_v19 = vor.u32 %v4815_v38, %v4418_v48 }
 0x247   :  { %v1660_v16 = vadd.f32 %v1659_v46, %v1631_v39  ;;  %2913 = vmatpush.bf16.msra.mxu1 %v4367_v8  ;;  %2888 = vmatpush.bf16.msra.mxu0 %v4271_v51  ;;  %v4402_v39 = vld [vmem:[%s6870_s5 + $0x110] sm:$0xf]  ;;  %v4888_v51 = vld [vmem:[#allocation4 + $0x184] sm:$0xf] }
 0x248   :  { %v2232_v15 = vpop.f32.mrf.mxu0  ;;  %2827 = vmatpush.bf16.msra.mxu2 %v4419_v19  ;;  %2421 = vmatpush.bf16.msrb.mxu3 %v4223_v13  ;;  %v4403_v37 = vor.u32 %v4811_v50, %v4402_v39  ;;  %v4343_v19 = vor.u32 %v4794_v23, %v4340_v53 }
 0x249   :  { %v6155_v49 = vmax.f32 %v1660_v16, 0.0  ;;  %v1578_v16 = vadd.f32 %v5965_v42, %v5976_v25 }
 0x24a   :  { %v2258_v30 = vpop.f32.mrf.mxu1 }
 0x24b   :  { %v1716_v44 = vadd.f32 %v6155_v49, %v6055_v36  ;;  %v6163_v54 = vadd.f32 %v2258_v30, %v2229_v59  ;;  %2783 = vmatmul.bf16.gmra.mxu0 %v5631_v33  ;;  %2914 = vmatpush.bf16.msra.mxu1 %v4359_v62  ;;  %v4411_v36 = vor.u32 %v4813_v57, %v4410_v0  ;;  %v4332_v0 = vld [vmem:[%s6870_s5 + $0x88] sm:$0xf0] }
 0x24c   :  { %v1632_v8 = vpop.f32.mrf.mxu2  ;;  %v4351_v59 = vor.u32 %v4796_v60, %v4348_v4  ;;  %v1607_v52 = vadd.f32 %v5978_v24, %v1578_v16  ;;  %2422 = vmatpush.bf16.msrb.mxu3 %v4215_v61  ;;  %v4792_v24 = vld [vmem:[%s6870_s5 + $0x84] sm:$0xf] }
 0x24d   :  { %v1633_v46 = vadd.f32 %v1632_v8, %v1604_v18  ;;  %v1661_v32 = vpop.f32.mrf.mxu3  ;;  %v6187_v48 = vpack.c.bf16 %v1716_v44, %v1712_v20  ;;  %2828 = vmatpush.bf16.msra.mxu2 %v4411_v36  ;;  %v4204_v18 = vld [vmem:[#allocation4 + $0x188] sm:$0xf0]  ;;  %v4394_v20 = vld [vmem:[%s6870_s5 + $0x100] sm:$0xf]  ;;  %v4335_v57 = vor.u32 %v4792_v24, %v4332_v0  ;;  %v1580_v8 = vadd.f32 %v5980_v2, %v5976_v25 }
 0x24e   :  { %v4207_v1 = vor.u32 %v4888_v51, %v4204_v18  ;;  %v4395_v13 = vor.u32 %v4809_v5, %v4394_v20  ;;  %v4506_v0 = vld [vmem:[%s6870_s5 + $0x1e0] sm:$0xf] }
 0x24f   :  { %v1662_v38 = vadd.f32 %v1661_v32, %v1633_v46  ;;  %2915 = vmatpush.bf16.msra.mxu1 %v4351_v59  ;;  %v1609_v11 = vadd.f32 %v5997_v12, %v1580_v8  ;;  %v4818_v8 = vld [vmem:[%s6870_s5 + $0x154] sm:$0xf] }
 0x250   :  { %v2234_v28 = vpop.f32.mrf.mxu0  ;;  %2423 = vmatpush.bf16.msrb.mxu3 %v4207_v1 }
 0x251   :  { %v1692_v62 = vmax.f32 %v1662_v38, 0.0  ;;  %2829 = vmatpush.bf16.msra.mxu2 %v4403_v37 }
 0x252   :  { %v2261_v56 = vpop.f32.mrf.mxu1 }
 0x253   :  { %v6195_v42 = vadd.f32 %v2261_v56, %v2232_v15  ;;  %v6198_v30 = vpack.c.bf16 %v1692_v62, %v6155_v49  ;;  %v1720_v15 = vadd.f32 %v1692_v62, %v6103_v58  ;;  %2916 = vmatpush.bf16.msra.mxu1 %v4343_v19 }
 0x254   :  { %v1635_v44 = vpop.f32.mrf.mxu2 }
 0x255   :  { %v1636_v60 = vadd.f32 %v1635_v44, %v1607_v52  ;;  %v1664_v4 = vpop.f32.mrf.mxu3  ;;  %2318 = vmatmul.bf16.gmra.mxu3 %v6198_v30  ;;  %2405 = vmatmul.bf16.gmra.mxu2 %v5950_v40  ;;  %v4820_v44 = vld [vmem:[%s6870_s5 + $0x164] sm:$0xf] }
 0x256   :  { %2812 = vmatmul.bf16.gmra.mxu1 %v5763_v3  ;;  %2830 = vmatpush.bf16.msra.mxu2 %v4395_v13  ;;  %v4444_v13 = vld [vmem:[%s6870_s5 + $0x168] sm:$0xf0] }
 0x257   :  { %v1665_v36 = vadd.f32 %v1664_v4, %v1636_v60  ;;  %2917 = vmatpush.bf16.msra.mxu1 %v4335_v57  ;;  %v4498_v57 = vld [vmem:[%s6870_s5 + $0x1d0] sm:$0xf]  ;;  %v4835_v60 = vld [vmem:[%s6870_s5 + $0x1d4] sm:$0xf0]  ;;  %v4447_v4 = vor.u32 %v4820_v44, %v4444_v13 }
 0x258   :  { %v2237_v59 = vpop.f32.mrf.mxu0 }
 0x259   :  { %v1696_v58 = vmax.f32 %v1665_v36, 0.0  ;;  %v4499_v36 = vor.u32 %v4835_v60, %v4498_v57  ;;  %v4458_v60 = vld [vmem:[%s6870_s5 + $0x180] sm:$0xf] }
 0x25a   :  { %v2263_v63 = vpop.f32.mrf.mxu1 }
 0x25b   :  { %v1724_v39 = vadd.f32 %v1696_v58, %v6155_v49  ;;  %v1732_v46 = vadd.f32 %v1696_v58, %v6015_v29  ;;  %v6218_v32 = vadd.f32 %v2263_v63, %v2234_v28  ;;  %2788 = vmatmul.bf16.gmra.mxu0 %v5653_v10 }
 0x25c   :  { %v1637_v40 = vpop.f32.mrf.mxu2 }
 0x25d   :  { %v1638_v50 = vadd.f32 %v1637_v40, %v1609_v11  ;;  %v6221_v23 = vpack.c.bf16 %v1724_v39, %v1720_v15  ;;  %v1666_v25 = vpop.f32.mrf.mxu3  ;;  %v4837_v15 = vld [vmem:[%s6870_s5 + $0x1e4] sm:$0xf0]  ;;  %v4490_v39 = vld [vmem:[%s6870_s5 + $0x1c0] sm:$0xf]  ;;  %v4816_v40 = vld [vmem:[%s6870_s5 + $0x144] sm:$0xf] }
 0x25f   :  { %v1667_v2 = vadd.f32 %v1666_v25, %v1638_v50 }
 0x260   :  { %v2239_v53 = vpop.f32.mrf.mxu0 }
 0x261   :  { %v1700_v16 = vmax.f32 %v1667_v2, 0.0 }
 0x262   :  { %v2266_v61 = vpop.f32.mrf.mxu1 }
 0x263   :  { %v1704_v38 = vadd.f32 %v1700_v16, %v6017_v9  ;;  %v6224_v12 = vadd.f32 %v2266_v61, %v2237_v59  ;;  %v6226_v49 = vpack.c.bf16 %v1700_v16, %v1696_v58  ;;  %v1728_v29 = vadd.f32 %v1700_v16, %v1692_v62  ;;  %v4482_v16 = vld [vmem:[%s6870_s5 + $0x1b0] sm:$0xf]  ;;  %v4831_v61 = vld [vmem:[%s6870_s5 + $0x1b4] sm:$0xf0] }
 0x265   :  { %v6229_v37 = vpack.c.bf16 %v6063_v34, %v1704_v38  ;;  %2323 = vmatmul.bf16.gmra.mxu3 %v6226_v49  ;;  %2410 = vmatmul.bf16.gmra.mxu2 %v5985_v35  ;;  %v6233_v28 = vpack.c.bf16 %v1732_v46, %v1728_v29  ;;  %v4514_v35 = vld [vmem:[%s6870_s5 + $0x1f0] sm:$0xf]  ;;  %v4839_v34 = vld [vmem:[%s6870_s5 + $0x1f4] sm:$0xf0]  ;;  %v4833_v46 = vld [vmem:[%s6870_s5 + $0x1c4] sm:$0xf0]  ;;  %v4483_v29 = vor.u32 %v4831_v61, %v4482_v16 }
 0x266   :  { %2817 = vmatmul.bf16.gmra.mxu1 %v5781_v26  ;;  %v4515_v18 = vor.u32 %v4839_v34, %v4514_v35  ;;  %v4491_v25 = vor.u32 %v4833_v46, %v4490_v39  ;;  %v4814_v38 = vld [vmem:[%s6870_s5 + $0x134] sm:$0xf]  ;;  %v4474_v35 = vld [vmem:[%s6870_s5 + $0x1a0] sm:$0xf]  ;;  %v4829_v34 = vld [vmem:[%s6870_s5 + $0x1a4] sm:$0xf0] }
 0x268   :  { %v2338_v19 = vpop.f32.mrf.mxu0  ;;  %2852 = vmatpush.bf16.msra.mxu3 %v4515_v18  ;;  %v4412_v18 = vld [vmem:[%s6870_s5 + $0x128] sm:$0xf0] }
 0x26a   :  { %v2268_v52 = vpop.f32.mrf.mxu1 }
 0x26b   :  { %v6236_v56 = vadd.f32 %v2268_v52, %v2239_v53  ;;  %2889 = vmatmul.bf16.vlgmr.msra.gmra.mxu0 %v5651_v47  ;;  %v4822_v47 = vld [vmem:[%s6870_s5 + $0x174] sm:$0xf] }
 0x270   :  { %v6239_v9 = vpop.f32.mrf.mxu0 }
 0x272   :  { %v2367_v62 = vpop.f32.mrf.mxu1 }
 0x273   :  { %v6241_v51 = vadd.f32 %v2367_v62, %v2338_v19 }
 0x275   :  { %2424 = vmatmul.bf16.vlgmr.msrb.gmra.mxu3 %v6022_v21  ;;  %2831 = vmatmul.bf16.vlgmr.msra.gmra.mxu2 %v5988_v41  ;;  %v4452_v21 = vld [vmem:[%s6870_s5 + $0x178] sm:$0xf0] }
 0x276   :  { %2918 = vmatmul.bf16.vlgmr.msra.gmra.mxu1 %v5778_v17  ;;  %v4455_v1 = vor.u32 %v4822_v47, %v4452_v21  ;;  %v4812_v47 = vld [vmem:[%s6870_s5 + $0x124] sm:$0xf]  ;;  %v4466_v21 = vld [vmem:[%s6870_s5 + $0x190] sm:$0xf] }
 0x278   :  { %v2280_v20 = vpop.f32.mrf.mxu2  ;;  %v2343_v5 = vpop.f32.mrf.mxu0  ;;  %2939 = vmatpush.bf16.msrb.mxu2 %v4455_v1  ;;  %v4415_v1 = vor.u32 %v4812_v47, %v4412_v18  ;;  %v4832_v47 = vld [vmem:[%s6870_s5 + $0x1c4] sm:$0xf] }
 0x279   :  { %v6259_v17 = vadd.f32 %v2280_v20, %v6024_v14  ;;  %v4507_v14 = vor.u32 %v4837_v15, %v4506_v0  ;;  %v4827_v20 = vld [vmem:[%s6870_s5 + $0x194] sm:$0xf0] }
 0x27a   :  { %v6261_v24 = vpop.f32.mrf.mxu1  ;;  %v4467_v15 = vor.u32 %v4827_v20, %v4466_v21  ;;  %v4830_v21 = vld [vmem:[%s6870_s5 + $0x1b4] sm:$0xf] }
 0x27b   :  { %2894 = vmatmul.bf16.gmra.mxu0 %v5601_v22  ;;  %v4436_v22 = vld [vmem:[%s6870_s5 + $0x158] sm:$0xf0]  ;;  %2853 = vmatpush.bf16.msra.mxu3 %v4507_v14 }
 0x27c   :  { %2940 = vmatpush.bf16.msrb.mxu2 %v4447_v4  ;;  %v4439_v59 = vor.u32 %v4818_v8, %v4436_v22  ;;  %v4825_v4 = vld [vmem:[%s6870_s5 + $0x184] sm:$0xf0]  ;;  %v4808_v8 = vld [vmem:[%s6870_s5 + $0x104] sm:$0xf] }
 0x27f   :  { %2854 = vmatpush.bf16.msra.mxu3 %v4499_v36  ;;  %v4459_v36 = vor.u32 %v4825_v4, %v4458_v60 }
 0x280   :  { %v2282_v58 = vpop.f32.mrf.mxu2  ;;  %2941 = vmatpush.bf16.msrb.mxu2 %v4439_v59  ;;  %v6305_v2 = vpop.f32.mrf.mxu0 }
 0x281   :  { %v6289_v63 = vadd.f32 %v2282_v58, %v6065_v27  ;;  %v4428_v27 = vld [vmem:[%s6870_s5 + $0x148] sm:$0xf0] }
 0x282   :  { %v2372_v11 = vpop.f32.mrf.mxu1  ;;  %v4431_v53 = vor.u32 %v4816_v40, %v4428_v27 }
 0x283   :  { %v6300_v50 = vadd.f32 %v2372_v11, %v2343_v5  ;;  %2855 = vmatpush.bf16.msra.mxu3 %v4491_v25  ;;  %v4810_v5 = vld [vmem:[%s6870_s5 + $0x114] sm:$0xf] }
 0x284   :  { %2942 = vmatpush.bf16.msrb.mxu2 %v4431_v53 }
 0x285   :  { %2429 = vmatmul.bf16.gmra.mxu3 %v6113_v31  ;;  %2836 = vmatmul.bf16.gmra.mxu2 %v5936_v55  ;;  %v4420_v31 = vld [vmem:[%s6870_s5 + $0x138] sm:$0xf0] }
 0x286   :  { %2923 = vmatmul.bf16.gmra.mxu1 %v5735_v45  ;;  %v4423_v19 = vor.u32 %v4814_v38, %v4420_v31 }
 0x287   :  { %2856 = vmatpush.bf16.msra.mxu3 %v4483_v29  ;;  %v4508_v29 = vld [vmem:[%s6870_s5 + $0x1e8] sm:$0xf0] }
 0x288   :  { %v2285_v45 = vpop.f32.mrf.mxu2  ;;  %2943 = vmatpush.bf16.msrb.mxu2 %v4423_v19  ;;  %v2348_v0 = vpop.f32.mrf.mxu0 }
 0x289   :  { %v6323_v52 = vadd.f32 %v2285_v45, %v6109_v43  ;;  %v4475_v43 = vor.u32 %v4829_v34, %v4474_v35  ;;  %v4834_v45 = vld [vmem:[%s6870_s5 + $0x1d4] sm:$0xf] }
 0x28a   :  { %v6325_v62 = vpop.f32.mrf.mxu1 }
 0x28b   :  { %2899 = vmatmul.bf16.gmra.mxu0 %v5631_v33  ;;  %v4404_v33 = vld [vmem:[%s6870_s5 + $0x118] sm:$0xf0]  ;;  %2857 = vmatpush.bf16.msra.mxu3 %v4475_v43  ;;  %v4492_v43 = vld [vmem:[%s6870_s5 + $0x1c8] sm:$0xf0] }
 0x28c   :  { %2944 = vmatpush.bf16.msrb.mxu2 %v4415_v1  ;;  %v4407_v44 = vor.u32 %v4810_v5, %v4404_v33  ;;  %v4495_v18 = vor.u32 %v4832_v47, %v4492_v43 }
 0x28f   :  { %2858 = vmatpush.bf16.msra.mxu3 %v4467_v15  ;;  %v4476_v15 = vld [vmem:[%s6870_s5 + $0x1a8] sm:$0xf0] }
 0x290   :  { %v2287_v14 = vpop.f32.mrf.mxu2  ;;  %2945 = vmatpush.bf16.msrb.mxu2 %v4407_v44  ;;  %v6372_v58 = vpop.f32.mrf.mxu0 }
 0x291   :  { %v6353_v13 = vadd.f32 %v2287_v14, %v6163_v54  ;;  %v4396_v54 = vld [vmem:[%s6870_s5 + $0x108] sm:$0xf0]  ;;  %v4826_v14 = vld [vmem:[%s6870_s5 + $0x194] sm:$0xf] }
 0x292   :  { %v2377_v57 = vpop.f32.mrf.mxu1  ;;  %v4399_v59 = vor.u32 %v4808_v8, %v4396_v54  ;;  %v4824_v8 = vld [vmem:[%s6870_s5 + $0x184] sm:$0xf] }
 0x293   :  { %v6364_v22 = vadd.f32 %v2377_v57, %v2348_v0  ;;  %2859 = vmatpush.bf16.msra.mxu3 %v4459_v36  ;;  %v4460_v36 = vld [vmem:[%s6870_s5 + $0x188] sm:$0xf0] }
 0x294   :  { %2946 = vmatpush.bf16.msrb.mxu2 %v4399_v59  ;;  %v4463_v54 = vor.u32 %v4824_v8, %v4460_v36 }
 0x295   :  { %2434 = vmatmul.bf16.gmra.mxu3 %v6198_v30  ;;  %2841 = vmatmul.bf16.gmra.mxu2 %v5971_v6 }
 0x296   :  { %2928 = vmatmul.bf16.gmra.mxu1 %v5763_v3 }
 0x298   :  { %v2290_v11 = vpop.f32.mrf.mxu2  ;;  %v2353_v30 = vpop.f32.mrf.mxu0 }
 0x299   :  { %v6375_v39 = vadd.f32 %v2290_v11, %v6195_v42 }
 0x29a   :  { %v6377_v46 = vpop.f32.mrf.mxu1 }
 0x29b   :  { %2904 = vmatmul.bf16.gmra.mxu0 %v5653_v10 }
 0x2a0   :  { %v2292_v40 = vpop.f32.mrf.mxu2 }
 0x2a1   :  { %v6381_v25 = vadd.f32 %v2292_v40, %v6218_v32  ;;  %v4838_v32 = vld [vmem:[%s6870_s5 + $0x1f4] sm:$0xf] }
 0x2a2   :  { %v2382_v27 = vpop.f32.mrf.mxu1 }
 0x2a3   :  { %v6383_v53 = vadd.f32 %v2382_v27, %v2353_v30 }
 0x2a5   :  { %2439 = vmatmul.bf16.gmra.mxu3 %v6226_v49  ;;  %2846 = vmatmul.bf16.gmra.mxu2 %v5992_v7 }
 0x2a6   :  { %2933 = vmatmul.bf16.gmra.mxu1 %v5781_v26  ;;  %v4516_v26 = vld [vmem:[%s6870_s5 + $0x1f8] sm:$0xf0] }
 0x2a7   :  { %v4519_v49 = vor.u32 %v4838_v32, %v4516_v26 }
 0x2a8   :  { %v2295_v3 = vpop.f32.mrf.mxu2 }
 0x2a9   :  { %v6389_v42 = vadd.f32 %v2295_v3, %v6224_v12  ;;  %2968 = vmatpush.bf16.msrb.mxu3 %v4519_v49 }
 0x2b0   :  { %v2297_v16 = vpop.f32.mrf.mxu2 }
 0x2b1   :  { %v6392_v10 = vadd.f32 %v2297_v16, %v6236_v56 }
 0x2b5   :  { %2860 = vmatmul.bf16.vlgmr.msra.gmra.mxu3 %v6229_v37  ;;  %2947 = vmatmul.bf16.vlgmr.msrb.gmra.mxu2 %v5988_v41  ;;  %v4836_v41 = vld [vmem:[%s6870_s5 + $0x1e4] sm:$0xf] }
 0x2b6   :  { %v4511_v31 = vor.u32 %v4836_v41, %v4508_v29  ;;  %v6494_v41 = vpop.f32.mrf.mxu1 }
 0x2b8   :  { %v2309_v61 = vpop.f32.mrf.mxu3  ;;  %v2396_v12 = vpop.f32.mrf.mxu2  ;;  %2969 = vmatpush.bf16.msrb.mxu3 %v4511_v31 }
 0x2b9   :  { %v6403_v38 = vadd.f32 %v2309_v61, %v6259_v17  ;;  %v2397_v56 = vadd.f32 %v2396_v12, %v6241_v51  ;;  %v4500_v17 = vld [vmem:[%s6870_s5 + $0x1d8] sm:$0xf0] }
 0x2ba   :  { %v4503_v19 = vor.u32 %v4834_v45, %v4500_v17 }
 0x2bc   :  { %2970 = vmatpush.bf16.msrb.mxu3 %v4503_v19 }
 0x2c0   :  { %v2311_v51 = vpop.f32.mrf.mxu3  ;;  %v6418_v35 = vpop.f32.mrf.mxu2  ;;  %2971 = vmatpush.bf16.msrb.mxu3 %v4495_v18 }
 0x2c1   :  { %v6421_v34 = vadd.f32 %v2311_v51, %v6289_v63  ;;  %v4484_v63 = vld [vmem:[%s6870_s5 + $0x1b8] sm:$0xf0] }
 0x2c2   :  { %v4487_v20 = vor.u32 %v4830_v21, %v4484_v63 }
 0x2c4   :  { %2972 = vmatpush.bf16.msrb.mxu3 %v4487_v20 }
 0x2c5   :  { %2865 = vmatmul.bf16.gmra.mxu3 %v6187_v48  ;;  %2952 = vmatmul.bf16.gmra.mxu2 %v5936_v55  ;;  %v4828_v55 = vld [vmem:[%s6870_s5 + $0x1a4] sm:$0xf] }
 0x2c6   :  { %v4479_v44 = vor.u32 %v4828_v55, %v4476_v15 }
 0x2c8   :  { %v2314_v1 = vpop.f32.mrf.mxu3  ;;  %v2401_v5 = vpop.f32.mrf.mxu2  ;;  %2973 = vmatpush.bf16.msrb.mxu3 %v4479_v44 }
 0x2c9   :  { %v6438_v33 = vadd.f32 %v2314_v1, %v6323_v52  ;;  %v2402_v0 = vadd.f32 %v2401_v5, %v6300_v50  ;;  %v4468_v52 = vld [vmem:[%s6870_s5 + $0x198] sm:$0xf0] }
 0x2ca   :  { %v4471_v50 = vor.u32 %v4826_v14, %v4468_v52  ;;  %v4578_v14 = vld [vmem:[%s6873_s8 + $0x70] sm:$0xf]  ;;  %v4919_v52 = vld [vmem:[%s6873_s8 + $0x74] sm:$0xf0] }
 0x2cb   :  { %v4579_v8 = vor.u32 %v4919_v52, %v4578_v14 }
 0x2cc   :  { %2974 = vmatpush.bf16.msrb.mxu3 %v4471_v50  ;;  %v4918_v50 = vld [vmem:[%s6873_s8 + $0x74] sm:$0xf] }
 0x2cd   :  { %3273 = vmatpush.bf16.msrb.mxu0 %v4579_v8 }
 0x2d0   :  { %v2316_v57 = vpop.f32.mrf.mxu3  ;;  %v6453_v60 = vpop.f32.mrf.mxu2  ;;  %2975 = vmatpush.bf16.msrb.mxu3 %v4463_v54 }
 0x2d1   :  { %v6456_v4 = vadd.f32 %v2316_v57, %v6353_v13 }
 0x2d5   :  { %2870 = vmatmul.bf16.gmra.mxu3 %v6221_v23  ;;  %2957 = vmatmul.bf16.gmra.mxu2 %v5971_v6 }
 0x2d8   :  { %v2319_v59 = vpop.f32.mrf.mxu3  ;;  %v2406_v11 = vpop.f32.mrf.mxu2 }
 0x2d9   :  { %v6467_v13 = vadd.f32 %v2319_v59, %v6375_v39  ;;  %v2407_v40 = vadd.f32 %v2406_v11, %v6364_v22 }
 0x2e0   :  { %v2321_v30 = vpop.f32.mrf.mxu3  ;;  %v6470_v27 = vpop.f32.mrf.mxu2 }
 0x2e1   :  { %v6473_v3 = vadd.f32 %v2321_v30, %v6381_v25  ;;  %v4917_v30 = vld [vmem:[%s6873_s8 + $0x64] sm:$0xf0] }
 0x2e5   :  { %2875 = vmatmul.bf16.gmra.mxu3 %v6233_v28  ;;  %2962 = vmatmul.bf16.gmra.mxu2 %v5992_v7  ;;  %v6490_v7 = vpop.f32.mrf.mxu0 }
 0x2e8   :  { %v2324_v16 = vpop.f32.mrf.mxu3  ;;  %v2411_v6 = vpop.f32.mrf.mxu2 }
 0x2e9   :  { %v6478_v32 = vadd.f32 %v2324_v16, %v6389_v42  ;;  %v2412_v39 = vadd.f32 %v2411_v6, %v6383_v53 }
 0x2ed   :  { %v2774_v29 = vpop.f32.mrf.mxu0 }
 0x2ee   :  { %v2775_v15 = vadd.f32 %v2774_v29, %v6403_v38  ;;  %v4580_v38 = vld [vmem:[%s6873_s8 + $0x78] sm:$0xf0] }
 0x2ef   :  { %v4583_v54 = vor.u32 %v4918_v50, %v4580_v38 }
 0x2f0   :  { %v2326_v26 = vpop.f32.mrf.mxu3  ;;  %v6496_v53 = vpop.f32.mrf.mxu2 }
 0x2f1   :  { %v6482_v22 = vadd.f32 %v2326_v26, %v6392_v10  ;;  %3331 = vmatpush.bf16.msra.mxu2 %v4583_v54  ;;  %v4572_v26 = vld [vmem:[%s6873_s8 + $0x68] sm:$0xf0]  ;;  %v4912_v54 = vld [vmem:[%s6873_s8 + $0x44] sm:$0xf] }
 0x2f5   :  { %2976 = vmatmul.bf16.vlgmr.msrb.gmra.mxu3 %v6229_v37  ;;  %v2803_v37 = vpop.f32.mrf.mxu1 }
 0x2f6   :  { %v2804_v11 = vadd.f32 %v2803_v37, %v2775_v15  ;;  %v4564_v15 = vld [vmem:[%s6873_s8 + $0x58] sm:$0xf0] }
 0x2f8   :  { %v2425_v49 = vpop.f32.mrf.mxu3 }
 0x2f9   :  { %v6485_v25 = vadd.f32 %v2425_v49, %v2397_v56  ;;  %v2832_v56 = vpop.f32.mrf.mxu2 }
 0x2fa   :  { %v2833_v16 = vadd.f32 %v2832_v56, %v2804_v11  ;;  %v4562_v56 = vld [vmem:[%s6873_s8 + $0x50] sm:$0xf]  ;;  %v4556_v11 = vld [vmem:[%s6873_s8 + $0x48] sm:$0xf0] }
 0x2fd   :  { %v2805_v17 = vpop.f32.mrf.mxu1 }
 0x300   :  { %v6487_v61 = vpop.f32.mrf.mxu3 }
 0x301   :  { %v2834_v19 = vpop.f32.mrf.mxu2 }
 0x305   :  { %2981 = vmatmul.bf16.gmra.mxu3 %v6187_v48  ;;  %v2776_v48 = vpop.f32.mrf.mxu0  ;;  %v2808_v18 = vpop.f32.mrf.mxu1 }
 0x306   :  { %v2777_v57 = vadd.f32 %v2776_v48, %v6421_v34  ;;  %v4570_v34 = vld [vmem:[%s6873_s8 + $0x60] sm:$0xf] }
 0x308   :  { %v2430_v12 = vpop.f32.mrf.mxu3  ;;  %v2806_v6 = vadd.f32 %v2805_v17, %v2777_v57  ;;  %v4915_v17 = vld [vmem:[%s6873_s8 + $0x54] sm:$0xf0] }
 0x309   :  { %v6492_v42 = vadd.f32 %v2430_v12, %v2402_v0  ;;  %v2837_v63 = vpop.f32.mrf.mxu2 }
 0x30a   :  { %v2835_v29 = vadd.f32 %v2834_v19, %v2806_v6 }
 0x30d   :  { %v2779_v47 = vpop.f32.mrf.mxu0 }
 0x30e   :  { %v2780_v59 = vadd.f32 %v2779_v47, %v6438_v33  ;;  %v4916_v33 = vld [vmem:[%s6873_s8 + $0x64] sm:$0xf]  ;;  %v4914_v47 = vld [vmem:[%s6873_s8 + $0x54] sm:$0xf] }
 0x30f   :  { %v4575_v12 = vor.u32 %v4916_v33, %v4572_v26  ;;  %v4567_v50 = vor.u32 %v4914_v47, %v4564_v15  ;;  %v4911_v26 = vld [vmem:[%s6873_s8 + $0x34] sm:$0xf0] }
 0x310   :  { %v6498_v10 = vpop.f32.mrf.mxu3  ;;  %v2809_v37 = vadd.f32 %v2808_v18, %v2780_v59 }
 0x311   :  { %v6510_v5 = vpop.f32.mrf.mxu2  ;;  %3332 = vmatpush.bf16.msra.mxu2 %v4575_v12  ;;  %v4910_v12 = vld [vmem:[%s6873_s8 + $0x34] sm:$0xf] }
 0x315   :  { %2986 = vmatmul.bf16.gmra.mxu3 %v6221_v23  ;;  %v2781_v20 = vpop.f32.mrf.mxu0  ;;  %v2810_v23 = vpop.f32.mrf.mxu1  ;;  %3333 = vmatpush.bf16.msra.mxu2 %v4567_v50  ;;  %v4909_v50 = vld [vmem:[%s6873_s8 + $0x24] sm:$0xf0] }
 0x316   :  { %v2782_v57 = vadd.f32 %v2781_v20, %v6456_v4 }
 0x318   :  { %v2435_v31 = vpop.f32.mrf.mxu3 }
 0x319   :  { %v6501_v45 = vadd.f32 %v2435_v31, %v2407_v40  ;;  %v6536_v40 = vld [vmem:[%s6872_s7] sm:$0x3] }
 0x31a   :  { %v6553_v48 = vperm.slane %v6536_v40, 0 }
 0x31d   :  { %v6512_v55 = vpop.f32.mrf.mxu0  ;;  %v6515_v44 = vpop.f32.mrf.mxu1 }
 0x320   :  { %v6503_v51 = vpop.f32.mrf.mxu3 }
 0x325   :  { %2991 = vmatmul.bf16.gmra.mxu3 %v6233_v28  ;;  %v6517_v28 = vpop.f32.mrf.mxu2  ;;  %v6550_v49 = vpop.f32.mrf.mxu0 }
 0x326   :  { %v6564_v19 = vpop.f32.mrf.mxu1 }
 0x328   :  { %v2440_v43 = vpop.f32.mrf.mxu3 }
 0x329   :  { %v6506_v21 = vadd.f32 %v2440_v43, %v2412_v39  ;;  %v4571_v39 = vor.u32 %v4917_v30, %v4570_v34  ;;  %v2838_v43 = vadd.f32 %v2837_v63, %v2809_v37  ;;  %v4554_v63 = vld [vmem:[%s6873_s8 + $0x40] sm:$0xf]  ;;  %v4559_v34 = vor.u32 %v4912_v54, %v4556_v11  ;;  %v4530_v54 = vld [vmem:[%s6873_s8 + $0x10] sm:$0xf] }
 0x32a   :  { %v2811_v30 = vadd.f32 %v2810_v23, %v2782_v57 }
 0x32b   :  { %3274 = vmatpush.bf16.msrb.mxu0 %v4571_v39  ;;  %3334 = vmatpush.bf16.msra.mxu2 %v4559_v34  ;;  %v4546_v39 = vld [vmem:[%s6873_s8 + $0x30] sm:$0xf]  ;;  %v4532_v34 = vld [vmem:[%s6873_s8 + $0x18] sm:$0xf0] }
 0x32c   :  { %v2840_v23 = vadd.f32 %v6510_v5, %v2811_v30 }
 0x32d   :  { %v6569_v14 = vpop.f32.mrf.mxu2  ;;  %v2789_v6 = vpop.f32.mrf.mxu0 }
 0x330   :  { %v6508_v1 = vpop.f32.mrf.mxu3 }
 0x335   :  { %v2847_v5 = vpop.f32.mrf.mxu2  ;;  %v2791_v30 = vpop.f32.mrf.mxu0 }
 0x338   :  { %v2861_v0 = vpop.f32.mrf.mxu3 }
 0x339   :  { %v2862_v31 = vadd.f32 %v2861_v0, %v2833_v16  ;;  %v4563_v0 = vor.u32 %v4915_v17, %v4562_v56  ;;  %v4548_v56 = vld [vmem:[%s6873_s8 + $0x38] sm:$0xf0] }
 0x33a   :  { %v4551_v47 = vor.u32 %v4910_v12, %v4548_v56  ;;  %v2787_v12 = vadd.f32 %v6550_v49, %v6473_v3  ;;  %v4904_v56 = vld [vmem:[%s6873_s8 + $0x4] sm:$0xf]  ;;  %v4524_v49 = vld [vmem:[%s6873_s8 + $0x8] sm:$0xf0] }
 0x33b   :  { %v3003_v8 = vadd.f32 %v6553_v48, %v2862_v31  ;;  %3275 = vmatpush.bf16.msrb.mxu0 %v4563_v0  ;;  %v4547_v31 = vor.u32 %v4911_v26, %v4546_v39 }
 0x33c   :  { %3335 = vmatpush.bf16.msra.mxu2 %v4551_v47 }
 0x33d   :  { %v6587_v33 = vmax.f32 %v3003_v8, 0.0  ;;  %v4540_v8 = vld [vmem:[%s6873_s8 + $0x28] sm:$0xf0] }
 0x340   :  { %v2863_v36 = vpop.f32.mrf.mxu3 }
 0x341   :  { %v2864_v18 = vadd.f32 %v2863_v36, %v2835_v29  ;;  %v4913_v36 = vld [vmem:[%s6873_s8 + $0x44] sm:$0xf0] }
 0x342   :  { %v4555_v20 = vor.u32 %v4913_v36, %v4554_v63 }
 0x343   :  { %v3005_v59 = vadd.f32 %v6553_v48, %v2864_v18  ;;  %v2818_v18 = vpop.f32.mrf.mxu1 }
 0x344   :  { %3276 = vmatpush.bf16.msrb.mxu0 %v4555_v20 }
 0x345   :  { %v6599_v29 = vmax.f32 %v3005_v59, 0.0  ;;  %v4907_v59 = vld [vmem:[%s6873_s8 + $0x14] sm:$0xf0] }
 0x348   :  { %v2866_v52 = vpop.f32.mrf.mxu3  ;;  %3277 = vmatpush.bf16.msrb.mxu0 %v4547_v31  ;;  %v4905_v31 = vld [vmem:[%s6873_s8 + $0x4] sm:$0xf0] }
 0x349   :  { %v2867_v38 = vadd.f32 %v2866_v52, %v2838_v43  ;;  %v2785_v43 = vadd.f32 %v6512_v55, %v6467_v13  ;;  %v4538_v52 = vld [vmem:[%s6873_s8 + $0x20] sm:$0xf]  ;;  %v4908_v13 = vld [vmem:[%s6873_s8 + $0x24] sm:$0xf] }
 0x34a   :  { %v4539_v57 = vor.u32 %v4909_v50, %v4538_v52  ;;  %v2816_v52 = vadd.f32 %v6564_v19, %v2787_v12 }
 0x34b   :  { %v3007_v4 = vadd.f32 %v6553_v48, %v2867_v38  ;;  %v4543_v38 = vor.u32 %v4908_v13, %v4540_v8  ;;  %v2814_v63 = vadd.f32 %v6515_v44, %v2785_v43  ;;  %v4531_v44 = vor.u32 %v4907_v59, %v4530_v54  ;;  %v2849_v43 = vpop.f32.mrf.mxu2  ;;  %v2890_v54 = vpop.f32.mrf.mxu0 }
 0x34c   :  { %3278 = vmatpush.bf16.msrb.mxu0 %v4539_v57  ;;  %v2845_v13 = vadd.f32 %v6569_v14, %v2816_v52  ;;  %v2790_v8 = vadd.f32 %v2789_v6, %v6478_v32  ;;  %v2792_v14 = vadd.f32 %v2791_v30, %v6482_v22 }
 0x34d   :  { %v3023_v16 = vmax.f32 %v3007_v4, 0.0  ;;  %3336 = vmatpush.bf16.msra.mxu2 %v4543_v38  ;;  %v4906_v4 = vld [vmem:[%s6873_s8 + $0x14] sm:$0xf]  ;;  %v2843_v20 = vadd.f32 %v6517_v28, %v2814_v63  ;;  %v4522_v28 = vld [vmem:[%s6873_s8] sm:$0xf] }
 0x34e   :  { %v4535_v26 = vor.u32 %v4906_v4, %v4532_v34  ;;  %v4523_v3 = vor.u32 %v4905_v31, %v4522_v28 }
 0x34f   :  { %v3037_v37 = vadd.f32 %v3023_v16, %v6587_v33 }
 0x350   :  { %v2868_v17 = vpop.f32.mrf.mxu3  ;;  %3279 = vmatpush.bf16.msrb.mxu0 %v4531_v44 }
 0x351   :  { %v6608_v0 = vadd.f32 %v3037_v37, %v6599_v29  ;;  %v2869_v15 = vadd.f32 %v2868_v17, %v2840_v23  ;;  %3337 = vmatpush.bf16.msra.mxu2 %v4535_v26  ;;  %v2820_v17 = vpop.f32.mrf.mxu1 }
 0x353   :  { %v3009_v55 = vadd.f32 %v6553_v48, %v2869_v15  ;;  %v4527_v15 = vor.u32 %v4904_v56, %v4524_v49  ;;  %v2948_v19 = vpop.f32.mrf.mxu2  ;;  %v2892_v6 = vpop.f32.mrf.mxu0 }
 0x354   :  { %3280 = vmatpush.bf16.msrb.mxu0 %v4523_v3 }
 0x355   :  { %v3025_v36 = vmax.f32 %v3009_v55, 0.0  ;;  %3338 = vmatpush.bf16.msra.mxu2 %v4527_v15 }
 0x357   :  { %v3039_v11 = vadd.f32 %v3025_v36, %v6599_v29 }
 0x358   :  { %v2871_v39 = vpop.f32.mrf.mxu3 }
 0x359   :  { %v2872_v23 = vadd.f32 %v2871_v39, %v2843_v20  ;;  %v3055_v37 = vadd.f32 %v3039_v11, %v3023_v16  ;;  %v2919_v20 = vpop.f32.mrf.mxu1  ;;  %v2819_v11 = vadd.f32 %v2818_v18, %v2790_v8  ;;  %v2891_v18 = vadd.f32 %v2890_v54, %v6485_v25 }
 0x35a   :  { %v6670_v25 = vperm.slane %v6536_v40, 1  ;;  %v4935_v40 = vld [vmem:[%s6873_s8 + $0xf4] sm:$0xf0] }
 0x35b   :  { %v3011_v47 = vadd.f32 %v6553_v48, %v2872_v23  ;;  %v2848_v34 = vadd.f32 %v2847_v5, %v2819_v11  ;;  %v2821_v23 = vadd.f32 %v2820_v17, %v2792_v14  ;;  %v2950_v3 = vpop.f32.mrf.mxu2  ;;  %v2920_v15 = vadd.f32 %v2919_v20, %v2891_v18 }
 0x35c   :  { %v2370_v17 = vadd.f32 %v6261_v24, %v6239_v9 }
 0x35d   :  { %v3027_v50 = vmax.f32 %v3011_v47, 0.0  ;;  %v2850_v56 = vadd.f32 %v2849_v43, %v2821_v23  ;;  %v2949_v43 = vadd.f32 %v2948_v19, %v2920_v15 }
 0x35f   :  { %v3041_v55 = vadd.f32 %v3027_v50, %v3023_v16 }
 0x360   :  { %v2873_v57 = vpop.f32.mrf.mxu3 }
 0x361   :  { %v2874_v38 = vadd.f32 %v2873_v57, %v2845_v13  ;;  %v3057_v63 = vadd.f32 %v3041_v55, %v3025_v36  ;;  %v2921_v31 = vpop.f32.mrf.mxu1  ;;  %v2895_v13 = vpop.f32.mrf.mxu0 }
 0x362   :  { %v2896_v14 = vadd.f32 %v2895_v13, %v6492_v42  ;;  %v4636_v42 = vld [vmem:[%s6873_s8 + $0xe8] sm:$0xf0] }
 0x363   :  { %v3013_v59 = vadd.f32 %v6553_v48, %v2874_v38  ;;  %v6657_v4 = vpack.c.bf16 %v3057_v63, %v3055_v37  ;;  %v2399_v38 = vadd.f32 %v6418_v35, %v2370_v17  ;;  %v2953_v20 = vpop.f32.mrf.mxu2  ;;  %v4642_v35 = vld [vmem:[%s6873_s8 + $0xf0] sm:$0xf] }
 0x365   :  { %v3029_v44 = vmax.f32 %v3013_v59, 0.0  ;;  %v2428_v9 = vadd.f32 %v6487_v61, %v2399_v38  ;;  %v4934_v61 = vld [vmem:[%s6873_s8 + $0xf4] sm:$0xf] }
 0x367   :  { %v3043_v39 = vadd.f32 %v3029_v44, %v3025_v36 }
 0x368   :  { %v2876_v26 = vpop.f32.mrf.mxu3 }
 0x369   :  { %v2877_v16 = vadd.f32 %v2876_v26, %v2848_v34  ;;  %v3059_v12 = vadd.f32 %v3043_v39, %v3027_v50  ;;  %v2897_v19 = vpop.f32.mrf.mxu0  ;;  %v2375_v26 = vadd.f32 %v6325_v62, %v6305_v2 }
 0x36b   :  { %v3015_v32 = vadd.f32 %v6553_v48, %v2877_v16  ;;  %v4634_v16 = vld [vmem:[%s6873_s8 + $0xe0] sm:$0xf] }
 0x36d   :  { %v3031_v28 = vmax.f32 %v3015_v32, 0.0  ;;  %v4932_v32 = vld [vmem:[%s6873_s8 + $0xe4] sm:$0xf] }
 0x36f   :  { %v3045_v37 = vadd.f32 %v3031_v28, %v3027_v50  ;;  %v3049_v47 = vadd.f32 %v3031_v28, %v6587_v33 }
 0x370   :  { %v2878_v5 = vpop.f32.mrf.mxu3 }
 0x371   :  { %v2879_v36 = vadd.f32 %v2878_v5, %v2850_v56  ;;  %v3061_v49 = vadd.f32 %v3045_v37, %v3029_v44  ;;  %v4639_v56 = vor.u32 %v4932_v32, %v4636_v42  ;;  %v4626_v5 = vld [vmem:[%s6873_s8 + $0xd0] sm:$0xf]  ;;  %v2900_v13 = vpop.f32.mrf.mxu0  ;;  %v4925_v32 = vld [vmem:[%s6873_s8 + $0xa4] sm:$0xf0] }
 0x373   :  { %v3017_v22 = vadd.f32 %v6553_v48, %v2879_v36  ;;  %v6664_v30 = vpack.c.bf16 %v3061_v49, %v3059_v12  ;;  %v2924_v48 = vpop.f32.mrf.mxu1  ;;  %v4933_v12 = vld [vmem:[%s6873_s8 + $0xe4] sm:$0xf0] }
 0x374   :  { %v4635_v62 = vor.u32 %v4933_v12, %v4634_v16  ;;  %v2925_v18 = vadd.f32 %v2924_v48, %v2896_v14  ;;  %v4620_v48 = vld [vmem:[%s6873_s8 + $0xc8] sm:$0xf0]  ;;  %v4602_v12 = vld [vmem:[%s6873_s8 + $0xa0] sm:$0xf] }
 0x375   :  { %v3033_v52 = vmax.f32 %v3017_v22, 0.0 }
 0x376   :  { %v2954_v36 = vadd.f32 %v2953_v20, %v2925_v18 }
 0x377   :  { %v3035_v50 = vadd.f32 %v3033_v52, %v6599_v29  ;;  %v3047_v55 = vadd.f32 %v3033_v52, %v3029_v44  ;;  %v3065_v57 = vadd.f32 %v3049_v47, %v3033_v52  ;;  %v4644_v44 = vld [vmem:[%s6873_s8 + $0xf8] sm:$0xf0] }
 0x378   :  { %v2977_v8 = vpop.f32.mrf.mxu3  ;;  %v4647_v39 = vor.u32 %v4934_v61, %v4644_v44  ;;  %v4612_v44 = vld [vmem:[%s6873_s8 + $0xb8] sm:$0xf0] }
 0x379   :  { %v3051_v63 = vadd.f32 %v3035_v50, %v6587_v33  ;;  %v2978_v54 = vadd.f32 %v2977_v8, %v2949_v43  ;;  %v3063_v59 = vadd.f32 %v3047_v55, %v3031_v28  ;;  %v2893_v33 = vadd.f32 %v2892_v6, %v2428_v9  ;;  %v2955_v28 = vpop.f32.mrf.mxu2  ;;  %v4618_v43 = vld [vmem:[%s6873_s8 + $0xc0] sm:$0xf]  ;;  %v4929_v50 = vld [vmem:[%s6873_s8 + $0xc4] sm:$0xf0]  ;;  %v4928_v55 = vld [vmem:[%s6873_s8 + $0xc4] sm:$0xf] }
 0x37a   :  { %3360 = vmatpush.bf16.msra.mxu3 %v4647_v39  ;;  %v2404_v6 = vadd.f32 %v6453_v60, %v2375_v26  ;;  %v4931_v60 = vld [vmem:[%s6873_s8 + $0xd4] sm:$0xf0]  ;;  %v4619_v38 = vor.u32 %v4929_v50, %v4618_v43  ;;  %v2380_v39 = vadd.f32 %v6377_v46, %v6372_v58  ;;  %v2901_v26 = vadd.f32 %v2900_v13, %v6501_v45  ;;  %v4924_v58 = vld [vmem:[%s6873_s8 + $0xa4] sm:$0xf] }
 0x37b   :  { %v3067_v24 = vpack.c.bf16 %v6608_v0, %v3051_v63  ;;  %v3004_v29 = vadd.f32 %v6670_v25, %v2978_v54  ;;  %v6677_v11 = vpack.c.bf16 %v3065_v57, %v3063_v59  ;;  %v4643_v0 = vor.u32 %v4935_v40, %v4642_v35  ;;  %v2926_v23 = vpop.f32.mrf.mxu1  ;;  %v4610_v35 = vld [vmem:[%s6873_s8 + $0xb0] sm:$0xf]  ;;  %v4927_v40 = vld [vmem:[%s6873_s8 + $0xb4] sm:$0xf0]  ;;  %v4920_v13 = vld [vmem:[%s6873_s8 + $0x84] sm:$0xf] }
 0x37c   :  { %v2922_v2 = vadd.f32 %v2921_v31, %v2893_v33  ;;  %v2433_v37 = vadd.f32 %v6498_v10, %v2404_v6  ;;  %v4930_v31 = vld [vmem:[%s6873_s8 + $0xd4] sm:$0xf]  ;;  %v4627_v22 = vor.u32 %v4931_v60, %v4626_v5  ;;  %v4628_v10 = vld [vmem:[%s6873_s8 + $0xd8] sm:$0xf0]  ;;  %v4623_v63 = vor.u32 %v4928_v55, %v4620_v48  ;;  %v4588_v55 = vld [vmem:[%s6873_s8 + $0x88] sm:$0xf0] }
 0x37d   :  { %3281 = vmatmul.bf16.vlgmr.msrb.gmra.mxu0 %v3067_v24  ;;  %3339 = vmatmul.bf16.vlgmr.msra.gmra.mxu2 %v3067_v24  ;;  %v4631_v15 = vor.u32 %v4930_v31, %v4628_v10  ;;  %v6734_v20 = vmax.f32 %v3004_v29, 0.0  ;;  %v4926_v29 = vld [vmem:[%s6873_s8 + $0xb4] sm:$0xf]  ;;  %v2409_v46 = vadd.f32 %v6470_v27, %v2380_v39  ;;  %v4603_v6 = vor.u32 %v4925_v32, %v4602_v12  ;;  %v4923_v27 = vld [vmem:[%s6873_s8 + $0x94] sm:$0xf0] }
 0x37e   :  { %3302 = vmatpush.bf16.msrb.mxu1 %v4643_v0  ;;  %v2951_v47 = vadd.f32 %v2950_v3, %v2922_v2  ;;  %3361 = vmatpush.bf16.msra.mxu3 %v4639_v56  ;;  %v2898_v52 = vadd.f32 %v2897_v19, %v2433_v37  ;;  %v4611_v0 = vor.u32 %v4927_v40, %v4610_v35  ;;  %v2902_v2 = vpop.f32.mrf.mxu0  ;;  %v4594_v37 = vld [vmem:[%s6873_s8 + $0x90] sm:$0xf]  ;;  %v4596_v31 = vld [vmem:[%s6873_s8 + $0x98] sm:$0xf0] }
 0x37f   :  { %v2438_v42 = vadd.f32 %v6503_v51, %v2409_v46  ;;  %v4595_v60 = vor.u32 %v4923_v27, %v4594_v37 }
 0x380   :  { %v2979_v34 = vpop.f32.mrf.mxu3  ;;  %v2927_v59 = vadd.f32 %v2926_v23, %v2898_v52  ;;  %v4604_v23 = vld [vmem:[%s6873_s8 + $0xa8] sm:$0xf0]  ;;  %v4586_v52 = vld [vmem:[%s6873_s8 + $0x80] sm:$0xf] }
 0x381   :  { %v2980_v49 = vadd.f32 %v2979_v34, %v2951_v47  ;;  %v2958_v24 = vpop.f32.mrf.mxu2  ;;  %v4615_v34 = vor.u32 %v4926_v29, %v4612_v44  ;;  %v4922_v47 = vld [vmem:[%s6873_s8 + $0x94] sm:$0xf]  ;;  %v2903_v10 = vadd.f32 %v2902_v2, %v2438_v42 }
 0x382   :  { %3303 = vmatpush.bf16.msrb.mxu1 %v4635_v62  ;;  %3362 = vmatpush.bf16.msra.mxu3 %v4631_v15  ;;  %v2956_v61 = vadd.f32 %v2955_v28, %v2927_v59  ;;  %v4607_v62 = vor.u32 %v4924_v58, %v4604_v23 }
 0x383   :  { %v3006_v57 = vadd.f32 %v6670_v25, %v2980_v49  ;;  %v2929_v54 = vpop.f32.mrf.mxu1 }
 0x384   :  { %v2930_v28 = vadd.f32 %v2929_v54, %v2901_v26 }
 0x385   :  { %v6749_v33 = vmax.f32 %v3006_v57, 0.0  ;;  %v4591_v57 = vor.u32 %v4920_v13, %v4588_v55 }
 0x386   :  { %3304 = vmatpush.bf16.msrb.mxu1 %v4627_v22  ;;  %3363 = vmatpush.bf16.msra.mxu3 %v4623_v63  ;;  %v2959_v5 = vadd.f32 %v2958_v24, %v2930_v28  ;;  %v4599_v22 = vor.u32 %v4922_v47, %v4596_v31  ;;  %v2905_v48 = vpop.f32.mrf.mxu0  ;;  %v2385_v24 = vadd.f32 %v6494_v41, %v6490_v7 }
 0x387   :  { %v2906_v35 = vadd.f32 %v2905_v48, %v6506_v21 }
 0x388   :  { %v2982_v3 = vpop.f32.mrf.mxu3 }
 0x389   :  { %v2983_v17 = vadd.f32 %v2982_v3, %v2954_v36  ;;  %v2960_v36 = vpop.f32.mrf.mxu2 }
 0x38a   :  { %3305 = vmatpush.bf16.msrb.mxu1 %v4619_v38  ;;  %3364 = vmatpush.bf16.msra.mxu3 %v4615_v34 }
 0x38b   :  { %v3008_v8 = vadd.f32 %v6670_v25, %v2983_v17  ;;  %v2931_v18 = vpop.f32.mrf.mxu1  ;;  %v4921_v17 = vld [vmem:[%s6873_s8 + $0x84] sm:$0xf0] }
 0x38c   :  { %v4587_v50 = vor.u32 %v4921_v17, %v4586_v52 }
 0x38d   :  { %v6736_v9 = vmax.f32 %v3008_v8, 0.0  ;;  %3286 = vmatmul.bf16.gmra.mxu0 %v6657_v4  ;;  %3344 = vmatmul.bf16.gmra.mxu2 %v6657_v4  ;;  %v2932_v8 = vadd.f32 %v2931_v18, %v2903_v10 }
 0x38e   :  { %3306 = vmatpush.bf16.msrb.mxu1 %v4611_v0  ;;  %3365 = vmatpush.bf16.msra.mxu3 %v4607_v62  ;;  %v2414_v0 = vadd.f32 %v6496_v53, %v2385_v24 }
 0x38f   :  { %v3038_v4 = vadd.f32 %v6736_v9, %v6734_v20  ;;  %v2961_v63 = vadd.f32 %v2960_v36, %v2932_v8 }
 0x390   :  { %v2984_v19 = vpop.f32.mrf.mxu3 }
 0x391   :  { %v6760_v14 = vadd.f32 %v3038_v4, %v6749_v33  ;;  %v2985_v16 = vadd.f32 %v2984_v19, %v2956_v61  ;;  %v2963_v4 = vpop.f32.mrf.mxu2  ;;  %v2443_v19 = vadd.f32 %v6508_v1, %v2414_v0 }
 0x392   :  { %3307 = vmatpush.bf16.msrb.mxu1 %v4603_v6  ;;  %3366 = vmatpush.bf16.msra.mxu3 %v4599_v22 }
 0x393   :  { %v3010_v45 = vadd.f32 %v6670_v25, %v2985_v16  ;;  %v2934_v61 = vpop.f32.mrf.mxu1  ;;  %v2907_v16 = vpop.f32.mrf.mxu0 }
 0x394   :  { %v2935_v34 = vadd.f32 %v2934_v61, %v2906_v35  ;;  %v2908_v7 = vadd.f32 %v2907_v16, %v2443_v19 }
 0x395   :  { %v3026_v56 = vmax.f32 %v3010_v45, 0.0 }
 0x396   :  { %3308 = vmatpush.bf16.msrb.mxu1 %v4595_v60  ;;  %3367 = vmatpush.bf16.msra.mxu3 %v4591_v57 }
 0x397   :  { %v3040_v51 = vadd.f32 %v3026_v56, %v6749_v33 }
 0x398   :  { %v2987_v49 = vpop.f32.mrf.mxu3 }
 0x399   :  { %v2988_v3 = vadd.f32 %v2987_v49, %v2959_v5  ;;  %v3056_v15 = vadd.f32 %v3040_v51, %v6736_v9  ;;  %v2965_v46 = vpop.f32.mrf.mxu2 }
 0x39a   :  { %3309 = vmatpush.bf16.msrb.mxu1 %v4587_v50 }
 0x39b   :  { %v3012_v43 = vadd.f32 %v6670_v25, %v2988_v3  ;;  %v2936_v58 = vpop.f32.mrf.mxu1 }
 0x39c   :  { %v2937_v45 = vadd.f32 %v2936_v58, %v2908_v7 }
 0x39d   :  { %v3028_v38 = vmax.f32 %v3012_v43, 0.0  ;;  %3291 = vmatmul.bf16.gmra.mxu0 %v6664_v30  ;;  %3349 = vmatmul.bf16.gmra.mxu2 %v6664_v30 }
 0x39e   :  { %v2966_v1 = vadd.f32 %v2965_v46, %v2937_v45 }
 0x39f   :  { %v3042_v54 = vadd.f32 %v3028_v38, %v6736_v9  ;;  %v2964_v9 = vadd.f32 %v2963_v4, %v2935_v34 }
 0x3a0   :  { %v2989_v59 = vpop.f32.mrf.mxu3 }
 0x3a1   :  { %v2990_v40 = vadd.f32 %v2989_v59, %v2961_v63  ;;  %v3058_v29 = vadd.f32 %v3042_v54, %v3026_v56 }
 0x3a3   :  { %v3014_v30 = vadd.f32 %v6670_v25, %v2990_v40  ;;  %v3070_v44 = vpack.c.bf16 %v3058_v29, %v3056_v15 }
 0x3a5   :  { %v3030_v39 = vmax.f32 %v3014_v30, 0.0 }
 0x3a7   :  { %v3044_v26 = vadd.f32 %v3030_v39, %v3026_v56 }
 0x3a8   :  { %v2992_v12 = vpop.f32.mrf.mxu3 }
 0x3a9   :  { %v2993_v41 = vadd.f32 %v2992_v12, %v2964_v9  ;;  %v3060_v21 = vadd.f32 %v3044_v26, %v3028_v38 }
 0x3ab   :  { %v3016_v32 = vadd.f32 %v6670_v25, %v2993_v41 }
 0x3ad   :  { %v3032_v53 = vmax.f32 %v3016_v32, 0.0  ;;  %3296 = vmatmul.bf16.gmra.mxu0 %v6677_v11  ;;  %3354 = vmatmul.bf16.gmra.mxu2 %v6677_v11 }
 0x3af   :  { %v3046_v6 = vadd.f32 %v3032_v53, %v3028_v38  ;;  %v3050_v23 = vadd.f32 %v3032_v53, %v6734_v20 }
 0x3b0   :  { %v2994_v2 = vpop.f32.mrf.mxu3 }
 0x3b1   :  { %v2995_v62 = vadd.f32 %v2994_v2, %v2966_v1  ;;  %v3062_v42 = vadd.f32 %v3046_v6, %v3030_v39 }
 0x3b3   :  { %v3018_v28 = vadd.f32 %v6670_v25, %v2995_v62  ;;  %v3072_v56 = vpack.c.bf16 %v3062_v42, %v3060_v21 }
 0x3b5   :  { %v3034_v37 = vmax.f32 %v3018_v28, 0.0 }
 0x3b7   :  { %v3036_v27 = vadd.f32 %v3034_v37, %v6749_v33  ;;  %v3048_v47 = vadd.f32 %v3034_v37, %v3030_v39  ;;  %v3066_v18 = vadd.f32 %v3050_v23, %v3034_v37  ;;  %v3107_v33 = vld [vmem:[%s6874_s9] sm:$0x3]  ;;  %v3405_v23 = vld [vmem:[#allocation6] sm:$0x3] }
 0x3b8   :  { %v6827_v10 = vperm.slane %v3107_v33, 1  ;;  %3421 = vst [vmem:[#allocation1] ss:$9 sm:$0xff] %v3405_v23 }
 0x3b9   :  { %v3052_v5 = vadd.f32 %v3036_v27, %v6734_v20  ;;  %v3064_v51 = vadd.f32 %v3048_v47, %v3032_v53  ;;  %v6824_v20 = vperm.slane %v3107_v33, 0 }
 0x3bb   :  { %v3068_v11 = vpack.c.bf16 %v6760_v14, %v3052_v5  ;;  %v3074_v60 = vpack.c.bf16 %v3066_v18, %v3064_v51 }
 0x3bd   :  { %3310 = vmatmul.bf16.vlgmr.msrb.gmra.mxu1 %v3068_v11  ;;  %3368 = vmatmul.bf16.vlgmr.msra.gmra.mxu3 %v3068_v11 }
 0x3cd   :  { %3315 = vmatmul.bf16.gmra.mxu1 %v3070_v44  ;;  %3373 = vmatmul.bf16.gmra.mxu3 %v3070_v44 }
 0x3dd   :  { %3320 = vmatmul.bf16.gmra.mxu1 %v3072_v56  ;;  %3378 = vmatmul.bf16.gmra.mxu3 %v3072_v56 }
 0x3ed   :  { %3325 = vmatmul.bf16.gmra.mxu1 %v3074_v60  ;;  %3383 = vmatmul.bf16.gmra.mxu3 %v3074_v60 }
 0x3fa   :  { %v3282_v25 = vpop.f32.mrf.mxu0 }
 0x3fb   :  { %v3283_v14 = vadd.f32 %v3282_v25, %v6824_v20 }
 0x400   :  { %v3340_v31 = vpop.f32.mrf.mxu2 }
 0x401   :  { %v3341_v52 = vadd.f32 %v3340_v31, %v6827_v10 }
 0x402   :  { %v3284_v36 = vpop.f32.mrf.mxu0 }
 0x403   :  { %v3285_v13 = vadd.f32 %v3284_v36, %v6824_v20 }
 0x408   :  { %v3342_v49 = vpop.f32.mrf.mxu2 }
 0x409   :  { %v3343_v63 = vadd.f32 %v3342_v49, %v6827_v10 }
 0x40a   :  { %v6829_v15 = vpop.f32.mrf.mxu0 }
 0x410   :  { %v6833_v50 = vpop.f32.mrf.mxu2 }
 0x412   :  { %v3289_v48 = vpop.f32.mrf.mxu0 }
 0x418   :  { %v3347_v61 = vpop.f32.mrf.mxu2 }
 0x41a   :  { %v3292_v0 = vpop.f32.mrf.mxu0 }
 0x41b   :  { %v3293_v27 = vadd.f32 %v3292_v0, %v6824_v20 }
 0x420   :  { %v3350_v19 = vpop.f32.mrf.mxu2 }
 0x422   :  { %v3294_v39 = vpop.f32.mrf.mxu0 }
 0x423   :  { %v3295_v42 = vadd.f32 %v3294_v39, %v6824_v20 }
 0x428   :  { %v3352_v26 = vpop.f32.mrf.mxu2 }
 0x429   :  { %v3353_v31 = vadd.f32 %v3352_v26, %v6827_v10  ;;  %v3423_v26 = vld [vmem:[#allocation1 + $0x9] sm:$0xff] }
 0x42a   :  { %v3297_v7 = vpop.f32.mrf.mxu0 }
 0x42b   :  { %v3298_v46 = vadd.f32 %v3297_v7, %v6824_v20 }
 0x430   :  { %v3355_v21 = vpop.f32.mrf.mxu2 }
 0x431   :  { %v3356_v28 = vadd.f32 %v3355_v21, %v6827_v10 }
 0x432   :  { %v3299_v58 = vpop.f32.mrf.mxu0 }
 0x433   :  { %v3300_v53 = vadd.f32 %v3299_v58, %v6824_v20 }
 0x438   :  { %v3357_v62 = vpop.f32.mrf.mxu2 }
 0x439   :  { %v3358_v47 = vadd.f32 %v3357_v62, %v6827_v10 }
 0x43a   :  { %v3311_v22 = vpop.f32.mrf.mxu1 }
 0x43b   :  { %v3312_v3 = vadd.f32 %v3311_v22, %v3283_v14  ;;  %v3290_v14 = vadd.f32 %v3289_v48, %v6824_v20  ;;  %v3351_v22 = vadd.f32 %v3350_v19, %v6827_v10 }
 0x43d   :  { %v3389_v8 = vmax.f32 %v3312_v3, 0.0 }
 0x440   :  { %v3369_v17 = vpop.f32.mrf.mxu3 }
 0x441   :  { %v3370_v43 = vadd.f32 %v3369_v17, %v3341_v52 }
 0x442   :  { %v3313_v55 = vpop.f32.mrf.mxu1 }
 0x443   :  { %v3314_v57 = vadd.f32 %v3313_v55, %v3285_v13  ;;  %v3390_v40 = vmax.f32 %v3370_v43, 0.0  ;;  %v3288_v13 = vadd.f32 %v6829_v15, %v6824_v20  ;;  %v3414_v43 = vld [vmem:[%s6876_s11] sm:$0x3]  ;;  %v3346_v20 = vadd.f32 %v6833_v50, %v6827_v10 }
 0x445   :  { %v3391_v38 = vmax.f32 %v3314_v57, 0.0 }
 0x447   :  { %v6836_v54 = vpack.c.bf16 %v3391_v38, %v3389_v8  ;;  %v5033_v38 = vmov 0  }
 0x448   :  { %v3371_v59 = vpop.f32.mrf.mxu3  ;;  %4948 = vset.pattern.permute.xlu0 %v5033_v38 }
 0x449   :  { %v3372_v24 = vadd.f32 %v3371_v59, %v3343_v63  ;;  %3417 = vperm.xlu0 %4948, %v3414_v43   ;;  %v3348_v59 = vadd.f32 %v3347_v61, %v6827_v10  ;;  %v3422_v61 = vld [vmem:[#allocation1] sm:$0xff] }
 0x44a   :  { %v3316_v35 = vpop.f32.mrf.mxu1 }
 0x44b   :  { %v3392_v29 = vmax.f32 %v3372_v24, 0.0  ;;  %v3317_v48 = vadd.f32 %v3316_v35, %v3288_v13 }
 0x44d   :  { %v6838_v4 = vpack.c.bf16 %v3392_v29, %v3390_v40  ;;  %v3393_v15 = vmax.f32 %v3317_v48, 0.0 }
 0x450   :  { %v6840_v30 = vpop.f32.mrf.mxu3 }
 0x452   :  { %v3318_v44 = vpop.f32.mrf.mxu1 }
 0x453   :  { %v3319_v55 = vadd.f32 %v3318_v44, %v3290_v14  ;;  %v3375_v44 = vadd.f32 %v6840_v30, %v3346_v20 }
 0x455   :  { %v3395_v24 = vmax.f32 %v3319_v55, 0.0 }
 0x457   :  { %v3408_v19 = vpack.c.bf16 %v3395_v24, %v3393_v15 }
 0x458   :  { %v3376_v34 = vpop.f32.mrf.mxu3 }
 0x459   :  { %v3377_v29 = vadd.f32 %v3376_v34, %v3348_v59 }
 0x45a   :  { %v3321_v9 = vpop.f32.mrf.mxu1 }
 0x45b   :  { %v3322_v60 = vadd.f32 %v3321_v9, %v3293_v27  ;;  %v3396_v39 = vmax.f32 %v3377_v29, 0.0  ;;  %v3394_v9 = vmax.f32 %v3375_v44, 0.0 }
 0x45d   :  { %v3397_v3 = vmax.f32 %v3322_v60, 0.0  ;;  %v3409_v35 = vpack.c.bf16 %v3396_v39, %v3394_v9 }
 0x460   :  { %v3379_v16 = vpop.f32.mrf.mxu3 }
 0x461   :  { %v3380_v57 = vadd.f32 %v3379_v16, %v3351_v22 }
 0x462   :  { %v3323_v12 = vpop.f32.mrf.mxu1 }
 0x463   :  { %v3324_v18 = vadd.f32 %v3323_v12, %v3295_v42  ;;  %v3398_v40 = vmax.f32 %v3380_v57, 0.0 }
 0x465   :  { %v3399_v33 = vmax.f32 %v3324_v18, 0.0 }
 0x467   :  { %v3410_v8 = vpack.c.bf16 %v3399_v33, %v3397_v3 }
 0x468   :  { %v3381_v41 = vpop.f32.mrf.mxu3 }
 0x469   :  { %v3382_v52 = vadd.f32 %v3381_v41, %v3353_v31 }
 0x46a   :  { %v3326_v32 = vpop.f32.mrf.mxu1 }
 0x46b   :  { %v3327_v1 = vadd.f32 %v3326_v32, %v3298_v46  ;;  %v3400_v63 = vmax.f32 %v3382_v52, 0.0 }
 0x46d   :  { %v3401_v56 = vmax.f32 %v3327_v1, 0.0  ;;  %v3411_v0 = vpack.c.bf16 %v3400_v63, %v3398_v40 }
 0x470   :  { %v3384_v45 = vpop.f32.mrf.mxu3 }
 0x471   :  { %v3385_v5 = vadd.f32 %v3384_v45, %v3356_v28 }
 0x472   :  { %v3328_v6 = vpop.f32.mrf.mxu1 }
 0x473   :  { %v3329_v2 = vadd.f32 %v3328_v6, %v3300_v53  ;;  %v3402_v36 = vmax.f32 %v3385_v5, 0.0 }
 0x475   :  { %v3403_v37 = vmax.f32 %v3329_v2, 0.0 }
 0x477   :  { %v3412_v51 = vpack.c.bf16 %v3403_v37, %v3401_v56 }
 0x478   :  { %v3386_v11 = vpop.f32.mrf.mxu3 }
 0x479   :  { %v3387_v25 = vadd.f32 %v3386_v11, %v3358_v47  ;;  %3430 = vmatpush.bf16.xpose.msra.mxu0 %v3412_v51 }
 0x47b   :  { %v3404_v49 = vmax.f32 %v3387_v25, 0.0 }
 0x47d   :  { %v3413_v17 = vpack.c.bf16 %v3404_v49, %v3402_v36 }
 0x47f   :  { %3443 = vmatpush.bf16.xpose.msra.mxu1 %v3413_v17 }
 0x481   :  { %3431 = vmatpush.bf16.xpose.msra.mxu0 %v3410_v8 }
 0x487   :  { %3444 = vmatpush.bf16.xpose.msra.mxu1 %v3411_v0 }
 0x489   :  { %3432 = vmatpush.bf16.xpose.msra.mxu0 %v3408_v19 }
 0x48f   :  { %3445 = vmatpush.bf16.xpose.msra.mxu1 %v3409_v35 }
 0x491   :  { %3433 = vmatpush.bf16.xpose.msra.mxu0 %v6836_v54 }
 0x497   :  { %3446 = vmatpush.bf16.xpose.msra.mxu1 %v6838_v4 }
 0x498   :  { %3434 = vmatmul.bf16.vlgmr.msra.gmra.mxu0 %v3422_v61 }
 0x49e   :  { %3447 = vmatmul.bf16.vlgmr.msra.gmra.mxu1 %v3423_v26 }
 0x4bb   :  { %v3418_v50 = vpop.permute.xlu0 %3417 }
 0x515   :  { %v3435_v10 = vpop.f32.mrf.mxu0 }
 0x516   :  { %v3436_v34 = vadd.f32 %v3435_v10, %v3418_v50 }
 0x51b   :  { %v3448_v16 = vpop.f32.mrf.mxu1 }
 0x51c   :  { %v3449_v30 = vadd.f32 %v3448_v16, %v3436_v34 }
 0x51d   :  { %v3437_v12 = vpop.f32.mrf.mxu0 }
 0x51e   :  { %3453 = vst.msk [vmem:[%s6877_s12] sm:$0x3] %vm3452_vm2, %v3449_v30 }
 0x523   :  { %v3450_v7 = vpop.f32.mrf.mxu1 }
 0x524   :  { %3458 = vsyncpa [#allocation3], 1 }
 0x525   :  { %3459 = vsyncpa [#allocation5], 1 }

</bundles_post_ra>
